<compile_context>
chip_gen: v6e
topology: v6e:2x2x1
jax: 0.10.0
libtpu: 0.0.40
codegen_flags: <defaults>
</compile_context>

<pallas_src>
import jax
import jax.numpy as jnp
from jax.experimental import pallas as pl
from jax.experimental.pallas import tpu as pltpu

HIDDEN = 128
T_OUT = 7


def lstm_kernel(x_ref, w_ih_ref, w_hh_ref, b_ref, w_out_ref, b_out_ref,
                out_ref, xw_scr):
    H = w_hh_ref.shape[0]
    T_out, Bp = out_ref.shape
    T = x_ref.shape[0] // Bp

    # ---- Prologue: hoisted input projection (+ bias) for ALL timesteps.
    # input_size == 1, so x_t @ W_ih is a rank-1 outer product; compute it for
    # every timestep at once, off the serial recurrence path.
    # xw_scr rows are laid out as [t * Bp + b, 4H].
    xw_scr[...] = x_ref[...] * w_ih_ref[...] + b_ref[...]          # (T*Bp, 4H)

    h = jnp.zeros((Bp, H), jnp.float32)
    c = jnp.zeros((Bp, H), jnp.float32)
    hs = []

    # ---- Recurrence: fully unrolled inside a single kernel invocation -> no
    # per-step grid/pipeline overhead (~0.35 us each) and the VLIW scheduler
    # sees across gate computations.
    # TODO(synk): for very long sequences, switch the prefix to
    # lax.fori_loop(..., unroll=k) to bound code size; bf16 W_hh (f32 accum)
    # would further speed up the matmul on v6e/v7x at a small accuracy cost.
    for t in range(T):
        xw_t = xw_scr[t * Bp:(t + 1) * Bp, :]                      # (Bp, 4H)
        gates = xw_t + jnp.dot(h, w_hh_ref[...],
                               preferred_element_type=jnp.float32)  # (Bp, 4H)
        # PyTorch gate order: input, forget, cell (g), output.
        i = jax.nn.sigmoid(gates[:, 0 * H:1 * H])
        f = jax.nn.sigmoid(gates[:, 1 * H:2 * H])
        g = jnp.tanh(gates[:, 2 * H:3 * H])
        o = jax.nn.sigmoid(gates[:, 3 * H:4 * H])
        c = f * c + i * g
        h = o * jnp.tanh(c)
        if t >= T - T_out:
            hs.append(h)

    # ---- Output Linear(128 -> 1) on the last 7 steps: VPU multiply + lane
    # reduction (XLU) instead of an N=1 MXU matmul; single store at the end.
    h_stack = jnp.stack(hs, axis=0)                                # (T_out, Bp, H)
    proj = jnp.sum(h_stack * w_out_ref[...][None], axis=-1)        # (T_out, Bp)
    out_ref[...] = proj + b_out_ref[...]                           # (1,1) broadcast


def lstm_forward(x, params):
    """x: (B, T, 1) float32 -> (B, 7, 1) float32."""
    w_ih, w_hh, b, w_out, b_out = params
    B, T, F = x.shape
    assert F == 1 and T >= T_OUT
    H = HIDDEN
    B_pad = ((B + 7) // 8) * 8          # pad batch to a full sublane group

    # Time-major, batch-padded, flattened to 2D: row t*B_pad + b = x[b, t, 0].
    x_t = jnp.transpose(x, (1, 0, 2))                              # (T, B, 1)
    x_t = jnp.pad(x_t, ((0, 0), (0, B_pad - B), (0, 0)))           # (T, B_pad, 1)
    x2 = x_t.reshape(T * B_pad, 1)

    out_pad = pl.pallas_call(
        lstm_kernel,
        out_shape=jax.ShapeDtypeStruct((T_OUT, B_pad), jnp.float32),
        grid_spec=pltpu.PrefetchScalarGridSpec(
            num_scalar_prefetch=0,
            grid=(1,),
            in_specs=[
                pl.BlockSpec((T * B_pad, 1), lambda i: (0, 0)),    # x (flat, time-major)
                pl.BlockSpec((1, 4 * H), lambda i: (0, 0)),        # W_ih^T (row, input=1)
                pl.BlockSpec((H, 4 * H), lambda i: (0, 0)),        # W_hh^T
                pl.BlockSpec((1, 4 * H), lambda i: (0, 0)),        # b_ih + b_hh
                pl.BlockSpec((1, H), lambda i: (0, 0)),            # W_out (row)
                pl.BlockSpec((1, 1), lambda i: (0, 0)),            # b_out
            ],
            out_specs=pl.BlockSpec((T_OUT, B_pad), lambda i: (0, 0)),
            scratch_shapes=[
                pltpu.VMEM((T * B_pad, 4 * H), jnp.float32),       # hoisted x@W_ih + b
            ],
        ),
        compiler_params=pltpu.CompilerParams(
            dimension_semantics=("arbitrary",)),
    )(x2, w_ih, w_hh, b, w_out, b_out)

    # (T_OUT, B_pad) -> (B, T_OUT, 1)
    return jnp.transpose(out_pad[:, :B], (1, 0))[:, :, None]


def init_params(key):
    """Deterministic init mimicking PyTorch's U(-1/sqrt(H), 1/sqrt(H))."""
    H = HIDDEN
    k = 1.0 / jnp.sqrt(jnp.float32(H))
    keys = jax.random.split(key, 6)
    w_ih = jax.random.uniform(keys[0], (1, 4 * H), jnp.float32, -k, k)   # W_ih^T (input=1)
    w_hh = jax.random.uniform(keys[1], (H, 4 * H), jnp.float32, -k, k)   # W_hh^T
    b_ih = jax.random.uniform(keys[2], (1, 4 * H), jnp.float32, -k, k)
    b_hh = jax.random.uniform(keys[3], (1, 4 * H), jnp.float32, -k, k)
    b = b_ih + b_hh
    w_out = jax.random.uniform(keys[4], (1, H), jnp.float32, -k, k)      # Linear weight (row)
    b_out = jax.random.uniform(keys[5], (1, 1), jnp.float32, -k, k)
    return (w_ih, w_hh, b, w_out, b_out)


def lstm_reference(x, params):
    """Pure-JAX reference matching nn.LSTM + Linear semantics."""
    w_ih, w_hh, b, w_out, b_out = params
    B, T, _ = x.shape
    H = HIDDEN

    def step(carry, x_t):
        h, c = carry
        gates = x_t @ w_ih + h @ w_hh + b
        i = jax.nn.sigmoid(gates[:, :H])
        f = jax.nn.sigmoid(gates[:, H:2 * H])
        g = jnp.tanh(gates[:, 2 * H:3 * H])
        o = jax.nn.sigmoid(gates[:, 3 * H:])
        c = f * c + i * g
        h = o * jnp.tanh(c)
        return (h, c), h

    h0 = jnp.zeros((B, H), jnp.float32)
    c0 = jnp.zeros((B, H), jnp.float32)
    _, hs = jax.lax.scan(step, (h0, c0), jnp.transpose(x, (1, 0, 2)))
    r_out = jnp.transpose(hs, (1, 0, 2))                 # (B, T, H)
    return r_out[:, -T_OUT:, :] @ w_out.T + b_out        # (B, 7, 1)


if __name__ == "__main__":
    key = jax.random.PRNGKey(0)
    k_x, k_p = jax.random.split(key)

    B, T = 4, 16   # (batch, sequence length); input feature size is 1 per the module
    x = jax.random.normal(k_x, (B, T, 1), jnp.float32)
    params = init_params(k_p)

    out = lstm_forward(x, params)
    out = jax.block_until_ready(out)

    ref = lstm_reference(x, params)
    assert out.shape == (B, T_OUT, 1)
    assert jnp.allclose(out, ref, atol=1e-3, rtol=1e-3), (
        f"max abs err {jnp.max(jnp.abs(out - ref))}")

    print("KERNEL_OK")
</pallas_src>

<mosaic_0001>
module attributes {stable_mosaic.version = 11 : i64} {
  func.func @lstm_kernel(%arg0: i32, %arg1: memref<128x1xf32, #tpu.memory_space<vmem>>, %arg2: memref<1x512xf32, #tpu.memory_space<vmem>>, %arg3: memref<128x512xf32, #tpu.memory_space<vmem>>, %arg4: memref<1x512xf32, #tpu.memory_space<vmem>>, %arg5: memref<1x128xf32, #tpu.memory_space<vmem>>, %arg6: memref<1x1xf32, #tpu.memory_space<vmem>>, %arg7: memref<7x8xf32, #tpu.memory_space<vmem>>, %arg8: memref<128x512xf32, #tpu.memory_space<vmem>>) attributes {dimension_semantics = [#tpu.dimension_semantics<arbitrary>], iteration_bounds = array<i64: 1>, scalar_prefetch = 0 : i64, scratch_operands = 1 : i64, tpu.core_type = #tpu.core_type<tc>, window_params = [{pipeline_mode = #tpu.pipeline_mode<synchronous>, transform_indices = @transform_0, window_bounds = array<i64: 128, 1>}, {pipeline_mode = #tpu.pipeline_mode<synchronous>, transform_indices = @transform_1, window_bounds = array<i64: 1, 512>}, {pipeline_mode = #tpu.pipeline_mode<synchronous>, transform_indices = @transform_2, window_bounds = array<i64: 128, 512>}, {pipeline_mode = #tpu.pipeline_mode<synchronous>, transform_indices = @transform_3, window_bounds = array<i64: 1, 512>}, {pipeline_mode = #tpu.pipeline_mode<synchronous>, transform_indices = @transform_4, window_bounds = array<i64: 1, 128>}, {pipeline_mode = #tpu.pipeline_mode<synchronous>, transform_indices = @transform_5, window_bounds = array<i64: 1, 1>}, {pipeline_mode = #tpu.pipeline_mode<synchronous>, transform_indices = @transform_6, window_bounds = array<i64: 7, 8>}]} {
    %c0 = arith.constant 0 : index
    %c0_0 = arith.constant 0 : index
    %0 = vector.load %arg1[%c0, %c0_0] : memref<128x1xf32, #tpu.memory_space<vmem>>, vector<128x1xf32>
    %c0_1 = arith.constant 0 : index
    %c0_2 = arith.constant 0 : index
    %1 = vector.load %arg2[%c0_1, %c0_2] : memref<1x512xf32, #tpu.memory_space<vmem>>, vector<1x512xf32>
    %2 = vector.broadcast %0 : vector<128x1xf32> to vector<128x512xf32>
    %3 = vector.broadcast %1 : vector<1x512xf32> to vector<128x512xf32>
    %4 = arith.mulf %2, %3 : vector<128x512xf32>
    %c0_3 = arith.constant 0 : index
    %c0_4 = arith.constant 0 : index
    %5 = vector.load %arg4[%c0_3, %c0_4] : memref<1x512xf32, #tpu.memory_space<vmem>>, vector<1x512xf32>
    %6 = vector.broadcast %5 : vector<1x512xf32> to vector<128x512xf32>
    %7 = arith.addf %4, %6 : vector<128x512xf32>
    %c0_5 = arith.constant 0 : index
    %c0_6 = arith.constant 0 : index
    %8 = vector.load %arg8[%c0_5, %c0_6] : memref<128x512xf32, #tpu.memory_space<vmem>>, vector<128x512xf32>
    tpu.vector_store %arg8[%c0_5, %c0_6], %7 {strides = array<i32>} : memref<128x512xf32, #tpu.memory_space<vmem>>, vector<128x512xf32>,
    %cst = arith.constant 0.000000e+00 : f32
    %9 = vector.broadcast %cst : f32 to vector<8x128xf32>
    %cst_7 = arith.constant 0.000000e+00 : f32
    %10 = vector.broadcast %cst_7 : f32 to vector<8x128xf32>
    %c0_8 = arith.constant 0 : index
    %c0_9 = arith.constant 0 : index
    %11 = vector.load %arg8[%c0_8, %c0_9] : memref<128x512xf32, #tpu.memory_space<vmem>>, vector<8x512xf32>
    %c0_10 = arith.constant 0 : index
    %c0_11 = arith.constant 0 : index
    %12 = vector.load %arg3[%c0_10, %c0_11] : memref<128x512xf32, #tpu.memory_space<vmem>>, vector<128x512xf32>
    %cst_12 = arith.constant dense<0.000000e+00> : vector<8x512xf32>
    %13 = tpu.matmul %9, %12, %cst_12 {dimension_numbers = #tpu.dot_dimension_numbers<[1], [0], [0], [1], [0, 0, 1, 1], [], []>} : vector<8x128xf32>, vector<128x512xf32>, vector<8x512xf32> -> vector<8x512xf32>
    %14 = arith.addf %11, %13 : vector<8x512xf32>
    %15 = vector.extract_strided_slice %14 {offsets = [0, 0], sizes = [8, 128], strides = [1, 1]} : vector<8x512xf32> to vector<8x128xf32>
    %16 = arith.negf %15 : vector<8x128xf32>
    %17 = math.exp %16 : vector<8x128xf32>
    %cst_13 = arith.constant 1.000000e+00 : f32
    %18 = vector.broadcast %cst_13 : f32 to vector<8x128xf32>
    %19 = arith.addf %18, %17 : vector<8x128xf32>
    %20 = arith.divf %18, %19 : vector<8x128xf32>
    %21 = vector.extract_strided_slice %14 {offsets = [0, 128], sizes = [8, 128], strides = [1, 1]} : vector<8x512xf32> to vector<8x128xf32>
    %22 = arith.negf %21 : vector<8x128xf32>
    %23 = math.exp %22 : vector<8x128xf32>
    %cst_14 = arith.constant 1.000000e+00 : f32
    %24 = vector.broadcast %cst_14 : f32 to vector<8x128xf32>
    %25 = arith.addf %24, %23 : vector<8x128xf32>
    %26 = arith.divf %24, %25 : vector<8x128xf32>
    %27 = vector.extract_strided_slice %14 {offsets = [0, 256], sizes = [8, 128], strides = [1, 1]} : vector<8x512xf32> to vector<8x128xf32>
    %28 = math.tanh %27 : vector<8x128xf32>
    %29 = vector.extract_strided_slice %14 {offsets = [0, 384], sizes = [8, 128], strides = [1, 1]} : vector<8x512xf32> to vector<8x128xf32>
    %30 = arith.negf %29 : vector<8x128xf32>
    %31 = math.exp %30 : vector<8x128xf32>
    %cst_15 = arith.constant 1.000000e+00 : f32
    %32 = vector.broadcast %cst_15 : f32 to vector<8x128xf32>
    %33 = arith.addf %32, %31 : vector<8x128xf32>
    %34 = arith.divf %32, %33 : vector<8x128xf32>
    %35 = arith.mulf %26, %10 : vector<8x128xf32>
    %36 = arith.mulf %20, %28 : vector<8x128xf32>
    %37 = arith.addf %35, %36 : vector<8x128xf32>
    %38 = math.tanh %37 : vector<8x128xf32>
    %39 = arith.mulf %34, %38 : vector<8x128xf32>
    %c8 = arith.constant 8 : index
    %c0_16 = arith.constant 0 : index
    %40 = vector.load %arg8[%c8, %c0_16] : memref<128x512xf32, #tpu.memory_space<vmem>>, vector<8x512xf32>
    %c0_17 = arith.constant 0 : index
    %c0_18 = arith.constant 0 : index
    %41 = vector.load %arg3[%c0_17, %c0_18] : memref<128x512xf32, #tpu.memory_space<vmem>>, vector<128x512xf32>
    %cst_19 = arith.constant dense<0.000000e+00> : vector<8x512xf32>
    %42 = tpu.matmul %39, %41, %cst_19 {dimension_numbers = #tpu.dot_dimension_numbers<[1], [0], [0], [1], [0, 0, 1, 1], [], []>} : vector<8x128xf32>, vector<128x512xf32>, vector<8x512xf32> -> vector<8x512xf32>
    %43 = arith.addf %40, %42 : vector<8x512xf32>
    %44 = vector.extract_strided_slice %43 {offsets = [0, 0], sizes = [8, 128], strides = [1, 1]} : vector<8x512xf32> to vector<8x128xf32>
    %45 = arith.negf %44 : vector<8x128xf32>
    %46 = math.exp %45 : vector<8x128xf32>
    %cst_20 = arith.constant 1.000000e+00 : f32
    %47 = vector.broadcast %cst_20 : f32 to vector<8x128xf32>
    %48 = arith.addf %47, %46 : vector<8x128xf32>
    %49 = arith.divf %47, %48 : vector<8x128xf32>
    %50 = vector.extract_strided_slice %43 {offsets = [0, 128], sizes = [8, 128], strides = [1, 1]} : vector<8x512xf32> to vector<8x128xf32>
    %51 = arith.negf %50 : vector<8x128xf32>
    %52 = math.exp %51 : vector<8x128xf32>
    %cst_21 = arith.constant 1.000000e+00 : f32
    %53 = vector.broadcast %cst_21 : f32 to vector<8x128xf32>
    %54 = arith.addf %53, %52 : vector<8x128xf32>
    %55 = arith.divf %53, %54 : vector<8x128xf32>
    %56 = vector.extract_strided_slice %43 {offsets = [0, 256], sizes = [8, 128], strides = [1, 1]} : vector<8x512xf32> to vector<8x128xf32>
    %57 = math.tanh %56 : vector<8x128xf32>
    %58 = vector.extract_strided_slice %43 {offsets = [0, 384], sizes = [8, 128], strides = [1, 1]} : vector<8x512xf32> to vector<8x128xf32>
    %59 = arith.negf %58 : vector<8x128xf32>
    %60 = math.exp %59 : vector<8x128xf32>
    %cst_22 = arith.constant 1.000000e+00 : f32
    %61 = vector.broadcast %cst_22 : f32 to vector<8x128xf32>
    %62 = arith.addf %61, %60 : vector<8x128xf32>
    %63 = arith.divf %61, %62 : vector<8x128xf32>
    %64 = arith.mulf %55, %37 : vector<8x128xf32>
    %65 = arith.mulf %49, %57 : vector<8x128xf32>
    %66 = arith.addf %64, %65 : vector<8x128xf32>
    %67 = math.tanh %66 : vector<8x128xf32>
    %68 = arith.mulf %63, %67 : vector<8x128xf32>
    %c16 = arith.constant 16 : index
    %c0_23 = arith.constant 0 : index
    %69 = vector.load %arg8[%c16, %c0_23] : memref<128x512xf32, #tpu.memory_space<vmem>>, vector<8x512xf32>
    %c0_24 = arith.constant 0 : index
    %c0_25 = arith.constant 0 : index
    %70 = vector.load %arg3[%c0_24, %c0_25] : memref<128x512xf32, #tpu.memory_space<vmem>>, vector<128x512xf32>
    %cst_26 = arith.constant dense<0.000000e+00> : vector<8x512xf32>
    %71 = tpu.matmul %68, %70, %cst_26 {dimension_numbers = #tpu.dot_dimension_numbers<[1], [0], [0], [1], [0, 0, 1, 1], [], []>} : vector<8x128xf32>, vector<128x512xf32>, vector<8x512xf32> -> vector<8x512xf32>
    %72 = arith.addf %69, %71 : vector<8x512xf32>
    %73 = vector.extract_strided_slice %72 {offsets = [0, 0], sizes = [8, 128], strides = [1, 1]} : vector<8x512xf32> to vector<8x128xf32>
    %74 = arith.negf %73 : vector<8x128xf32>
    %75 = math.exp %74 : vector<8x128xf32>
    %cst_27 = arith.constant 1.000000e+00 : f32
    %76 = vector.broadcast %cst_27 : f32 to vector<8x128xf32>
    %77 = arith.addf %76, %75 : vector<8x128xf32>
    %78 = arith.divf %76, %77 : vector<8x128xf32>
    %79 = vector.extract_strided_slice %72 {offsets = [0, 128], sizes = [8, 128], strides = [1, 1]} : vector<8x512xf32> to vector<8x128xf32>
    %80 = arith.negf %79 : vector<8x128xf32>
    %81 = math.exp %80 : vector<8x128xf32>
    %cst_28 = arith.constant 1.000000e+00 : f32
    %82 = vector.broadcast %cst_28 : f32 to vector<8x128xf32>
    %83 = arith.addf %82, %81 : vector<8x128xf32>
    %84 = arith.divf %82, %83 : vector<8x128xf32>
    %85 = vector.extract_strided_slice %72 {offsets = [0, 256], sizes = [8, 128], strides = [1, 1]} : vector<8x512xf32> to vector<8x128xf32>
    %86 = math.tanh %85 : vector<8x128xf32>
    %87 = vector.extract_strided_slice %72 {offsets = [0, 384], sizes = [8, 128], strides = [1, 1]} : vector<8x512xf32> to vector<8x128xf32>
    %88 = arith.negf %87 : vector<8x128xf32>
    %89 = math.exp %88 : vector<8x128xf32>
    %cst_29 = arith.constant 1.000000e+00 : f32
    %90 = vector.broadcast %cst_29 : f32 to vector<8x128xf32>
    %91 = arith.addf %90, %89 : vector<8x128xf32>
    %92 = arith.divf %90, %91 : vector<8x128xf32>
    %93 = arith.mulf %84, %66 : vector<8x128xf32>
    %94 = arith.mulf %78, %86 : vector<8x128xf32>
    %95 = arith.addf %93, %94 : vector<8x128xf32>
    %96 = math.tanh %95 : vector<8x128xf32>
    %97 = arith.mulf %92, %96 : vector<8x128xf32>
    %c24 = arith.constant 24 : index
    %c0_30 = arith.constant 0 : index
    %98 = vector.load %arg8[%c24, %c0_30] : memref<128x512xf32, #tpu.memory_space<vmem>>, vector<8x512xf32>
    %c0_31 = arith.constant 0 : index
    %c0_32 = arith.constant 0 : index
    %99 = vector.load %arg3[%c0_31, %c0_32] : memref<128x512xf32, #tpu.memory_space<vmem>>, vector<128x512xf32>
    %cst_33 = arith.constant dense<0.000000e+00> : vector<8x512xf32>
    %100 = tpu.matmul %97, %99, %cst_33 {dimension_numbers = #tpu.dot_dimension_numbers<[1], [0], [0], [1], [0, 0, 1, 1], [], []>} : vector<8x128xf32>, vector<128x512xf32>, vector<8x512xf32> -> vector<8x512xf32>
    %101 = arith.addf %98, %100 : vector<8x512xf32>
    %102 = vector.extract_strided_slice %101 {offsets = [0, 0], sizes = [8, 128], strides = [1, 1]} : vector<8x512xf32> to vector<8x128xf32>
    %103 = arith.negf %102 : vector<8x128xf32>
    %104 = math.exp %103 : vector<8x128xf32>
    %cst_34 = arith.constant 1.000000e+00 : f32
    %105 = vector.broadcast %cst_34 : f32 to vector<8x128xf32>
    %106 = arith.addf %105, %104 : vector<8x128xf32>
    %107 = arith.divf %105, %106 : vector<8x128xf32>
    %108 = vector.extract_strided_slice %101 {offsets = [0, 128], sizes = [8, 128], strides = [1, 1]} : vector<8x512xf32> to vector<8x128xf32>
    %109 = arith.negf %108 : vector<8x128xf32>
    %110 = math.exp %109 : vector<8x128xf32>
    %cst_35 = arith.constant 1.000000e+00 : f32
    %111 = vector.broadcast %cst_35 : f32 to vector<8x128xf32>
    %112 = arith.addf %111, %110 : vector<8x128xf32>
    %113 = arith.divf %111, %112 : vector<8x128xf32>
    %114 = vector.extract_strided_slice %101 {offsets = [0, 256], sizes = [8, 128], strides = [1, 1]} : vector<8x512xf32> to vector<8x128xf32>
    %115 = math.tanh %114 : vector<8x128xf32>
    %116 = vector.extract_strided_slice %101 {offsets = [0, 384], sizes = [8, 128], strides = [1, 1]} : vector<8x512xf32> to vector<8x128xf32>
    %117 = arith.negf %116 : vector<8x128xf32>
    %118 = math.exp %117 : vector<8x128xf32>
    %cst_36 = arith.constant 1.000000e+00 : f32
    %119 = vector.broadcast %cst_36 : f32 to vector<8x128xf32>
    %120 = arith.addf %119, %118 : vector<8x128xf32>
    %121 = arith.divf %119, %120 : vector<8x128xf32>
    %122 = arith.mulf %113, %95 : vector<8x128xf32>
    %123 = arith.mulf %107, %115 : vector<8x128xf32>
    %124 = arith.addf %122, %123 : vector<8x128xf32>
    %125 = math.tanh %124 : vector<8x128xf32>
    %126 = arith.mulf %121, %125 : vector<8x128xf32>
    %c32 = arith.constant 32 : index
    %c0_37 = arith.constant 0 : index
    %127 = vector.load %arg8[%c32, %c0_37] : memref<128x512xf32, #tpu.memory_space<vmem>>, vector<8x512xf32>
    %c0_38 = arith.constant 0 : index
    %c0_39 = arith.constant 0 : index
    %128 = vector.load %arg3[%c0_38, %c0_39] : memref<128x512xf32, #tpu.memory_space<vmem>>, vector<128x512xf32>
    %cst_40 = arith.constant dense<0.000000e+00> : vector<8x512xf32>
    %129 = tpu.matmul %126, %128, %cst_40 {dimension_numbers = #tpu.dot_dimension_numbers<[1], [0], [0], [1], [0, 0, 1, 1], [], []>} : vector<8x128xf32>, vector<128x512xf32>, vector<8x512xf32> -> vector<8x512xf32>
    %130 = arith.addf %127, %129 : vector<8x512xf32>
    %131 = vector.extract_strided_slice %130 {offsets = [0, 0], sizes = [8, 128], strides = [1, 1]} : vector<8x512xf32> to vector<8x128xf32>
    %132 = arith.negf %131 : vector<8x128xf32>
    %133 = math.exp %132 : vector<8x128xf32>
    %cst_41 = arith.constant 1.000000e+00 : f32
    %134 = vector.broadcast %cst_41 : f32 to vector<8x128xf32>
    %135 = arith.addf %134, %133 : vector<8x128xf32>
    %136 = arith.divf %134, %135 : vector<8x128xf32>
    %137 = vector.extract_strided_slice %130 {offsets = [0, 128], sizes = [8, 128], strides = [1, 1]} : vector<8x512xf32> to vector<8x128xf32>
    %138 = arith.negf %137 : vector<8x128xf32>
    %139 = math.exp %138 : vector<8x128xf32>
    %cst_42 = arith.constant 1.000000e+00 : f32
    %140 = vector.broadcast %cst_42 : f32 to vector<8x128xf32>
    %141 = arith.addf %140, %139 : vector<8x128xf32>
    %142 = arith.divf %140, %141 : vector<8x128xf32>
    %143 = vector.extract_strided_slice %130 {offsets = [0, 256], sizes = [8, 128], strides = [1, 1]} : vector<8x512xf32> to vector<8x128xf32>
    %144 = math.tanh %143 : vector<8x128xf32>
    %145 = vector.extract_strided_slice %130 {offsets = [0, 384], sizes = [8, 128], strides = [1, 1]} : vector<8x512xf32> to vector<8x128xf32>
    %146 = arith.negf %145 : vector<8x128xf32>
    %147 = math.exp %146 : vector<8x128xf32>
    %cst_43 = arith.constant 1.000000e+00 : f32
    %148 = vector.broadcast %cst_43 : f32 to vector<8x128xf32>
    %149 = arith.addf %148, %147 : vector<8x128xf32>
    %150 = arith.divf %148, %149 : vector<8x128xf32>
    %151 = arith.mulf %142, %124 : vector<8x128xf32>
    %152 = arith.mulf %136, %144 : vector<8x128xf32>
    %153 = arith.addf %151, %152 : vector<8x128xf32>
    %154 = math.tanh %153 : vector<8x128xf32>
    %155 = arith.mulf %150, %154 : vector<8x128xf32>
    %c40 = arith.constant 40 : index
    %c0_44 = arith.constant 0 : index
    %156 = vector.load %arg8[%c40, %c0_44] : memref<128x512xf32, #tpu.memory_space<vmem>>, vector<8x512xf32>
    %c0_45 = arith.constant 0 : index
    %c0_46 = arith.constant 0 : index
    %157 = vector.load %arg3[%c0_45, %c0_46] : memref<128x512xf32, #tpu.memory_space<vmem>>, vector<128x512xf32>
    %cst_47 = arith.constant dense<0.000000e+00> : vector<8x512xf32>
    %158 = tpu.matmul %155, %157, %cst_47 {dimension_numbers = #tpu.dot_dimension_numbers<[1], [0], [0], [1], [0, 0, 1, 1], [], []>} : vector<8x128xf32>, vector<128x512xf32>, vector<8x512xf32> -> vector<8x512xf32>
    %159 = arith.addf %156, %158 : vector<8x512xf32>
    %160 = vector.extract_strided_slice %159 {offsets = [0, 0], sizes = [8, 128], strides = [1, 1]} : vector<8x512xf32> to vector<8x128xf32>
    %161 = arith.negf %160 : vector<8x128xf32>
    %162 = math.exp %161 : vector<8x128xf32>
    %cst_48 = arith.constant 1.000000e+00 : f32
    %163 = vector.broadcast %cst_48 : f32 to vector<8x128xf32>
    %164 = arith.addf %163, %162 : vector<8x128xf32>
    %165 = arith.divf %163, %164 : vector<8x128xf32>
    %166 = vector.extract_strided_slice %159 {offsets = [0, 128], sizes = [8, 128], strides = [1, 1]} : vector<8x512xf32> to vector<8x128xf32>
    %167 = arith.negf %166 : vector<8x128xf32>
    %168 = math.exp %167 : vector<8x128xf32>
    %cst_49 = arith.constant 1.000000e+00 : f32
    %169 = vector.broadcast %cst_49 : f32 to vector<8x128xf32>
    %170 = arith.addf %169, %168 : vector<8x128xf32>
    %171 = arith.divf %169, %170 : vector<8x128xf32>
    %172 = vector.extract_strided_slice %159 {offsets = [0, 256], sizes = [8, 128], strides = [1, 1]} : vector<8x512xf32> to vector<8x128xf32>
    %173 = math.tanh %172 : vector<8x128xf32>
    %174 = vector.extract_strided_slice %159 {offsets = [0, 384], sizes = [8, 128], strides = [1, 1]} : vector<8x512xf32> to vector<8x128xf32>
    %175 = arith.negf %174 : vector<8x128xf32>
    %176 = math.exp %175 : vector<8x128xf32>
    %cst_50 = arith.constant 1.000000e+00 : f32
    %177 = vector.broadcast %cst_50 : f32 to vector<8x128xf32>
    %178 = arith.addf %177, %176 : vector<8x128xf32>
    %179 = arith.divf %177, %178 : vector<8x128xf32>
    %180 = arith.mulf %171, %153 : vector<8x128xf32>
    %181 = arith.mulf %165, %173 : vector<8x128xf32>
    %182 = arith.addf %180, %181 : vector<8x128xf32>
    %183 = math.tanh %182 : vector<8x128xf32>
    %184 = arith.mulf %179, %183 : vector<8x128xf32>
    %c48 = arith.constant 48 : index
    %c0_51 = arith.constant 0 : index
    %185 = vector.load %arg8[%c48, %c0_51] : memref<128x512xf32, #tpu.memory_space<vmem>>, vector<8x512xf32>
    %c0_52 = arith.constant 0 : index
    %c0_53 = arith.constant 0 : index
    %186 = vector.load %arg3[%c0_52, %c0_53] : memref<128x512xf32, #tpu.memory_space<vmem>>, vector<128x512xf32>
    %cst_54 = arith.constant dense<0.000000e+00> : vector<8x512xf32>
    %187 = tpu.matmul %184, %186, %cst_54 {dimension_numbers = #tpu.dot_dimension_numbers<[1], [0], [0], [1], [0, 0, 1, 1], [], []>} : vector<8x128xf32>, vector<128x512xf32>, vector<8x512xf32> -> vector<8x512xf32>
    %188 = arith.addf %185, %187 : vector<8x512xf32>
    %189 = vector.extract_strided_slice %188 {offsets = [0, 0], sizes = [8, 128], strides = [1, 1]} : vector<8x512xf32> to vector<8x128xf32>
    %190 = arith.negf %189 : vector<8x128xf32>
    %191 = math.exp %190 : vector<8x128xf32>
    %cst_55 = arith.constant 1.000000e+00 : f32
    %192 = vector.broadcast %cst_55 : f32 to vector<8x128xf32>
    %193 = arith.addf %192, %191 : vector<8x128xf32>
    %194 = arith.divf %192, %193 : vector<8x128xf32>
    %195 = vector.extract_strided_slice %188 {offsets = [0, 128], sizes = [8, 128], strides = [1, 1]} : vector<8x512xf32> to vector<8x128xf32>
    %196 = arith.negf %195 : vector<8x128xf32>
    %197 = math.exp %196 : vector<8x128xf32>
    %cst_56 = arith.constant 1.000000e+00 : f32
    %198 = vector.broadcast %cst_56 : f32 to vector<8x128xf32>
    %199 = arith.addf %198, %197 : vector<8x128xf32>
    %200 = arith.divf %198, %199 : vector<8x128xf32>
    %201 = vector.extract_strided_slice %188 {offsets = [0, 256], sizes = [8, 128], strides = [1, 1]} : vector<8x512xf32> to vector<8x128xf32>
    %202 = math.tanh %201 : vector<8x128xf32>
    %203 = vector.extract_strided_slice %188 {offsets = [0, 384], sizes = [8, 128], strides = [1, 1]} : vector<8x512xf32> to vector<8x128xf32>
    %204 = arith.negf %203 : vector<8x128xf32>
    %205 = math.exp %204 : vector<8x128xf32>
    %cst_57 = arith.constant 1.000000e+00 : f32
    %206 = vector.broadcast %cst_57 : f32 to vector<8x128xf32>
    %207 = arith.addf %206, %205 : vector<8x128xf32>
    %208 = arith.divf %206, %207 : vector<8x128xf32>
    %209 = arith.mulf %200, %182 : vector<8x128xf32>
    %210 = arith.mulf %194, %202 : vector<8x128xf32>
    %211 = arith.addf %209, %210 : vector<8x128xf32>
    %212 = math.tanh %211 : vector<8x128xf32>
    %213 = arith.mulf %208, %212 : vector<8x128xf32>
    %c56 = arith.constant 56 : index
    %c0_58 = arith.constant 0 : index
    %214 = vector.load %arg8[%c56, %c0_58] : memref<128x512xf32, #tpu.memory_space<vmem>>, vector<8x512xf32>
    %c0_59 = arith.constant 0 : index
    %c0_60 = arith.constant 0 : index
    %215 = vector.load %arg3[%c0_59, %c0_60] : memref<128x512xf32, #tpu.memory_space<vmem>>, vector<128x512xf32>
    %cst_61 = arith.constant dense<0.000000e+00> : vector<8x512xf32>
    %216 = tpu.matmul %213, %215, %cst_61 {dimension_numbers = #tpu.dot_dimension_numbers<[1], [0], [0], [1], [0, 0, 1, 1], [], []>} : vector<8x128xf32>, vector<128x512xf32>, vector<8x512xf32> -> vector<8x512xf32>
    %217 = arith.addf %214, %216 : vector<8x512xf32>
    %218 = vector.extract_strided_slice %217 {offsets = [0, 0], sizes = [8, 128], strides = [1, 1]} : vector<8x512xf32> to vector<8x128xf32>
    %219 = arith.negf %218 : vector<8x128xf32>
    %220 = math.exp %219 : vector<8x128xf32>
    %cst_62 = arith.constant 1.000000e+00 : f32
    %221 = vector.broadcast %cst_62 : f32 to vector<8x128xf32>
    %222 = arith.addf %221, %220 : vector<8x128xf32>
    %223 = arith.divf %221, %222 : vector<8x128xf32>
    %224 = vector.extract_strided_slice %217 {offsets = [0, 128], sizes = [8, 128], strides = [1, 1]} : vector<8x512xf32> to vector<8x128xf32>
    %225 = arith.negf %224 : vector<8x128xf32>
    %226 = math.exp %225 : vector<8x128xf32>
    %cst_63 = arith.constant 1.000000e+00 : f32
    %227 = vector.broadcast %cst_63 : f32 to vector<8x128xf32>
    %228 = arith.addf %227, %226 : vector<8x128xf32>
    %229 = arith.divf %227, %228 : vector<8x128xf32>
    %230 = vector.extract_strided_slice %217 {offsets = [0, 256], sizes = [8, 128], strides = [1, 1]} : vector<8x512xf32> to vector<8x128xf32>
    %231 = math.tanh %230 : vector<8x128xf32>
    %232 = vector.extract_strided_slice %217 {offsets = [0, 384], sizes = [8, 128], strides = [1, 1]} : vector<8x512xf32> to vector<8x128xf32>
    %233 = arith.negf %232 : vector<8x128xf32>
    %234 = math.exp %233 : vector<8x128xf32>
    %cst_64 = arith.constant 1.000000e+00 : f32
    %235 = vector.broadcast %cst_64 : f32 to vector<8x128xf32>
    %236 = arith.addf %235, %234 : vector<8x128xf32>
    %237 = arith.divf %235, %236 : vector<8x128xf32>
    %238 = arith.mulf %229, %211 : vector<8x128xf32>
    %239 = arith.mulf %223, %231 : vector<8x128xf32>
    %240 = arith.addf %238, %239 : vector<8x128xf32>
    %241 = math.tanh %240 : vector<8x128xf32>
    %242 = arith.mulf %237, %241 : vector<8x128xf32>
    %c64 = arith.constant 64 : index
    %c0_65 = arith.constant 0 : index
    %243 = vector.load %arg8[%c64, %c0_65] : memref<128x512xf32, #tpu.memory_space<vmem>>, vector<8x512xf32>
    %c0_66 = arith.constant 0 : index
    %c0_67 = arith.constant 0 : index
    %244 = vector.load %arg3[%c0_66, %c0_67] : memref<128x512xf32, #tpu.memory_space<vmem>>, vector<128x512xf32>
    %cst_68 = arith.constant dense<0.000000e+00> : vector<8x512xf32>
    %245 = tpu.matmul %242, %244, %cst_68 {dimension_numbers = #tpu.dot_dimension_numbers<[1], [0], [0], [1], [0, 0, 1, 1], [], []>} : vector<8x128xf32>, vector<128x512xf32>, vector<8x512xf32> -> vector<8x512xf32>
    %246 = arith.addf %243, %245 : vector<8x512xf32>
    %247 = vector.extract_strided_slice %246 {offsets = [0, 0], sizes = [8, 128], strides = [1, 1]} : vector<8x512xf32> to vector<8x128xf32>
    %248 = arith.negf %247 : vector<8x128xf32>
    %249 = math.exp %248 : vector<8x128xf32>
    %cst_69 = arith.constant 1.000000e+00 : f32
    %250 = vector.broadcast %cst_69 : f32 to vector<8x128xf32>
    %251 = arith.addf %250, %249 : vector<8x128xf32>
    %252 = arith.divf %250, %251 : vector<8x128xf32>
    %253 = vector.extract_strided_slice %246 {offsets = [0, 128], sizes = [8, 128], strides = [1, 1]} : vector<8x512xf32> to vector<8x128xf32>
    %254 = arith.negf %253 : vector<8x128xf32>
    %255 = math.exp %254 : vector<8x128xf32>
    %cst_70 = arith.constant 1.000000e+00 : f32
    %256 = vector.broadcast %cst_70 : f32 to vector<8x128xf32>
    %257 = arith.addf %256, %255 : vector<8x128xf32>
    %258 = arith.divf %256, %257 : vector<8x128xf32>
    %259 = vector.extract_strided_slice %246 {offsets = [0, 256], sizes = [8, 128], strides = [1, 1]} : vector<8x512xf32> to vector<8x128xf32>
    %260 = math.tanh %259 : vector<8x128xf32>
    %261 = vector.extract_strided_slice %246 {offsets = [0, 384], sizes = [8, 128], strides = [1, 1]} : vector<8x512xf32> to vector<8x128xf32>
    %262 = arith.negf %261 : vector<8x128xf32>
    %263 = math.exp %262 : vector<8x128xf32>
    %cst_71 = arith.constant 1.000000e+00 : f32
    %264 = vector.broadcast %cst_71 : f32 to vector<8x128xf32>
    %265 = arith.addf %264, %263 : vector<8x128xf32>
    %266 = arith.divf %264, %265 : vector<8x128xf32>
    %267 = arith.mulf %258, %240 : vector<8x128xf32>
    %268 = arith.mulf %252, %260 : vector<8x128xf32>
    %269 = arith.addf %267, %268 : vector<8x128xf32>
    %270 = math.tanh %269 : vector<8x128xf32>
    %271 = arith.mulf %266, %270 : vector<8x128xf32>
    %c72 = arith.constant 72 : index
    %c0_72 = arith.constant 0 : index
    %272 = vector.load %arg8[%c72, %c0_72] : memref<128x512xf32, #tpu.memory_space<vmem>>, vector<8x512xf32>
    %c0_73 = arith.constant 0 : index
    %c0_74 = arith.constant 0 : index
    %273 = vector.load %arg3[%c0_73, %c0_74] : memref<128x512xf32, #tpu.memory_space<vmem>>, vector<128x512xf32>
    %cst_75 = arith.constant dense<0.000000e+00> : vector<8x512xf32>
    %274 = tpu.matmul %271, %273, %cst_75 {dimension_numbers = #tpu.dot_dimension_numbers<[1], [0], [0], [1], [0, 0, 1, 1], [], []>} : vector<8x128xf32>, vector<128x512xf32>, vector<8x512xf32> -> vector<8x512xf32>
    %275 = arith.addf %272, %274 : vector<8x512xf32>
    %276 = vector.extract_strided_slice %275 {offsets = [0, 0], sizes = [8, 128], strides = [1, 1]} : vector<8x512xf32> to vector<8x128xf32>
    %277 = arith.negf %276 : vector<8x128xf32>
    %278 = math.exp %277 : vector<8x128xf32>
    %cst_76 = arith.constant 1.000000e+00 : f32
    %279 = vector.broadcast %cst_76 : f32 to vector<8x128xf32>
    %280 = arith.addf %279, %278 : vector<8x128xf32>
    %281 = arith.divf %279, %280 : vector<8x128xf32>
    %282 = vector.extract_strided_slice %275 {offsets = [0, 128], sizes = [8, 128], strides = [1, 1]} : vector<8x512xf32> to vector<8x128xf32>
    %283 = arith.negf %282 : vector<8x128xf32>
    %284 = math.exp %283 : vector<8x128xf32>
    %cst_77 = arith.constant 1.000000e+00 : f32
    %285 = vector.broadcast %cst_77 : f32 to vector<8x128xf32>
    %286 = arith.addf %285, %284 : vector<8x128xf32>
    %287 = arith.divf %285, %286 : vector<8x128xf32>
    %288 = vector.extract_strided_slice %275 {offsets = [0, 256], sizes = [8, 128], strides = [1, 1]} : vector<8x512xf32> to vector<8x128xf32>
    %289 = math.tanh %288 : vector<8x128xf32>
    %290 = vector.extract_strided_slice %275 {offsets = [0, 384], sizes = [8, 128], strides = [1, 1]} : vector<8x512xf32> to vector<8x128xf32>
    %291 = arith.negf %290 : vector<8x128xf32>
    %292 = math.exp %291 : vector<8x128xf32>
    %cst_78 = arith.constant 1.000000e+00 : f32
    %293 = vector.broadcast %cst_78 : f32 to vector<8x128xf32>
    %294 = arith.addf %293, %292 : vector<8x128xf32>
    %295 = arith.divf %293, %294 : vector<8x128xf32>
    %296 = arith.mulf %287, %269 : vector<8x128xf32>
    %297 = arith.mulf %281, %289 : vector<8x128xf32>
    %298 = arith.addf %296, %297 : vector<8x128xf32>
    %299 = math.tanh %298 : vector<8x128xf32>
    %300 = arith.mulf %295, %299 : vector<8x128xf32>
    %c80 = arith.constant 80 : index
    %c0_79 = arith.constant 0 : index
    %301 = vector.load %arg8[%c80, %c0_79] : memref<128x512xf32, #tpu.memory_space<vmem>>, vector<8x512xf32>
    %c0_80 = arith.constant 0 : index
    %c0_81 = arith.constant 0 : index
    %302 = vector.load %arg3[%c0_80, %c0_81] : memref<128x512xf32, #tpu.memory_space<vmem>>, vector<128x512xf32>
    %cst_82 = arith.constant dense<0.000000e+00> : vector<8x512xf32>
    %303 = tpu.matmul %300, %302, %cst_82 {dimension_numbers = #tpu.dot_dimension_numbers<[1], [0], [0], [1], [0, 0, 1, 1], [], []>} : vector<8x128xf32>, vector<128x512xf32>, vector<8x512xf32> -> vector<8x512xf32>
    %304 = arith.addf %301, %303 : vector<8x512xf32>
    %305 = vector.extract_strided_slice %304 {offsets = [0, 0], sizes = [8, 128], strides = [1, 1]} : vector<8x512xf32> to vector<8x128xf32>
    %306 = arith.negf %305 : vector<8x128xf32>
    %307 = math.exp %306 : vector<8x128xf32>
    %cst_83 = arith.constant 1.000000e+00 : f32
    %308 = vector.broadcast %cst_83 : f32 to vector<8x128xf32>
    %309 = arith.addf %308, %307 : vector<8x128xf32>
    %310 = arith.divf %308, %309 : vector<8x128xf32>
    %311 = vector.extract_strided_slice %304 {offsets = [0, 128], sizes = [8, 128], strides = [1, 1]} : vector<8x512xf32> to vector<8x128xf32>
    %312 = arith.negf %311 : vector<8x128xf32>
    %313 = math.exp %312 : vector<8x128xf32>
    %cst_84 = arith.constant 1.000000e+00 : f32
    %314 = vector.broadcast %cst_84 : f32 to vector<8x128xf32>
    %315 = arith.addf %314, %313 : vector<8x128xf32>
    %316 = arith.divf %314, %315 : vector<8x128xf32>
    %317 = vector.extract_strided_slice %304 {offsets = [0, 256], sizes = [8, 128], strides = [1, 1]} : vector<8x512xf32> to vector<8x128xf32>
    %318 = math.tanh %317 : vector<8x128xf32>
    %319 = vector.extract_strided_slice %304 {offsets = [0, 384], sizes = [8, 128], strides = [1, 1]} : vector<8x512xf32> to vector<8x128xf32>
    %320 = arith.negf %319 : vector<8x128xf32>
    %321 = math.exp %320 : vector<8x128xf32>
    %cst_85 = arith.constant 1.000000e+00 : f32
    %322 = vector.broadcast %cst_85 : f32 to vector<8x128xf32>
    %323 = arith.addf %322, %321 : vector<8x128xf32>
    %324 = arith.divf %322, %323 : vector<8x128xf32>
    %325 = arith.mulf %316, %298 : vector<8x128xf32>
    %326 = arith.mulf %310, %318 : vector<8x128xf32>
    %327 = arith.addf %325, %326 : vector<8x128xf32>
    %328 = math.tanh %327 : vector<8x128xf32>
    %329 = arith.mulf %324, %328 : vector<8x128xf32>
    %c88 = arith.constant 88 : index
    %c0_86 = arith.constant 0 : index
    %330 = vector.load %arg8[%c88, %c0_86] : memref<128x512xf32, #tpu.memory_space<vmem>>, vector<8x512xf32>
    %c0_87 = arith.constant 0 : index
    %c0_88 = arith.constant 0 : index
    %331 = vector.load %arg3[%c0_87, %c0_88] : memref<128x512xf32, #tpu.memory_space<vmem>>, vector<128x512xf32>
    %cst_89 = arith.constant dense<0.000000e+00> : vector<8x512xf32>
    %332 = tpu.matmul %329, %331, %cst_89 {dimension_numbers = #tpu.dot_dimension_numbers<[1], [0], [0], [1], [0, 0, 1, 1], [], []>} : vector<8x128xf32>, vector<128x512xf32>, vector<8x512xf32> -> vector<8x512xf32>
    %333 = arith.addf %330, %332 : vector<8x512xf32>
    %334 = vector.extract_strided_slice %333 {offsets = [0, 0], sizes = [8, 128], strides = [1, 1]} : vector<8x512xf32> to vector<8x128xf32>
    %335 = arith.negf %334 : vector<8x128xf32>
    %336 = math.exp %335 : vector<8x128xf32>
    %cst_90 = arith.constant 1.000000e+00 : f32
    %337 = vector.broadcast %cst_90 : f32 to vector<8x128xf32>
    %338 = arith.addf %337, %336 : vector<8x128xf32>
    %339 = arith.divf %337, %338 : vector<8x128xf32>
    %340 = vector.extract_strided_slice %333 {offsets = [0, 128], sizes = [8, 128], strides = [1, 1]} : vector<8x512xf32> to vector<8x128xf32>
    %341 = arith.negf %340 : vector<8x128xf32>
    %342 = math.exp %341 : vector<8x128xf32>
    %cst_91 = arith.constant 1.000000e+00 : f32
    %343 = vector.broadcast %cst_91 : f32 to vector<8x128xf32>
    %344 = arith.addf %343, %342 : vector<8x128xf32>
    %345 = arith.divf %343, %344 : vector<8x128xf32>
    %346 = vector.extract_strided_slice %333 {offsets = [0, 256], sizes = [8, 128], strides = [1, 1]} : vector<8x512xf32> to vector<8x128xf32>
    %347 = math.tanh %346 : vector<8x128xf32>
    %348 = vector.extract_strided_slice %333 {offsets = [0, 384], sizes = [8, 128], strides = [1, 1]} : vector<8x512xf32> to vector<8x128xf32>
    %349 = arith.negf %348 : vector<8x128xf32>
    %350 = math.exp %349 : vector<8x128xf32>
    %cst_92 = arith.constant 1.000000e+00 : f32
    %351 = vector.broadcast %cst_92 : f32 to vector<8x128xf32>
    %352 = arith.addf %351, %350 : vector<8x128xf32>
    %353 = arith.divf %351, %352 : vector<8x128xf32>
    %354 = arith.mulf %345, %327 : vector<8x128xf32>
    %355 = arith.mulf %339, %347 : vector<8x128xf32>
    %356 = arith.addf %354, %355 : vector<8x128xf32>
    %357 = math.tanh %356 : vector<8x128xf32>
    %358 = arith.mulf %353, %357 : vector<8x128xf32>
    %c96 = arith.constant 96 : index
    %c0_93 = arith.constant 0 : index
    %359 = vector.load %arg8[%c96, %c0_93] : memref<128x512xf32, #tpu.memory_space<vmem>>, vector<8x512xf32>
    %c0_94 = arith.constant 0 : index
    %c0_95 = arith.constant 0 : index
    %360 = vector.load %arg3[%c0_94, %c0_95] : memref<128x512xf32, #tpu.memory_space<vmem>>, vector<128x512xf32>
    %cst_96 = arith.constant dense<0.000000e+00> : vector<8x512xf32>
    %361 = tpu.matmul %358, %360, %cst_96 {dimension_numbers = #tpu.dot_dimension_numbers<[1], [0], [0], [1], [0, 0, 1, 1], [], []>} : vector<8x128xf32>, vector<128x512xf32>, vector<8x512xf32> -> vector<8x512xf32>
    %362 = arith.addf %359, %361 : vector<8x512xf32>
    %363 = vector.extract_strided_slice %362 {offsets = [0, 0], sizes = [8, 128], strides = [1, 1]} : vector<8x512xf32> to vector<8x128xf32>
    %364 = arith.negf %363 : vector<8x128xf32>
    %365 = math.exp %364 : vector<8x128xf32>
    %cst_97 = arith.constant 1.000000e+00 : f32
    %366 = vector.broadcast %cst_97 : f32 to vector<8x128xf32>
    %367 = arith.addf %366, %365 : vector<8x128xf32>
    %368 = arith.divf %366, %367 : vector<8x128xf32>
    %369 = vector.extract_strided_slice %362 {offsets = [0, 128], sizes = [8, 128], strides = [1, 1]} : vector<8x512xf32> to vector<8x128xf32>
    %370 = arith.negf %369 : vector<8x128xf32>
    %371 = math.exp %370 : vector<8x128xf32>
    %cst_98 = arith.constant 1.000000e+00 : f32
    %372 = vector.broadcast %cst_98 : f32 to vector<8x128xf32>
    %373 = arith.addf %372, %371 : vector<8x128xf32>
    %374 = arith.divf %372, %373 : vector<8x128xf32>
    %375 = vector.extract_strided_slice %362 {offsets = [0, 256], sizes = [8, 128], strides = [1, 1]} : vector<8x512xf32> to vector<8x128xf32>
    %376 = math.tanh %375 : vector<8x128xf32>
    %377 = vector.extract_strided_slice %362 {offsets = [0, 384], sizes = [8, 128], strides = [1, 1]} : vector<8x512xf32> to vector<8x128xf32>
    %378 = arith.negf %377 : vector<8x128xf32>
    %379 = math.exp %378 : vector<8x128xf32>
    %cst_99 = arith.constant 1.000000e+00 : f32
    %380 = vector.broadcast %cst_99 : f32 to vector<8x128xf32>
    %381 = arith.addf %380, %379 : vector<8x128xf32>
    %382 = arith.divf %380, %381 : vector<8x128xf32>
    %383 = arith.mulf %374, %356 : vector<8x128xf32>
    %384 = arith.mulf %368, %376 : vector<8x128xf32>
    %385 = arith.addf %383, %384 : vector<8x128xf32>
    %386 = math.tanh %385 : vector<8x128xf32>
    %387 = arith.mulf %382, %386 : vector<8x128xf32>
    %c104 = arith.constant 104 : index
    %c0_100 = arith.constant 0 : index
    %388 = vector.load %arg8[%c104, %c0_100] : memref<128x512xf32, #tpu.memory_space<vmem>>, vector<8x512xf32>
    %c0_101 = arith.constant 0 : index
    %c0_102 = arith.constant 0 : index
    %389 = vector.load %arg3[%c0_101, %c0_102] : memref<128x512xf32, #tpu.memory_space<vmem>>, vector<128x512xf32>
    %cst_103 = arith.constant dense<0.000000e+00> : vector<8x512xf32>
    %390 = tpu.matmul %387, %389, %cst_103 {dimension_numbers = #tpu.dot_dimension_numbers<[1], [0], [0], [1], [0, 0, 1, 1], [], []>} : vector<8x128xf32>, vector<128x512xf32>, vector<8x512xf32> -> vector<8x512xf32>
    %391 = arith.addf %388, %390 : vector<8x512xf32>
    %392 = vector.extract_strided_slice %391 {offsets = [0, 0], sizes = [8, 128], strides = [1, 1]} : vector<8x512xf32> to vector<8x128xf32>
    %393 = arith.negf %392 : vector<8x128xf32>
    %394 = math.exp %393 : vector<8x128xf32>
    %cst_104 = arith.constant 1.000000e+00 : f32
    %395 = vector.broadcast %cst_104 : f32 to vector<8x128xf32>
    %396 = arith.addf %395, %394 : vector<8x128xf32>
    %397 = arith.divf %395, %396 : vector<8x128xf32>
    %398 = vector.extract_strided_slice %391 {offsets = [0, 128], sizes = [8, 128], strides = [1, 1]} : vector<8x512xf32> to vector<8x128xf32>
    %399 = arith.negf %398 : vector<8x128xf32>
    %400 = math.exp %399 : vector<8x128xf32>
    %cst_105 = arith.constant 1.000000e+00 : f32
    %401 = vector.broadcast %cst_105 : f32 to vector<8x128xf32>
    %402 = arith.addf %401, %400 : vector<8x128xf32>
    %403 = arith.divf %401, %402 : vector<8x128xf32>
    %404 = vector.extract_strided_slice %391 {offsets = [0, 256], sizes = [8, 128], strides = [1, 1]} : vector<8x512xf32> to vector<8x128xf32>
    %405 = math.tanh %404 : vector<8x128xf32>
    %406 = vector.extract_strided_slice %391 {offsets = [0, 384], sizes = [8, 128], strides = [1, 1]} : vector<8x512xf32> to vector<8x128xf32>
    %407 = arith.negf %406 : vector<8x128xf32>
    %408 = math.exp %407 : vector<8x128xf32>
    %cst_106 = arith.constant 1.000000e+00 : f32
    %409 = vector.broadcast %cst_106 : f32 to vector<8x128xf32>
    %410 = arith.addf %409, %408 : vector<8x128xf32>
    %411 = arith.divf %409, %410 : vector<8x128xf32>
    %412 = arith.mulf %403, %385 : vector<8x128xf32>
    %413 = arith.mulf %397, %405 : vector<8x128xf32>
    %414 = arith.addf %412, %413 : vector<8x128xf32>
    %415 = math.tanh %414 : vector<8x128xf32>
    %416 = arith.mulf %411, %415 : vector<8x128xf32>
    %c112 = arith.constant 112 : index
    %c0_107 = arith.constant 0 : index
    %417 = vector.load %arg8[%c112, %c0_107] : memref<128x512xf32, #tpu.memory_space<vmem>>, vector<8x512xf32>
    %c0_108 = arith.constant 0 : index
    %c0_109 = arith.constant 0 : index
    %418 = vector.load %arg3[%c0_108, %c0_109] : memref<128x512xf32, #tpu.memory_space<vmem>>, vector<128x512xf32>
    %cst_110 = arith.constant dense<0.000000e+00> : vector<8x512xf32>
    %419 = tpu.matmul %416, %418, %cst_110 {dimension_numbers = #tpu.dot_dimension_numbers<[1], [0], [0], [1], [0, 0, 1, 1], [], []>} : vector<8x128xf32>, vector<128x512xf32>, vector<8x512xf32> -> vector<8x512xf32>
    %420 = arith.addf %417, %419 : vector<8x512xf32>
    %421 = vector.extract_strided_slice %420 {offsets = [0, 0], sizes = [8, 128], strides = [1, 1]} : vector<8x512xf32> to vector<8x128xf32>
    %422 = arith.negf %421 : vector<8x128xf32>
    %423 = math.exp %422 : vector<8x128xf32>
    %cst_111 = arith.constant 1.000000e+00 : f32
    %424 = vector.broadcast %cst_111 : f32 to vector<8x128xf32>
    %425 = arith.addf %424, %423 : vector<8x128xf32>
    %426 = arith.divf %424, %425 : vector<8x128xf32>
    %427 = vector.extract_strided_slice %420 {offsets = [0, 128], sizes = [8, 128], strides = [1, 1]} : vector<8x512xf32> to vector<8x128xf32>
    %428 = arith.negf %427 : vector<8x128xf32>
    %429 = math.exp %428 : vector<8x128xf32>
    %cst_112 = arith.constant 1.000000e+00 : f32
    %430 = vector.broadcast %cst_112 : f32 to vector<8x128xf32>
    %431 = arith.addf %430, %429 : vector<8x128xf32>
    %432 = arith.divf %430, %431 : vector<8x128xf32>
    %433 = vector.extract_strided_slice %420 {offsets = [0, 256], sizes = [8, 128], strides = [1, 1]} : vector<8x512xf32> to vector<8x128xf32>
    %434 = math.tanh %433 : vector<8x128xf32>
    %435 = vector.extract_strided_slice %420 {offsets = [0, 384], sizes = [8, 128], strides = [1, 1]} : vector<8x512xf32> to vector<8x128xf32>
    %436 = arith.negf %435 : vector<8x128xf32>
    %437 = math.exp %436 : vector<8x128xf32>
    %cst_113 = arith.constant 1.000000e+00 : f32
    %438 = vector.broadcast %cst_113 : f32 to vector<8x128xf32>
    %439 = arith.addf %438, %437 : vector<8x128xf32>
    %440 = arith.divf %438, %439 : vector<8x128xf32>
    %441 = arith.mulf %432, %414 : vector<8x128xf32>
    %442 = arith.mulf %426, %434 : vector<8x128xf32>
    %443 = arith.addf %441, %442 : vector<8x128xf32>
    %444 = math.tanh %443 : vector<8x128xf32>
    %445 = arith.mulf %440, %444 : vector<8x128xf32>
    %c120 = arith.constant 120 : index
    %c0_114 = arith.constant 0 : index
    %446 = vector.load %arg8[%c120, %c0_114] : memref<128x512xf32, #tpu.memory_space<vmem>>, vector<8x512xf32>
    %c0_115 = arith.constant 0 : index
    %c0_116 = arith.constant 0 : index
    %447 = vector.load %arg3[%c0_115, %c0_116] : memref<128x512xf32, #tpu.memory_space<vmem>>, vector<128x512xf32>
    %cst_117 = arith.constant dense<0.000000e+00> : vector<8x512xf32>
    %448 = tpu.matmul %445, %447, %cst_117 {dimension_numbers = #tpu.dot_dimension_numbers<[1], [0], [0], [1], [0, 0, 1, 1], [], []>} : vector<8x128xf32>, vector<128x512xf32>, vector<8x512xf32> -> vector<8x512xf32>
    %449 = arith.addf %446, %448 : vector<8x512xf32>
    %450 = vector.extract_strided_slice %449 {offsets = [0, 0], sizes = [8, 128], strides = [1, 1]} : vector<8x512xf32> to vector<8x128xf32>
    %451 = arith.negf %450 : vector<8x128xf32>
    %452 = math.exp %451 : vector<8x128xf32>
    %cst_118 = arith.constant 1.000000e+00 : f32
    %453 = vector.broadcast %cst_118 : f32 to vector<8x128xf32>
    %454 = arith.addf %453, %452 : vector<8x128xf32>
    %455 = arith.divf %453, %454 : vector<8x128xf32>
    %456 = vector.extract_strided_slice %449 {offsets = [0, 128], sizes = [8, 128], strides = [1, 1]} : vector<8x512xf32> to vector<8x128xf32>
    %457 = arith.negf %456 : vector<8x128xf32>
    %458 = math.exp %457 : vector<8x128xf32>
    %cst_119 = arith.constant 1.000000e+00 : f32
    %459 = vector.broadcast %cst_119 : f32 to vector<8x128xf32>
    %460 = arith.addf %459, %458 : vector<8x128xf32>
    %461 = arith.divf %459, %460 : vector<8x128xf32>
    %462 = vector.extract_strided_slice %449 {offsets = [0, 256], sizes = [8, 128], strides = [1, 1]} : vector<8x512xf32> to vector<8x128xf32>
    %463 = math.tanh %462 : vector<8x128xf32>
    %464 = vector.extract_strided_slice %449 {offsets = [0, 384], sizes = [8, 128], strides = [1, 1]} : vector<8x512xf32> to vector<8x128xf32>
    %465 = arith.negf %464 : vector<8x128xf32>
    %466 = math.exp %465 : vector<8x128xf32>
    %cst_120 = arith.constant 1.000000e+00 : f32
    %467 = vector.broadcast %cst_120 : f32 to vector<8x128xf32>
    %468 = arith.addf %467, %466 : vector<8x128xf32>
    %469 = arith.divf %467, %468 : vector<8x128xf32>
    %470 = arith.mulf %461, %443 : vector<8x128xf32>
    %471 = arith.mulf %455, %463 : vector<8x128xf32>
    %472 = arith.addf %470, %471 : vector<8x128xf32>
    %473 = math.tanh %472 : vector<8x128xf32>
    %474 = arith.mulf %469, %473 : vector<8x128xf32>
    %475 = vector.shape_cast %300 : vector<8x128xf32> to vector<1x8x128xf32>
    %476 = vector.shape_cast %329 : vector<8x128xf32> to vector<1x8x128xf32>
    %477 = vector.shape_cast %358 : vector<8x128xf32> to vector<1x8x128xf32>
    %478 = vector.shape_cast %387 : vector<8x128xf32> to vector<1x8x128xf32>
    %479 = vector.shape_cast %416 : vector<8x128xf32> to vector<1x8x128xf32>
    %480 = vector.shape_cast %445 : vector<8x128xf32> to vector<1x8x128xf32>
    %481 = vector.shape_cast %474 : vector<8x128xf32> to vector<1x8x128xf32>
    %482 = tpu.concatenate %475, %476, %477, %478, %479, %480, %481 in 0 : vector<1x8x128xf32>, vector<1x8x128xf32>, vector<1x8x128xf32>, vector<1x8x128xf32>, vector<1x8x128xf32>, vector<1x8x128xf32>, vector<1x8x128xf32> -> vector<7x8x128xf32>
    %c0_121 = arith.constant 0 : index
    %c0_122 = arith.constant 0 : index
    %483 = vector.load %arg5[%c0_121, %c0_122] : memref<1x128xf32, #tpu.memory_space<vmem>>, vector<1x128xf32>
    %484 = vector.shape_cast %483 : vector<1x128xf32> to vector<1x1x128xf32>
    %485 = vector.broadcast %484 : vector<1x1x128xf32> to vector<7x8x128xf32>
    %486 = arith.mulf %482, %485 : vector<7x8x128xf32>
    %cst_123 = arith.constant dense<0.000000e+00> : vector<7x8xf32>
    %487 = vector.multi_reduction <add>, %486, %cst_123 [2] : vector<7x8x128xf32> to vector<7x8xf32>
    %c0_124 = arith.constant 0 : index
    %c0_125 = arith.constant 0 : index
    %488 = vector.load %arg6[%c0_124, %c0_125] : memref<1x1xf32, #tpu.memory_space<vmem>>, vector<1x1xf32>
    %489 = vector.broadcast %488 : vector<1x1xf32> to vector<7x8xf32>
    %490 = arith.addf %487, %489 : vector<7x8xf32>
    %c0_126 = arith.constant 0 : index
    %c0_127 = arith.constant 0 : index
    %491 = vector.load %arg7[%c0_126, %c0_127] : memref<7x8xf32, #tpu.memory_space<vmem>>, vector<7x8xf32>
    tpu.vector_store %arg7[%c0_126, %c0_127], %490 {strides = array<i32>} : memref<7x8xf32, #tpu.memory_space<vmem>>, vector<7x8xf32>,
    return
  }
  func.func @transform_0(%arg0: i32) -> (i32, i32) {
    %c0_i32 = arith.constant 0 : i32
    %c0_i32_0 = arith.constant 0 : i32
    %c0_i32_1 = arith.constant 0 : i32
    return %c0_i32, %c0_i32_0 : i32, i32
  }
  func.func @transform_1(%arg0: i32) -> (i32, i32) {
    %c0_i32 = arith.constant 0 : i32
    %c0_i32_0 = arith.constant 0 : i32
    %c0_i32_1 = arith.constant 0 : i32
    return %c0_i32, %c0_i32_0 : i32, i32
  }
  func.func @transform_2(%arg0: i32) -> (i32, i32) {
    %c0_i32 = arith.constant 0 : i32
    %c0_i32_0 = arith.constant 0 : i32
    %c0_i32_1 = arith.constant 0 : i32
    return %c0_i32, %c0_i32_0 : i32, i32
  }
  func.func @transform_3(%arg0: i32) -> (i32, i32) {
    %c0_i32 = arith.constant 0 : i32
    %c0_i32_0 = arith.constant 0 : i32
    %c0_i32_1 = arith.constant 0 : i32
    return %c0_i32, %c0_i32_0 : i32, i32
  }
  func.func @transform_4(%arg0: i32) -> (i32, i32) {
    %c0_i32 = arith.constant 0 : i32
    %c0_i32_0 = arith.constant 0 : i32
    %c0_i32_1 = arith.constant 0 : i32
    return %c0_i32, %c0_i32_0 : i32, i32
  }
  func.func @transform_5(%arg0: i32) -> (i32, i32) {
    %c0_i32 = arith.constant 0 : i32
    %c0_i32_0 = arith.constant 0 : i32
    %c0_i32_1 = arith.constant 0 : i32
    return %c0_i32, %c0_i32_0 : i32, i32
  }
  func.func @transform_6(%arg0: i32) -> (i32, i32) {
    %c0_i32 = arith.constant 0 : i32
    %c0_i32_0 = arith.constant 0 : i32
    %c0_i32_1 = arith.constant 0 : i32
    return %c0_i32, %c0_i32_0 : i32, i32
  }
}

</mosaic_0001>

<bundles_post_ra>
// kernel: tpu_custom_call.1
= control target key start
LH: loop header
LB: loop body
LE: loop exit
PB: predicated region body
PF: predicated region fallthrough
CT: control target
= control target key end

     0   :  { %s5587_s0 = inlined_call_operand.vmem [shape: f32[128,1], index: 0, kind: input, shape index: {}]   ;;  %s5588_s1 = inlined_call_operand.vmem [shape: f32[1,512], index: 1, kind: input, shape index: {}]   ;;  %s5589_s2 = inlined_call_operand.hbm [shape: f32[128,512], index: 2, kind: input, shape index: {}]   ;;  %s5590_s3 = inlined_call_operand.vmem [shape: f32[1,512], index: 3, kind: input, shape index: {}]   ;;  %s5591_s4 = inlined_call_operand.vmem [shape: f32[1,128], index: 4, kind: input, shape index: {}]   ;;  %s5592_s5 = inlined_call_operand.<no memory space> [shape: f32[1,1], index: 5, kind: input, shape index: {}]   ;;  %s5593_s6 = inlined_call_operand.hbm [shape: f32[7,8], index: 6, kind: output, shape index: {}]  }
   0x1   :  { %v11_v0 = vstv %s5592_s5 }
   0x2   :  { %12 = vst [vmem:[#allocation3] sm:$0x1] %v11_v0 }
   0x3   :  { %13 = vsyncpa [#allocation5], 0 }
   0x4   :  { %14 = vsyncpa [#allocation6], 0  ;;  %s3883_s23 = smov [#allocation4]  }
   0x5   :  { %s24_s24 = sshll.u32 %s3883_s23, 4  ;;  %s25_s24 = int_to_ptr.vmem [resolvable:$true] %s24_s24 }
   0x6   :  { %s3847_s25 = scalar_lea.vmem %s25_s24, 8192  ;;  %p3852_p1 = scmp.lt.s32.totalorder %s25_s24, %s25_s24 }
   0x7   :  { %p3848_p0 = scmp.ne.s32.totalorder %s25_s24, %s3847_s25  ;;  %p3853_p2 = scmp.lt.s32.totalorder %s3847_s25, %s3847_s25 }
   0x9   :  { %p3854_p3 = por %p3853_p2, %p3852_p1 }
   0xb   :  { %p3855_p4 = pnand %p3854_p3, %p3848_p0 }
   0xd   :  { %3858 = shalt.err (!%p3855_p4)
}
   0xe   :  { %s3884_s26 = smov 512   ;;  %s3885_s27 = smov 32  }
   0xf   :  { %30 = dma.hbm_to_vmem [thread:$0]  %s5589_s2, 8192, %s25_s24, [#allocation5], %s3884_s26, %s3884_s26, %s3885_s27  }
  0x10   :  { %3879 = dma.done.wait [#allocation5], 8192  }
  0x11   :  { %3880 = vsyncadd [#allocation5], 4294959104  ;;  %v5594_v1 = vmov 0.0   ;;  %v3887_v2 = vmov 0   ;;  %v3932_v3 = vld [vmem:[#allocation4 + $0x1e8] sm:$0xff]  ;;  %v3934_v4 = vld [vmem:[#allocation4 + $0x1f8] sm:$0xff] }
  0x12   :  { %504 = vmatprep.mubr.f32.mxu0 %v5594_v1  ;;  %575 = vmatprep.mubr.f32.mxu1 %v5594_v1  ;;  %5773 = vst [vmem:[#allocation10_spill] sm:$0xff] %v3932_v3  ;;  %5774 = vst [vmem:[#allocation11_spill] sm:$0xff] %v3934_v4  ;;  %v3936_v5 = vld [vmem:[#allocation4 + $0x1e0] sm:$0xff]  ;;  %v3940_v6 = vld [vmem:[#allocation4 + $0x1f0] sm:$0xff]  ;;  %vm3302_vm0 = vcmask 1041409   ;;  %vm3304_vm1 = vcmask 1042434  }
  0x13   :  { %3388 = vset.pattern.permute.xlu0 %v3887_v2  ;;  %3389 = vset.pattern.permute.xlu1 %v3887_v2  ;;  %v3942_v7 = vld [vmem:[#allocation4 + $0x1c8] sm:$0xff]  ;;  %v3944_v8 = vld [vmem:[#allocation4 + $0x1d8] sm:$0xff]  ;;  %v3948_v9 = vld [vmem:[#allocation4 + $0x1c0] sm:$0xff]  ;;  %vm3306_vm2 = vcmask 1043459   ;;  %vm3308_vm3 = vcmask 1044484   ;;  %vm3310_vm4 = vcmask 1045509  }
  0x14   :  { %440 = vmatprep.subr.mxu0 %v3932_v3  ;;  %511 = vmatprep.subr.mxu1 %v3934_v4  ;;  %v3950_v10 = vld [vmem:[#allocation4 + $0x1d0] sm:$0xff]  ;;  %v3952_v11 = vld [vmem:[#allocation4 + $0x1a8] sm:$0xff]  ;;  %v3956_v12 = vld [vmem:[#allocation4 + $0x1b8] sm:$0xff]  ;;  %vm3312_vm5 = vcmask 1046534   ;;  %vm3315_vm6 = vcmask 63488  }
  0x15   :  { %441 = vmatpush1.msra.mxu0 %v3936_v5  ;;  %512 = vmatpush1.msra.mxu1 %v3940_v6  ;;  %v3958_v13 = vld [vmem:[#allocation4 + $0x1a0] sm:$0xff]  ;;  %v3960_v14 = vld [vmem:[#allocation4 + $0x1b0] sm:$0xff]  ;;  %v3964_v15 = vld [vmem:[#allocation4 + $0x188] sm:$0xff] }
  0x16   :  { %442 = vmatprep.subr.mxu0 %v3942_v7  ;;  %513 = vmatprep.subr.mxu1 %v3944_v8  ;;  %v3966_v16 = vld [vmem:[#allocation4 + $0x198] sm:$0xff]  ;;  %v3970_v17 = vld [vmem:[#allocation4 + $0x180] sm:$0xff]  ;;  %v3972_v18 = vld [vmem:[#allocation4 + $0x190] sm:$0xff] }
  0x17   :  { %443 = vmatpush1.msra.mxu0 %v3948_v9  ;;  %514 = vmatpush1.msra.mxu1 %v3950_v10  ;;  %v3976_v19 = vld [vmem:[#allocation4 + $0x168] sm:$0xff]  ;;  %v3978_v20 = vld [vmem:[#allocation4 + $0x178] sm:$0xff]  ;;  %v3982_v21 = vld [vmem:[#allocation4 + $0x160] sm:$0xff] }
  0x18   :  { %444 = vmatprep.subr.mxu0 %v3952_v11  ;;  %515 = vmatprep.subr.mxu1 %v3956_v12  ;;  %v3984_v22 = vld [vmem:[#allocation4 + $0x170] sm:$0xff]  ;;  %v3988_v23 = vld [vmem:[#allocation4 + $0x148] sm:$0xff]  ;;  %v3990_v24 = vld [vmem:[#allocation4 + $0x158] sm:$0xff] }
  0x19   :  { %445 = vmatpush1.msra.mxu0 %v3958_v13  ;;  %516 = vmatpush1.msra.mxu1 %v3960_v14  ;;  %v3994_v25 = vld [vmem:[#allocation4 + $0x140] sm:$0xff]  ;;  %v3996_v26 = vld [vmem:[#allocation4 + $0x150] sm:$0xff]  ;;  %v4000_v27 = vld [vmem:[#allocation4 + $0x128] sm:$0xff] }
  0x1a   :  { %446 = vmatprep.subr.mxu0 %v3964_v15  ;;  %517 = vmatprep.subr.mxu1 %v3966_v16  ;;  %v4002_v28 = vld [vmem:[#allocation4 + $0x138] sm:$0xff]  ;;  %v4006_v29 = vld [vmem:[#allocation4 + $0x120] sm:$0xff]  ;;  %v4008_v30 = vld [vmem:[#allocation4 + $0x130] sm:$0xff] }
  0x1b   :  { %447 = vmatpush1.msra.mxu0 %v3970_v17  ;;  %518 = vmatpush1.msra.mxu1 %v3972_v18  ;;  %v4012_v31 = vld [vmem:[#allocation4 + $0x108] sm:$0xff]  ;;  %v4014_v32 = vld [vmem:[#allocation4 + $0x118] sm:$0xff]  ;;  %v4018_v33 = vld [vmem:[#allocation4 + $0x100] sm:$0xff] }
  0x1c   :  { %448 = vmatprep.subr.mxu0 %v3976_v19  ;;  %519 = vmatprep.subr.mxu1 %v3978_v20  ;;  %v4020_v34 = vld [vmem:[#allocation4 + $0x110] sm:$0xff]  ;;  %v4024_v35 = vld [vmem:[#allocation4 + $0xe8] sm:$0xff]  ;;  %v4026_v36 = vld [vmem:[#allocation4 + $0xf8] sm:$0xff] }
  0x1d   :  { %449 = vmatpush1.msra.mxu0 %v3982_v21  ;;  %520 = vmatpush1.msra.mxu1 %v3984_v22  ;;  %v4030_v37 = vld [vmem:[#allocation4 + $0xe0] sm:$0xff]  ;;  %v4032_v38 = vld [vmem:[#allocation4 + $0xf0] sm:$0xff]  ;;  %v4036_v39 = vld [vmem:[#allocation4 + $0xc8] sm:$0xff] }
  0x1e   :  { %450 = vmatprep.subr.mxu0 %v3988_v23  ;;  %521 = vmatprep.subr.mxu1 %v3990_v24  ;;  %v4038_v40 = vld [vmem:[#allocation4 + $0xd8] sm:$0xff]  ;;  %v4042_v41 = vld [vmem:[#allocation4 + $0xc0] sm:$0xff]  ;;  %v4044_v42 = vld [vmem:[#allocation4 + $0xd0] sm:$0xff] }
  0x1f   :  { %451 = vmatpush1.msra.mxu0 %v3994_v25  ;;  %522 = vmatpush1.msra.mxu1 %v3996_v26  ;;  %v4048_v43 = vld [vmem:[#allocation4 + $0xa8] sm:$0xff]  ;;  %v4050_v44 = vld [vmem:[#allocation4 + $0xb8] sm:$0xff]  ;;  %v4054_v45 = vld [vmem:[#allocation4 + $0xa0] sm:$0xff] }
  0x20   :  { %452 = vmatprep.subr.mxu0 %v4000_v27  ;;  %523 = vmatprep.subr.mxu1 %v4002_v28  ;;  %5775 = vst [vmem:[#allocation12_spill] sm:$0xff] %v4054_v45  ;;  %v4056_v46 = vld [vmem:[#allocation4 + $0xb0] sm:$0xff]  ;;  %v4060_v47 = vld [vmem:[#allocation4 + $0x88] sm:$0xff]  ;;  %v4062_v48 = vld [vmem:[#allocation4 + $0x98] sm:$0xff] }
  0x21   :  { %453 = vmatpush1.msra.mxu0 %v4006_v29  ;;  %524 = vmatpush1.msra.mxu1 %v4008_v30  ;;  %5776 = vst [vmem:[#allocation13_spill] sm:$0xff] %v4056_v46  ;;  %5777 = vst [vmem:[#allocation14_spill] sm:$0xff] %v4060_v47  ;;  %v4066_v49 = vld [vmem:[#allocation4 + $0x80] sm:$0xff]  ;;  %v4068_v50 = vld [vmem:[#allocation4 + $0x90] sm:$0xff] }
  0x22   :  { %454 = vmatprep.subr.mxu0 %v4012_v31  ;;  %525 = vmatprep.subr.mxu1 %v4014_v32  ;;  %5778 = vst [vmem:[#allocation15_spill] sm:$0xff] %v4062_v48  ;;  %5779 = vst [vmem:[#allocation16_spill] sm:$0xff] %v4066_v49  ;;  %v4072_v51 = vld [vmem:[#allocation4 + $0x68] sm:$0xff]  ;;  %v4074_v52 = vld [vmem:[#allocation4 + $0x78] sm:$0xff] }
  0x23   :  { %455 = vmatpush1.msra.mxu0 %v4018_v33  ;;  %526 = vmatpush1.msra.mxu1 %v4020_v34  ;;  %5780 = vst [vmem:[#allocation17_spill] sm:$0xff] %v4068_v50  ;;  %5781 = vst [vmem:[#allocation18_spill] sm:$0xff] %v4072_v51  ;;  %v4078_v53 = vld [vmem:[#allocation4 + $0x60] sm:$0xff]  ;;  %v4080_v54 = vld [vmem:[#allocation4 + $0x70] sm:$0xff] }
  0x24   :  { %456 = vmatprep.subr.mxu0 %v4024_v35  ;;  %527 = vmatprep.subr.mxu1 %v4026_v36  ;;  %5782 = vst [vmem:[#allocation19_spill] sm:$0xff] %v4074_v52  ;;  %5783 = vst [vmem:[#allocation20_spill] sm:$0xff] %v4078_v53  ;;  %v4084_v55 = vld [vmem:[#allocation4 + $0x48] sm:$0xff]  ;;  %v4086_v56 = vld [vmem:[#allocation4 + $0x58] sm:$0xff] }
  0x25   :  { %457 = vmatpush1.msra.mxu0 %v4030_v37  ;;  %528 = vmatpush1.msra.mxu1 %v4032_v38  ;;  %5784 = vst [vmem:[#allocation21_spill] sm:$0xff] %v4080_v54  ;;  %5785 = vst [vmem:[#allocation22_spill] sm:$0xff] %v4084_v55  ;;  %v4090_v57 = vld [vmem:[#allocation4 + $0x40] sm:$0xff]  ;;  %v4092_v58 = vld [vmem:[#allocation4 + $0x50] sm:$0xff] }
  0x26   :  { %458 = vmatprep.subr.mxu0 %v4036_v39  ;;  %529 = vmatprep.subr.mxu1 %v4038_v40  ;;  %5786 = vst [vmem:[#allocation23_spill] sm:$0xff] %v4086_v56  ;;  %5787 = vst [vmem:[#allocation24_spill] sm:$0xff] %v4090_v57  ;;  %v4096_v59 = vld [vmem:[#allocation4 + $0x28] sm:$0xff]  ;;  %v4098_v60 = vld [vmem:[#allocation4 + $0x38] sm:$0xff] }
  0x27   :  { %459 = vmatpush1.msra.mxu0 %v4042_v41  ;;  %530 = vmatpush1.msra.mxu1 %v4044_v42  ;;  %5788 = vst [vmem:[#allocation25_spill] sm:$0xff] %v4092_v58  ;;  %5789 = vst [vmem:[#allocation26_spill] sm:$0xff] %v4096_v59  ;;  %v4102_v61 = vld [vmem:[#allocation4 + $0x20] sm:$0xff]  ;;  %v4104_v62 = vld [vmem:[#allocation4 + $0x30] sm:$0xff] }
  0x28   :  { %460 = vmatprep.subr.mxu0 %v4048_v43  ;;  %531 = vmatprep.subr.mxu1 %v4050_v44  ;;  %5790 = vst [vmem:[#allocation27_spill] sm:$0xff] %v4098_v60  ;;  %5791 = vst [vmem:[#allocation28_spill] sm:$0xff] %v4102_v61  ;;  %v4108_v63 = vld [vmem:[#allocation4 + $0x8] sm:$0xff]  ;;  %v4110_v0 = vld [vmem:[#allocation4 + $0x18] sm:$0xff] }
  0x29   :  { %461 = vmatpush1.msra.mxu0 %v4054_v45  ;;  %532 = vmatpush1.msra.mxu1 %v4056_v46  ;;  %5792 = vst [vmem:[#allocation29_spill] sm:$0xff] %v4104_v62  ;;  %5793 = vst [vmem:[#allocation30_spill] sm:$0xff] %v4108_v63  ;;  %v4114_v2 = vld [vmem:[#allocation4] sm:$0xff]  ;;  %v4116_v1 = vld [vmem:[#allocation4 + $0x10] sm:$0xff] }
  0x2a   :  { %462 = vmatprep.subr.mxu0 %v4060_v47  ;;  %533 = vmatprep.subr.mxu1 %v4062_v48  ;;  %5794 = vst [vmem:[#allocation31_spill] sm:$0xff] %v4110_v0  ;;  %5795 = vst [vmem:[#allocation32_spill] sm:$0xff] %v4114_v2 }
  0x2b   :  { %463 = vmatpush1.msra.mxu0 %v4066_v49  ;;  %534 = vmatpush1.msra.mxu1 %v4068_v50  ;;  %5796 = vst [vmem:[#allocation33_spill] sm:$0xff] %v4116_v1 }
  0x2c   :  { %464 = vmatprep.subr.mxu0 %v4072_v51  ;;  %535 = vmatprep.subr.mxu1 %v4074_v52 }
  0x2d   :  { %465 = vmatpush1.msra.mxu0 %v4078_v53  ;;  %536 = vmatpush1.msra.mxu1 %v4080_v54 }
  0x2e   :  { %466 = vmatprep.subr.mxu0 %v4084_v55  ;;  %537 = vmatprep.subr.mxu1 %v4086_v56 }
  0x2f   :  { %467 = vmatpush1.msra.mxu0 %v4090_v57  ;;  %538 = vmatpush1.msra.mxu1 %v4092_v58  ;;  %v40_v58 = vld [vmem:[%s5587_s0] sm:$0xff] }
  0x30   :  { %468 = vmatprep.subr.mxu0 %v4096_v59  ;;  %539 = vmatprep.subr.mxu1 %v4098_v60  ;;  %v5797_v60 = vmov 0.0  }
  0x31   :  { %469 = vmatpush1.msra.mxu0 %v4102_v61  ;;  %540 = vmatpush1.msra.mxu1 %v4104_v62 }
  0x32   :  { %470 = vmatprep.subr.mxu0 %v4108_v63  ;;  %541 = vmatprep.subr.mxu1 %v4110_v0  ;;  %v41_v63 = vld [vmem:[%s5587_s0 + $0x8] sm:$0xff] }
  0x33   :  { %471 = vmatpush1.msra.mxu0 %v4114_v2  ;;  %542 = vmatpush1.msra.mxu1 %v4116_v1 }
  0x34   :  { %505 = vmatmul.mubr.f32.vlgmr.msra.gmra.mxu0 %v5797_v60  ;;  %576 = vmatmul.mubr.f32.vlgmr.msra.gmra.mxu1 %v5797_v60 }
  0x35   :  { %59 = vperm.xlu0 %3388, %v40_v58   ;;  %614 = vmatprep.subr.mxu0 %v3932_v3  ;;  %v44_v58 = vld [vmem:[%s5587_s0 + $0x20] sm:$0xff] }
  0x36   :  { %685 = vmatprep.subr.mxu1 %v3934_v4  ;;  %615 = vmatpush1.msra.mxu0 %v3936_v5 }
  0x37   :  { %686 = vmatpush1.msra.mxu1 %v3940_v6  ;;  %616 = vmatprep.subr.mxu0 %v3942_v7 }
  0x38   :  { %687 = vmatprep.subr.mxu1 %v3944_v8  ;;  %617 = vmatpush1.msra.mxu0 %v3948_v9 }
  0x39   :  { %64 = vperm.xlu0 %3388, %v41_v63   ;;  %688 = vmatpush1.msra.mxu1 %v3950_v10  ;;  %v46_v63 = vld [vmem:[%s5587_s0 + $0x30] sm:$0xff] }
  0x3a   :  { %618 = vmatprep.subr.mxu0 %v3952_v11  ;;  %689 = vmatprep.subr.mxu1 %v3956_v12 }
  0x3b   :  { %619 = vmatpush1.msra.mxu0 %v3958_v13  ;;  %690 = vmatpush1.msra.mxu1 %v3960_v14 }
  0x3c   :  { %620 = vmatprep.subr.mxu0 %v3964_v15  ;;  %691 = vmatprep.subr.mxu1 %v3966_v16 }
  0x3d   :  { %79 = vperm.xlu0 %3388, %v44_v58   ;;  %621 = vmatpush1.msra.mxu0 %v3970_v17  ;;  %v48_v58 = vld [vmem:[%s5587_s0 + $0x40] sm:$0xff] }
  0x3e   :  { %692 = vmatpush1.msra.mxu1 %v3972_v18  ;;  %622 = vmatprep.subr.mxu0 %v3976_v19 }
  0x3f   :  { %693 = vmatprep.subr.mxu1 %v3978_v20  ;;  %623 = vmatpush1.msra.mxu0 %v3982_v21 }
  0x40   :  { %694 = vmatpush1.msra.mxu1 %v3984_v22  ;;  %624 = vmatprep.subr.mxu0 %v3988_v23 }
  0x41   :  { %89 = vperm.xlu0 %3388, %v46_v63   ;;  %695 = vmatprep.subr.mxu1 %v3990_v24  ;;  %v50_v63 = vld [vmem:[%s5587_s0 + $0x50] sm:$0xff] }
  0x42   :  { %625 = vmatpush1.msra.mxu0 %v3994_v25  ;;  %696 = vmatpush1.msra.mxu1 %v3996_v26 }
  0x43   :  { %626 = vmatprep.subr.mxu0 %v4000_v27  ;;  %697 = vmatprep.subr.mxu1 %v4002_v28 }
  0x44   :  { %627 = vmatpush1.msra.mxu0 %v4006_v29  ;;  %698 = vmatpush1.msra.mxu1 %v4008_v30 }
  0x45   :  { %99 = vperm.xlu0 %3388, %v48_v58   ;;  %628 = vmatprep.subr.mxu0 %v4012_v31  ;;  %v52_v58 = vld [vmem:[%s5587_s0 + $0x60] sm:$0xff] }
  0x46   :  { %699 = vmatprep.subr.mxu1 %v4014_v32  ;;  %629 = vmatpush1.msra.mxu0 %v4018_v33 }
  0x47   :  { %700 = vmatpush1.msra.mxu1 %v4020_v34  ;;  %630 = vmatprep.subr.mxu0 %v4024_v35 }
  0x48   :  { %701 = vmatprep.subr.mxu1 %v4026_v36  ;;  %631 = vmatpush1.msra.mxu0 %v4030_v37 }
  0x49   :  { %109 = vperm.xlu0 %3388, %v50_v63   ;;  %702 = vmatpush1.msra.mxu1 %v4032_v38  ;;  %v54_v63 = vld [vmem:[%s5587_s0 + $0x70] sm:$0xff] }
  0x4a   :  { %632 = vmatprep.subr.mxu0 %v4036_v39  ;;  %703 = vmatprep.subr.mxu1 %v4038_v40 }
  0x4b   :  { %633 = vmatpush1.msra.mxu0 %v4042_v41  ;;  %704 = vmatpush1.msra.mxu1 %v4044_v42 }
  0x4c   :  { %634 = vmatprep.subr.mxu0 %v4048_v43  ;;  %705 = vmatprep.subr.mxu1 %v4050_v44 }
  0x4d   :  { %119 = vperm.xlu0 %3388, %v52_v58   ;;  %635 = vmatpush1.msra.mxu0 %v4054_v45  ;;  %v5798_v58 = vld [vmem:[#allocation25_spill] sm:$0xff] }
  0x4e   :  { %706 = vmatpush1.msra.mxu1 %v4056_v46  ;;  %636 = vmatprep.subr.mxu0 %v4060_v47 }
  0x4f   :  { %707 = vmatprep.subr.mxu1 %v4062_v48  ;;  %637 = vmatpush1.msra.mxu0 %v4066_v49 }
  0x50   :  { %708 = vmatpush1.msra.mxu1 %v4068_v50  ;;  %638 = vmatprep.subr.mxu0 %v4072_v51  ;;  %v5799_v50 = vld [vmem:[#allocation27_spill] sm:$0xff] }
  0x51   :  { %129 = vperm.xlu0 %3388, %v54_v63   ;;  %709 = vmatprep.subr.mxu1 %v4074_v52  ;;  %v5800_v63 = vld [vmem:[#allocation30_spill] sm:$0xff] }
  0x52   :  { %639 = vmatpush1.msra.mxu0 %v4078_v53  ;;  %710 = vmatpush1.msra.mxu1 %v4080_v54 }
  0x53   :  { %640 = vmatprep.subr.mxu0 %v4084_v55  ;;  %711 = vmatprep.subr.mxu1 %v4086_v56 }
  0x54   :  { %641 = vmatpush1.msra.mxu0 %v4090_v57  ;;  %712 = vmatpush1.msra.mxu1 %v5798_v58 }
  0x55   :  { %642 = vmatprep.subr.mxu0 %v4096_v59  ;;  %713 = vmatprep.subr.mxu1 %v5799_v50  ;;  %v5618_v50 = vlaneseq }
  0x56   :  { %643 = vmatpush1.msra.mxu0 %v4102_v61  ;;  %714 = vmatpush1.msra.mxu1 %v4104_v62 }
  0x57   :  { %644 = vmatprep.subr.mxu0 %v5800_v63  ;;  %715 = vmatprep.subr.mxu1 %v4110_v0  ;;  %v4219_v61 = vshrl.u32 %v5618_v50, 7 }
  0x58   :  { %645 = vmatpush1.msra.mxu0 %v4114_v2  ;;  %678 = vmatprep.mubr.f32.mxu0 %v5797_v60  ;;  %v56_v2 = vld [vmem:[%s5588_s1] sm:$0xf] }
  0x59   :  { %716 = vmatpush1.msra.mxu1 %v4116_v1  ;;  %749 = vmatprep.mubr.f32.mxu1 %v5797_v60  ;;  %5801 = vst [vmem:[#allocation34_spill] sm:$0xff] %v4219_v61  ;;  %v140_v63 = vsub.s32 0, %v4219_v61  ;;  %v144_v0 = vsub.s32 1, %v4219_v61  ;;  %v152_v57 = vsub.s32 3, %v4219_v61  ;;  %v148_v51 = vsub.s32 2, %v4219_v61 }
  0x5a   :  { %788 = vmatprep.subr.mxu0 %v3932_v3  ;;  %859 = vmatprep.subr.mxu1 %v3934_v4  ;;  %v222_v3 = vld [vmem:[%s5590_s3] sm:$0xf] }
  0x5b   :  { %v4226_v62 = vrot.slane %v56_v2, %v140_v63  ;;  %v4231_v1 = vrot.slane %v56_v2, %v144_v0  ;;  %v4234_v60 = vrot.slane %v222_v3, %v140_v63  ;;  %v4237_v58 = vrot.slane %v222_v3, %v144_v0 }
  0x5c   :  { %v4242_v53 = vrot.slane %v56_v2, %v152_v57  ;;  %v4248_v46 = vrot.slane %v56_v2, %v148_v51 }
  0x5d   :  { %5802 = vst [vmem:[#allocation35_spill] sm:$0xff] %v4226_v62  ;;  %5803 = vst [vmem:[#allocation36_spill] sm:$0xff] %v4231_v1 }
  0x5e   :  { %5804 = vst [vmem:[#allocation37_spill] sm:$0xff] %v4237_v58  ;;  %5805 = vst [vmem:[#allocation38_spill] sm:$0xff] %v4242_v53 }
  0xb0   :  { %v60_v4 = vpop.permute.xlu0 %59 }
  0xb1   :  { %v158_v50 = vmul.f32 %v4226_v62, %v60_v4  ;;  %v159_v59 = vmul.f32 %v4231_v1, %v60_v4  ;;  %v161_v48 = vmul.f32 %v4242_v53, %v60_v4  ;;  %v4246_v1 = vrot.slane %v222_v3, %v152_v57 }
  0xb3   :  { %v244_v56 = vadd.f32 %v4234_v60, %v158_v50  ;;  %v245_v55 = vadd.f32 %v4237_v58, %v159_v59  ;;  %5806 = vst [vmem:[#allocation39_spill] sm:$0xff] %v4246_v1  ;;  %v247_v50 = vadd.f32 %v4246_v1, %v161_v48 }
  0xf4   :  { %v506_v54 = vpop.f32.mrf.mxu0  ;;  %v577_v0 = vpop.f32.mrf.mxu1 }
  0xf5   :  { %v582_v52 = vadd.f32 %v506_v54, %v244_v56  ;;  %v160_v54 = vmul.f32 %v4248_v46, %v60_v4  ;;  %v4252_v56 = vrot.slane %v222_v3, %v148_v51 }
  0xf6   :  { %v508_v49 = vpop.f32.mrf.mxu0  ;;  %v579_v59 = vpop.f32.mrf.mxu1 }
  0xf7   :  { %v3332_v62 = vmul.f32 -1.442695, %v582_v52  ;;  %v583_v63 = vadd.f32 %v508_v49, %v245_v55  ;;  %v585_v61 = vadd.f32 %v579_v59, %v247_v50  ;;  %v246_v49 = vadd.f32 %v4252_v56, %v160_v54  ;;  %v5809_v54 = vld [vmem:[#allocation15_spill] sm:$0xff] }
  0xf9   :  { %3390 = vpow2.f32 %v3332_v62  ;;  %v3333_v47 = vmul.f32 -1.442695, %v583_v63  ;;  %v3334_v52 = vmul.f32 -1.442695, %v585_v61  ;;  %v584_v57 = vadd.f32 %v577_v0, %v246_v49  ;;  %v5810_v49 = vld [vmem:[#allocation16_spill] sm:$0xff] }
  0xfb   :  { %3392 = vpow2.f32 %v3333_v47 }
  0xfc   :  { %3394 = vpow2.f32 %v3334_v52  ;;  %v5811_v52 = vld [vmem:[#allocation17_spill] sm:$0xff] }
 0x106   :  { %v3391_v55 = vpop.eup %3390 }
 0x107   :  { %v589_v53 = vadd.f32 1.0, %v3391_v55  ;;  %v5812_v55 = vld [vmem:[#allocation18_spill] sm:$0xff] }
 0x108   :  { %v3393_v62 = vpop.eup %3392 }
 0x109   :  { %3396 = vrcp.f32 %v589_v53  ;;  %v595_v2 = vadd.f32 1.0, %v3393_v62  ;;  %v3395_v47 = vpop.eup %3394  ;;  %v5808_v53 = vld [vmem:[#allocation14_spill] sm:$0xff]  ;;  %v5814_v62 = vld [vmem:[#allocation20_spill] sm:$0xff] }
 0x10a   :  { %3398 = vtanh.f32 %v584_v57  ;;  %v602_v4 = vadd.f32 1.0, %v3395_v47  ;;  %v5813_v57 = vld [vmem:[#allocation19_spill] sm:$0xff]  ;;  %v5816_v47 = vld [vmem:[#allocation22_spill] sm:$0xff] }
 0x10b   :  { %3400 = vrcp.f32 %v595_v2  ;;  %v5815_v2 = vld [vmem:[#allocation21_spill] sm:$0xff] }
 0x10c   :  { %3402 = vrcp.f32 %v602_v4  ;;  %v5819_v4 = vld [vmem:[#allocation25_spill] sm:$0xff] }
 0x116   :  { %v3397_v48 = vpop.eup %3396 }
 0x117   :  { %v3399_v63 = vpop.eup %3398 }
 0x118   :  { %v3401_v1 = vpop.eup %3400  ;;  %v606_v51 = vmul.f32 %v3399_v63, %v3397_v48  ;;  %v5817_v48 = vld [vmem:[#allocation23_spill] sm:$0xff]  ;;  %v5818_v63 = vld [vmem:[#allocation24_spill] sm:$0xff] }
 0x119   :  { %v605_v3 = vmul.f32 0.0, %v3401_v1  ;;  %v3403_v61 = vpop.eup %3402  ;;  %v5807_v1 = vld [vmem:[#allocation13_spill] sm:$0xff] }
 0x11b   :  { %v4255_v50 = vadd.f32 %v606_v51, %v605_v3  ;;  %v5820_v3 = vld [vmem:[#allocation26_spill] sm:$0xff]  ;;  %v5821_v51 = vld [vmem:[#allocation27_spill] sm:$0xff] }
 0x11d   :  { %3404 = vtanh.f32 %v4255_v50 }
 0x12a   :  { %v3405_v0 = vpop.eup %3404 }
 0x12b   :  { %v609_v59 = vmul.f32 %v3405_v0, %v3403_v61  ;;  %v5822_v61 = vld [vmem:[#allocation28_spill] sm:$0xff]  ;;  %v5823_v0 = vld [vmem:[#allocation29_spill] sm:$0xff] }
 0x12d   :  { %679 = vmatmul.mubr.f32.vlgmr.msra.gmra.mxu0 %v609_v59  ;;  %750 = vmatmul.mubr.f32.vlgmr.msra.gmra.mxu1 %v609_v59  ;;  %v5824_v59 = vld [vmem:[#allocation30_spill] sm:$0xff] }
 0x12e   :  { %789 = vmatpush1.msra.mxu0 %v3936_v5  ;;  %860 = vmatpush1.msra.mxu1 %v3940_v6 }
 0x12f   :  { %790 = vmatprep.subr.mxu0 %v3942_v7  ;;  %861 = vmatprep.subr.mxu1 %v3944_v8 }
 0x130   :  { %791 = vmatpush1.msra.mxu0 %v3948_v9  ;;  %862 = vmatpush1.msra.mxu1 %v3950_v10 }
 0x131   :  { %792 = vmatprep.subr.mxu0 %v3952_v11  ;;  %863 = vmatprep.subr.mxu1 %v3956_v12 }
 0x132   :  { %793 = vmatpush1.msra.mxu0 %v3958_v13  ;;  %864 = vmatpush1.msra.mxu1 %v3960_v14 }
 0x133   :  { %794 = vmatprep.subr.mxu0 %v3964_v15  ;;  %865 = vmatprep.subr.mxu1 %v3966_v16 }
 0x134   :  { %795 = vmatpush1.msra.mxu0 %v3970_v17  ;;  %866 = vmatpush1.msra.mxu1 %v3972_v18 }
 0x135   :  { %796 = vmatprep.subr.mxu0 %v3976_v19  ;;  %867 = vmatprep.subr.mxu1 %v3978_v20 }
 0x136   :  { %797 = vmatpush1.msra.mxu0 %v3982_v21  ;;  %868 = vmatpush1.msra.mxu1 %v3984_v22 }
 0x137   :  { %798 = vmatprep.subr.mxu0 %v3988_v23  ;;  %869 = vmatprep.subr.mxu1 %v3990_v24 }
 0x138   :  { %799 = vmatpush1.msra.mxu0 %v3994_v25  ;;  %870 = vmatpush1.msra.mxu1 %v3996_v26 }
 0x139   :  { %800 = vmatprep.subr.mxu0 %v4000_v27  ;;  %871 = vmatprep.subr.mxu1 %v4002_v28 }
 0x13a   :  { %801 = vmatpush1.msra.mxu0 %v4006_v29  ;;  %872 = vmatpush1.msra.mxu1 %v4008_v30 }
 0x13b   :  { %802 = vmatprep.subr.mxu0 %v4012_v31  ;;  %873 = vmatprep.subr.mxu1 %v4014_v32 }
 0x13c   :  { %803 = vmatpush1.msra.mxu0 %v4018_v33  ;;  %874 = vmatpush1.msra.mxu1 %v4020_v34 }
 0x13d   :  { %804 = vmatprep.subr.mxu0 %v4024_v35  ;;  %875 = vmatprep.subr.mxu1 %v4026_v36 }
 0x13e   :  { %805 = vmatpush1.msra.mxu0 %v4030_v37  ;;  %876 = vmatpush1.msra.mxu1 %v4032_v38 }
 0x13f   :  { %806 = vmatprep.subr.mxu0 %v4036_v39  ;;  %877 = vmatprep.subr.mxu1 %v4038_v40 }
 0x140   :  { %807 = vmatpush1.msra.mxu0 %v4042_v41  ;;  %878 = vmatpush1.msra.mxu1 %v4044_v42 }
 0x141   :  { %808 = vmatprep.subr.mxu0 %v4048_v43  ;;  %879 = vmatprep.subr.mxu1 %v4050_v44 }
 0x142   :  { %809 = vmatpush1.msra.mxu0 %v4054_v45  ;;  %880 = vmatpush1.msra.mxu1 %v5807_v1  ;;  %v5834_v1 = vld [vmem:[#allocation39_spill] sm:$0xff] }
 0x143   :  { %810 = vmatprep.subr.mxu0 %v5808_v53  ;;  %881 = vmatprep.subr.mxu1 %v5809_v54  ;;  %v5833_v54 = vld [vmem:[#allocation38_spill] sm:$0xff] }
 0x144   :  { %811 = vmatpush1.msra.mxu0 %v5810_v49  ;;  %882 = vmatpush1.msra.mxu1 %v5811_v52 }
 0x145   :  { %812 = vmatprep.subr.mxu0 %v5812_v55  ;;  %883 = vmatprep.subr.mxu1 %v5813_v57 }
 0x146   :  { %813 = vmatpush1.msra.mxu0 %v5814_v62  ;;  %884 = vmatpush1.msra.mxu1 %v5815_v2  ;;  %v5825_v62 = vld [vmem:[#allocation31_spill] sm:$0xff]  ;;  %v5826_v2 = vld [vmem:[#allocation32_spill] sm:$0xff] }
 0x147   :  { %814 = vmatprep.subr.mxu0 %v5816_v47  ;;  %885 = vmatprep.subr.mxu1 %v5817_v48  ;;  %v5827_v47 = vmov 0.0   ;;  %v5828_v48 = vld [vmem:[#allocation33_spill] sm:$0xff] }
 0x148   :  { %815 = vmatpush1.msra.mxu0 %v5818_v63  ;;  %886 = vmatpush1.msra.mxu1 %v5819_v4  ;;  %v5829_v4 = vld [vmem:[#allocation10_spill] sm:$0xff] }
 0x149   :  { %816 = vmatprep.subr.mxu0 %v5820_v3  ;;  %887 = vmatprep.subr.mxu1 %v5821_v51  ;;  %v5830_v3 = vld [vmem:[#allocation11_spill] sm:$0xff] }
 0x14a   :  { %817 = vmatpush1.msra.mxu0 %v5822_v61  ;;  %888 = vmatpush1.msra.mxu1 %v5823_v0  ;;  %v42_v0 = vld [vmem:[%s5587_s0 + $0x10] sm:$0xff] }
 0x14b   :  { %818 = vmatprep.subr.mxu0 %v5824_v59  ;;  %889 = vmatprep.subr.mxu1 %v5825_v62  ;;  %v43_v62 = vld [vmem:[%s5587_s0 + $0x18] sm:$0xff] }
 0x14c   :  { %819 = vmatpush1.msra.mxu0 %v5826_v2  ;;  %852 = vmatprep.mubr.f32.mxu0 %v5827_v47  ;;  %v5832_v59 = vld [vmem:[#allocation36_spill] sm:$0xff] }
 0x14d   :  { %890 = vmatpush1.msra.mxu1 %v5828_v48  ;;  %923 = vmatprep.mubr.f32.mxu1 %v5827_v47  ;;  %v45_v48 = vld [vmem:[%s5587_s0 + $0x28] sm:$0xff]  ;;  %v5831_v47 = vld [vmem:[#allocation35_spill] sm:$0xff] }
 0x14e   :  { %962 = vmatprep.subr.mxu0 %v5829_v4  ;;  %1033 = vmatprep.subr.mxu1 %v5830_v3  ;;  %v47_v4 = vld [vmem:[%s5587_s0 + $0x38] sm:$0xff]  ;;  %v49_v3 = vld [vmem:[%s5587_s0 + $0x48] sm:$0xff] }
 0x14f   :  { %69 = vperm.xlu1 %3389, %v42_v0   ;;  %v51_v0 = vld [vmem:[%s5587_s0 + $0x58] sm:$0xff] }
 0x153   :  { %74 = vperm.xlu1 %3389, %v43_v62   ;;  %v53_v62 = vld [vmem:[%s5587_s0 + $0x68] sm:$0xff] }
 0x157   :  { %84 = vperm.xlu1 %3389, %v45_v48   ;;  %v55_v48 = vld [vmem:[%s5587_s0 + $0x78] sm:$0xff] }
 0x15b   :  { %94 = vperm.xlu1 %3389, %v47_v4   ;;  %v65_v4 = vpop.permute.xlu0 %64 }
 0x15c   :  { %v162_v2 = vmul.f32 %v5831_v47, %v65_v4  ;;  %v165_v53 = vmul.f32 %v5833_v54, %v65_v4 }
 0x15e   :  { %v248_v61 = vadd.f32 %v4234_v60, %v162_v2  ;;  %v251_v47 = vadd.f32 %v5834_v1, %v165_v53 }
 0x15f   :  { %104 = vperm.xlu1 %3389, %v49_v3   ;;  %v163_v3 = vmul.f32 %v5832_v59, %v65_v4  ;;  %v164_v59 = vmul.f32 %v4248_v46, %v65_v4 }
 0x161   :  { %v250_v2 = vadd.f32 %v4252_v56, %v164_v59 }
 0x163   :  { %114 = vperm.xlu1 %3389, %v51_v0   ;;  %v249_v0 = vadd.f32 %v4237_v58, %v163_v3 }
 0x167   :  { %124 = vperm.xlu1 %3389, %v53_v62  }
 0x16b   :  { %134 = vperm.xlu1 %3389, %v55_v48  }
 0x1ed   :  { %v680_v51 = vpop.f32.mrf.mxu0  ;;  %v751_v62 = vpop.f32.mrf.mxu1 }
 0x1ee   :  { %v756_v63 = vadd.f32 %v680_v51, %v248_v61  ;;  %v758_v3 = vadd.f32 %v751_v62, %v250_v2  ;;  %v5839_v2 = vld [vmem:[#allocation16_spill] sm:$0xff] }
 0x1ef   :  { %v682_v57 = vpop.f32.mrf.mxu0  ;;  %v753_v48 = vpop.f32.mrf.mxu1 }
 0x1f0   :  { %v3335_v55 = vmul.f32 -1.442695, %v756_v63  ;;  %v757_v52 = vadd.f32 %v682_v57, %v249_v0  ;;  %v759_v45 = vadd.f32 %v753_v48, %v251_v47  ;;  %v5838_v48 = vld [vmem:[#allocation15_spill] sm:$0xff] }
 0x1f2   :  { %3406 = vpow2.f32 %v3335_v55  ;;  %v3336_v49 = vmul.f32 -1.442695, %v757_v52  ;;  %v3337_v51 = vmul.f32 -1.442695, %v759_v45 }
 0x1f4   :  { %3408 = vpow2.f32 %v3336_v49 }
 0x1f5   :  { %3410 = vpow2.f32 %v3337_v51  ;;  %v5840_v51 = vld [vmem:[#allocation17_spill] sm:$0xff] }
 0x1ff   :  { %v3407_v61 = vpop.eup %3406 }
 0x200   :  { %v763_v58 = vadd.f32 1.0, %v3407_v61  ;;  %v5841_v61 = vld [vmem:[#allocation18_spill] sm:$0xff] }
 0x201   :  { %v3409_v63 = vpop.eup %3408 }
 0x202   :  { %3412 = vrcp.f32 %v763_v58  ;;  %v769_v55 = vadd.f32 1.0, %v3409_v63  ;;  %v3411_v52 = vpop.eup %3410  ;;  %v5835_v58 = vld [vmem:[#allocation12_spill] sm:$0xff] }
 0x203   :  { %3414 = vtanh.f32 %v758_v3  ;;  %v776_v53 = vadd.f32 1.0, %v3411_v52  ;;  %v5842_v3 = vld [vmem:[#allocation19_spill] sm:$0xff]  ;;  %v5843_v63 = vld [vmem:[#allocation20_spill] sm:$0xff]  ;;  %v5845_v52 = vld [vmem:[#allocation22_spill] sm:$0xff] }
 0x204   :  { %3416 = vrcp.f32 %v769_v55  ;;  %v5844_v55 = vld [vmem:[#allocation21_spill] sm:$0xff] }
 0x205   :  { %3418 = vrcp.f32 %v776_v53  ;;  %v5849_v53 = vld [vmem:[#allocation26_spill] sm:$0xff] }
 0x20f   :  { %v3413_v49 = vpop.eup %3412 }
 0x210   :  { %v3415_v57 = vpop.eup %3414 }
 0x211   :  { %v3417_v0 = vpop.eup %3416  ;;  %v780_v1 = vmul.f32 %v3415_v57, %v3413_v49  ;;  %v5846_v49 = vld [vmem:[#allocation23_spill] sm:$0xff]  ;;  %v5847_v57 = vld [vmem:[#allocation24_spill] sm:$0xff] }
 0x212   :  { %v779_v47 = vmul.f32 %v3417_v0, %v4255_v50  ;;  %v3419_v45 = vpop.eup %3418  ;;  %v5836_v50 = vld [vmem:[#allocation13_spill] sm:$0xff] }
 0x213   :  { %v5848_v0 = vld [vmem:[#allocation25_spill] sm:$0xff] }
 0x214   :  { %v4357_v4 = vadd.f32 %v780_v1, %v779_v47  ;;  %v5837_v1 = vld [vmem:[#allocation14_spill] sm:$0xff]  ;;  %v5850_v47 = vld [vmem:[#allocation27_spill] sm:$0xff] }
 0x216   :  { %3420 = vtanh.f32 %v4357_v4 }
 0x223   :  { %v3421_v59 = vpop.eup %3420 }
 0x224   :  { %v783_v62 = vmul.f32 %v3421_v59, %v3419_v45  ;;  %v5851_v45 = vld [vmem:[#allocation28_spill] sm:$0xff]  ;;  %v5852_v59 = vld [vmem:[#allocation29_spill] sm:$0xff] }
 0x226   :  { %853 = vmatmul.mubr.f32.vlgmr.msra.gmra.mxu0 %v783_v62  ;;  %924 = vmatmul.mubr.f32.vlgmr.msra.gmra.mxu1 %v783_v62  ;;  %v5853_v62 = vld [vmem:[#allocation30_spill] sm:$0xff] }
 0x227   :  { %963 = vmatpush1.msra.mxu0 %v3936_v5  ;;  %1034 = vmatpush1.msra.mxu1 %v3940_v6 }
 0x228   :  { %964 = vmatprep.subr.mxu0 %v3942_v7  ;;  %1035 = vmatprep.subr.mxu1 %v3944_v8 }
 0x229   :  { %965 = vmatpush1.msra.mxu0 %v3948_v9  ;;  %1036 = vmatpush1.msra.mxu1 %v3950_v10 }
 0x22a   :  { %966 = vmatprep.subr.mxu0 %v3952_v11  ;;  %1037 = vmatprep.subr.mxu1 %v3956_v12 }
 0x22b   :  { %967 = vmatpush1.msra.mxu0 %v3958_v13  ;;  %1038 = vmatpush1.msra.mxu1 %v3960_v14 }
 0x22c   :  { %968 = vmatprep.subr.mxu0 %v3964_v15  ;;  %1039 = vmatprep.subr.mxu1 %v3966_v16 }
 0x22d   :  { %969 = vmatpush1.msra.mxu0 %v3970_v17  ;;  %1040 = vmatpush1.msra.mxu1 %v3972_v18 }
 0x22e   :  { %970 = vmatprep.subr.mxu0 %v3976_v19  ;;  %1041 = vmatprep.subr.mxu1 %v3978_v20 }
 0x22f   :  { %971 = vmatpush1.msra.mxu0 %v3982_v21  ;;  %1042 = vmatpush1.msra.mxu1 %v3984_v22 }
 0x230   :  { %972 = vmatprep.subr.mxu0 %v3988_v23  ;;  %1043 = vmatprep.subr.mxu1 %v3990_v24 }
 0x231   :  { %973 = vmatpush1.msra.mxu0 %v3994_v25  ;;  %1044 = vmatpush1.msra.mxu1 %v3996_v26 }
 0x232   :  { %974 = vmatprep.subr.mxu0 %v4000_v27  ;;  %1045 = vmatprep.subr.mxu1 %v4002_v28 }
 0x233   :  { %975 = vmatpush1.msra.mxu0 %v4006_v29  ;;  %1046 = vmatpush1.msra.mxu1 %v4008_v30 }
 0x234   :  { %976 = vmatprep.subr.mxu0 %v4012_v31  ;;  %1047 = vmatprep.subr.mxu1 %v4014_v32 }
 0x235   :  { %977 = vmatpush1.msra.mxu0 %v4018_v33  ;;  %1048 = vmatpush1.msra.mxu1 %v4020_v34 }
 0x236   :  { %978 = vmatprep.subr.mxu0 %v4024_v35  ;;  %1049 = vmatprep.subr.mxu1 %v4026_v36 }
 0x237   :  { %979 = vmatpush1.msra.mxu0 %v4030_v37  ;;  %1050 = vmatpush1.msra.mxu1 %v4032_v38 }
 0x238   :  { %980 = vmatprep.subr.mxu0 %v4036_v39  ;;  %1051 = vmatprep.subr.mxu1 %v4038_v40 }
 0x239   :  { %981 = vmatpush1.msra.mxu0 %v4042_v41  ;;  %1052 = vmatpush1.msra.mxu1 %v4044_v42 }
 0x23a   :  { %982 = vmatprep.subr.mxu0 %v4048_v43  ;;  %1053 = vmatprep.subr.mxu1 %v4050_v44 }
 0x23b   :  { %983 = vmatpush1.msra.mxu0 %v5835_v58  ;;  %1054 = vmatpush1.msra.mxu1 %v5836_v50 }
 0x23c   :  { %984 = vmatprep.subr.mxu0 %v5837_v1  ;;  %1055 = vmatprep.subr.mxu1 %v5838_v48 }
 0x23d   :  { %985 = vmatpush1.msra.mxu0 %v5839_v2  ;;  %1056 = vmatpush1.msra.mxu1 %v5840_v51 }
 0x23e   :  { %986 = vmatprep.subr.mxu0 %v5841_v61  ;;  %1057 = vmatprep.subr.mxu1 %v5842_v3 }
 0x23f   :  { %987 = vmatpush1.msra.mxu0 %v5843_v63  ;;  %1058 = vmatpush1.msra.mxu1 %v5844_v55  ;;  %v5854_v63 = vld [vmem:[#allocation31_spill] sm:$0xff]  ;;  %v5855_v55 = vld [vmem:[#allocation32_spill] sm:$0xff] }
 0x240   :  { %988 = vmatprep.subr.mxu0 %v5845_v52  ;;  %1059 = vmatprep.subr.mxu1 %v5846_v49  ;;  %v5856_v52 = vmov 0.0   ;;  %v5857_v49 = vld [vmem:[#allocation33_spill] sm:$0xff] }
 0x241   :  { %989 = vmatpush1.msra.mxu0 %v5847_v57  ;;  %1060 = vmatpush1.msra.mxu1 %v5848_v0  ;;  %v5858_v0 = vld [vmem:[#allocation10_spill] sm:$0xff] }
 0x242   :  { %990 = vmatprep.subr.mxu0 %v5849_v53  ;;  %1061 = vmatprep.subr.mxu1 %v5850_v47  ;;  %v5859_v53 = vld [vmem:[#allocation11_spill] sm:$0xff]  ;;  %v70_v47 = vpop.permute.xlu1 %69 }
 0x243   :  { %991 = vmatpush1.msra.mxu0 %v5851_v45  ;;  %1062 = vmatpush1.msra.mxu1 %v5852_v59  ;;  %v5860_v45 = vld [vmem:[#allocation35_spill] sm:$0xff]  ;;  %v5861_v59 = vld [vmem:[#allocation36_spill] sm:$0xff] }
 0x244   :  { %992 = vmatprep.subr.mxu0 %v5853_v62  ;;  %1063 = vmatprep.subr.mxu1 %v5854_v63  ;;  %v166_v57 = vmul.f32 %v5860_v45, %v70_v47  ;;  %v167_v3 = vmul.f32 %v5861_v59, %v70_v47  ;;  %v5862_v63 = vld [vmem:[#allocation37_spill] sm:$0xff]  ;;  %v168_v59 = vmul.f32 %v4248_v46, %v70_v47 }
 0x245   :  { %993 = vmatpush1.msra.mxu0 %v5855_v55  ;;  %1026 = vmatprep.mubr.f32.mxu0 %v5856_v52 }
 0x246   :  { %1064 = vmatpush1.msra.mxu1 %v5857_v49  ;;  %1097 = vmatprep.mubr.f32.mxu1 %v5856_v52  ;;  %v252_v62 = vadd.f32 %v4234_v60, %v166_v57  ;;  %v253_v61 = vadd.f32 %v5862_v63, %v167_v3  ;;  %v169_v52 = vmul.f32 %v5833_v54, %v70_v47 }
 0x247   :  { %1136 = vmatprep.subr.mxu0 %v5858_v0  ;;  %1207 = vmatprep.subr.mxu1 %v5859_v53  ;;  %v5863_v53 = vld [vmem:[#allocation39_spill] sm:$0xff]  ;;  %v254_v57 = vadd.f32 %v4252_v56, %v168_v59 }
 0x248   :  { %v255_v50 = vadd.f32 %v5863_v53, %v169_v52 }
 0x2e6   :  { %v854_v55 = vpop.f32.mrf.mxu0  ;;  %v925_v0 = vpop.f32.mrf.mxu1 }
 0x2e7   :  { %v930_v51 = vadd.f32 %v854_v55, %v252_v62  ;;  %v932_v55 = vadd.f32 %v925_v0, %v254_v57  ;;  %v5892_v0 = vld [vmem:[#allocation39_spill] sm:$0xff] }
 0x2e8   :  { %v856_v2 = vpop.f32.mrf.mxu0  ;;  %v927_v45 = vpop.f32.mrf.mxu1 }
 0x2e9   :  { %v3338_v48 = vmul.f32 -1.442695, %v930_v51  ;;  %v931_v49 = vadd.f32 %v856_v2, %v253_v61  ;;  %v933_v58 = vadd.f32 %v927_v45, %v255_v50 }
 0x2eb   :  { %3422 = vpow2.f32 %v3338_v48  ;;  %v3339_v1 = vmul.f32 -1.442695, %v931_v49  ;;  %v3340_v3 = vmul.f32 -1.442695, %v933_v58 }
 0x2ed   :  { %3424 = vpow2.f32 %v3339_v1 }
 0x2ee   :  { %3426 = vpow2.f32 %v3340_v3 }
 0x2f8   :  { %v3423_v63 = vpop.eup %3422 }
 0x2f9   :  { %v937_v62 = vadd.f32 1.0, %v3423_v63 }
 0x2fa   :  { %v3425_v51 = vpop.eup %3424 }
 0x2fb   :  { %3428 = vrcp.f32 %v937_v62  ;;  %v943_v2 = vadd.f32 1.0, %v3425_v51  ;;  %v3427_v48 = vpop.eup %3426 }
 0x2fc   :  { %3430 = vtanh.f32 %v932_v55  ;;  %v950_v49 = vadd.f32 1.0, %v3427_v48 }
 0x2fd   :  { %3432 = vrcp.f32 %v943_v2 }
 0x2fe   :  { %3434 = vrcp.f32 %v950_v49 }
 0x308   :  { %v3429_v1 = vpop.eup %3428 }
 0x309   :  { %v3431_v61 = vpop.eup %3430 }
 0x30a   :  { %v3433_v52 = vpop.eup %3432  ;;  %v954_v53 = vmul.f32 %v3431_v61, %v3429_v1 }
 0x30b   :  { %v953_v50 = vmul.f32 %v3433_v52, %v4357_v4  ;;  %v3435_v58 = vpop.eup %3434 }
 0x30d   :  { %v4435_v47 = vadd.f32 %v954_v53, %v953_v50 }
 0x30f   :  { %3436 = vtanh.f32 %v4435_v47 }
 0x31c   :  { %v3437_v63 = vpop.eup %3436 }
 0x31d   :  { %v957_v45 = vmul.f32 %v3437_v63, %v3435_v58 }
 0x31f   :  { %1027 = vmatmul.mubr.f32.vlgmr.msra.gmra.mxu0 %v957_v45  ;;  %1098 = vmatmul.mubr.f32.vlgmr.msra.gmra.mxu1 %v957_v45 }
 0x320   :  { %1137 = vmatpush1.msra.mxu0 %v3936_v5  ;;  %1208 = vmatpush1.msra.mxu1 %v3940_v6  ;;  %v5864_v5 = vld [vmem:[#allocation12_spill] sm:$0xff]  ;;  %v5865_v6 = vld [vmem:[#allocation13_spill] sm:$0xff] }
 0x321   :  { %1138 = vmatprep.subr.mxu0 %v3942_v7  ;;  %1209 = vmatprep.subr.mxu1 %v3944_v8  ;;  %v5866_v7 = vld [vmem:[#allocation14_spill] sm:$0xff]  ;;  %v5867_v8 = vld [vmem:[#allocation15_spill] sm:$0xff] }
 0x322   :  { %1139 = vmatpush1.msra.mxu0 %v3948_v9  ;;  %1210 = vmatpush1.msra.mxu1 %v3950_v10  ;;  %v5868_v9 = vld [vmem:[#allocation16_spill] sm:$0xff]  ;;  %v5869_v10 = vld [vmem:[#allocation17_spill] sm:$0xff] }
 0x323   :  { %1140 = vmatprep.subr.mxu0 %v3952_v11  ;;  %1211 = vmatprep.subr.mxu1 %v3956_v12  ;;  %v5870_v11 = vld [vmem:[#allocation18_spill] sm:$0xff]  ;;  %v5871_v12 = vld [vmem:[#allocation19_spill] sm:$0xff] }
 0x324   :  { %1141 = vmatpush1.msra.mxu0 %v3958_v13  ;;  %1212 = vmatpush1.msra.mxu1 %v3960_v14  ;;  %v5872_v13 = vld [vmem:[#allocation20_spill] sm:$0xff]  ;;  %v5873_v14 = vld [vmem:[#allocation21_spill] sm:$0xff] }
 0x325   :  { %1142 = vmatprep.subr.mxu0 %v3964_v15  ;;  %1213 = vmatprep.subr.mxu1 %v3966_v16  ;;  %v5874_v15 = vld [vmem:[#allocation22_spill] sm:$0xff]  ;;  %v5875_v16 = vld [vmem:[#allocation23_spill] sm:$0xff] }
 0x326   :  { %1143 = vmatpush1.msra.mxu0 %v3970_v17  ;;  %1214 = vmatpush1.msra.mxu1 %v3972_v18  ;;  %v5876_v17 = vld [vmem:[#allocation24_spill] sm:$0xff]  ;;  %v5877_v18 = vld [vmem:[#allocation25_spill] sm:$0xff] }
 0x327   :  { %1144 = vmatprep.subr.mxu0 %v3976_v19  ;;  %1215 = vmatprep.subr.mxu1 %v3978_v20  ;;  %v5878_v19 = vld [vmem:[#allocation26_spill] sm:$0xff]  ;;  %v5879_v20 = vld [vmem:[#allocation27_spill] sm:$0xff] }
 0x328   :  { %1145 = vmatpush1.msra.mxu0 %v3982_v21  ;;  %1216 = vmatpush1.msra.mxu1 %v3984_v22  ;;  %v5880_v21 = vld [vmem:[#allocation28_spill] sm:$0xff]  ;;  %v5881_v22 = vld [vmem:[#allocation29_spill] sm:$0xff] }
 0x329   :  { %1146 = vmatprep.subr.mxu0 %v3988_v23  ;;  %1217 = vmatprep.subr.mxu1 %v3990_v24  ;;  %v5882_v23 = vld [vmem:[#allocation30_spill] sm:$0xff]  ;;  %v5883_v24 = vld [vmem:[#allocation31_spill] sm:$0xff] }
 0x32a   :  { %1147 = vmatpush1.msra.mxu0 %v3994_v25  ;;  %1218 = vmatpush1.msra.mxu1 %v3996_v26  ;;  %v5884_v25 = vld [vmem:[#allocation32_spill] sm:$0xff]  ;;  %v5885_v26 = vmov 0.0  }
 0x32b   :  { %1148 = vmatprep.subr.mxu0 %v4000_v27  ;;  %1219 = vmatprep.subr.mxu1 %v4002_v28  ;;  %v5886_v27 = vld [vmem:[#allocation33_spill] sm:$0xff]  ;;  %v4502_v28 = vld [vmem:[#allocation4 + $0x1e8] sm:$0xff] }
 0x32c   :  { %1149 = vmatpush1.msra.mxu0 %v4006_v29  ;;  %1220 = vmatpush1.msra.mxu1 %v4008_v30  ;;  %5887 = vst [vmem:[#allocation38_spill] sm:$0xff] %v4502_v28  ;;  %v4505_v29 = vld [vmem:[#allocation4 + $0x1f8] sm:$0xff]  ;;  %v75_v30 = vpop.permute.xlu1 %74 }
 0x32d   :  { %1150 = vmatprep.subr.mxu0 %v4012_v31  ;;  %1221 = vmatprep.subr.mxu1 %v4014_v32  ;;  %5888 = vst [vmem:[#allocation10_spill] sm:$0xff] %v4505_v29  ;;  %v5889_v31 = vld [vmem:[#allocation35_spill] sm:$0xff]  ;;  %v173_v4 = vmul.f32 %v5833_v54, %v75_v30  ;;  %v172_v57 = vmul.f32 %v4248_v46, %v75_v30 }
 0x32e   :  { %1151 = vmatpush1.msra.mxu0 %v4018_v33  ;;  %1222 = vmatpush1.msra.mxu1 %v4020_v34  ;;  %v170_v32 = vmul.f32 %v5889_v31, %v75_v30  ;;  %v5890_v33 = vld [vmem:[#allocation36_spill] sm:$0xff] }
 0x32f   :  { %1152 = vmatprep.subr.mxu0 %v4024_v35  ;;  %1223 = vmatprep.subr.mxu1 %v4026_v36  ;;  %v171_v34 = vmul.f32 %v5890_v33, %v75_v30  ;;  %v259_v53 = vadd.f32 %v5892_v0, %v173_v4  ;;  %v258_v55 = vadd.f32 %v4252_v56, %v172_v57  ;;  %v4574_v30 = vld [vmem:[#allocation4 + $0x148] sm:$0xff]  ;;  %v4619_v57 = vld [vmem:[#allocation4 + $0xf0] sm:$0xff] }
 0x330   :  { %1153 = vmatpush1.msra.mxu0 %v4030_v37  ;;  %1224 = vmatpush1.msra.mxu1 %v4032_v38  ;;  %v256_v35 = vadd.f32 %v4234_v60, %v170_v32  ;;  %v5891_v38 = vld [vmem:[#allocation37_spill] sm:$0xff]  ;;  %v4577_v32 = vld [vmem:[#allocation4 + $0x158] sm:$0xff]  ;;  %v4610_v4 = vld [vmem:[#allocation4 + $0xe8] sm:$0xff] }
 0x331   :  { %1154 = vmatprep.subr.mxu0 %v4036_v39  ;;  %1225 = vmatprep.subr.mxu1 %v4038_v40  ;;  %v257_v39 = vadd.f32 %v5891_v38, %v171_v34  ;;  %v4580_v34 = vld [vmem:[#allocation4 + $0x140] sm:$0xff] }
 0x332   :  { %1155 = vmatpush1.msra.mxu0 %v4042_v41  ;;  %1226 = vmatpush1.msra.mxu1 %v4044_v42 }
 0x333   :  { %1156 = vmatprep.subr.mxu0 %v4048_v43  ;;  %1227 = vmatprep.subr.mxu1 %v4050_v44 }
 0x334   :  { %1157 = vmatpush1.msra.mxu0 %v5864_v5  ;;  %1228 = vmatpush1.msra.mxu1 %v5865_v6 }
 0x335   :  { %1158 = vmatprep.subr.mxu0 %v5866_v7  ;;  %1229 = vmatprep.subr.mxu1 %v5867_v8 }
 0x336   :  { %1159 = vmatpush1.msra.mxu0 %v5868_v9  ;;  %1230 = vmatpush1.msra.mxu1 %v5869_v10  ;;  %v4520_v10 = vld [vmem:[#allocation4 + $0x1e0] sm:$0xff] }
 0x337   :  { %1160 = vmatprep.subr.mxu0 %v5870_v11  ;;  %1231 = vmatprep.subr.mxu1 %v5871_v12  ;;  %v4523_v11 = vld [vmem:[#allocation4 + $0x1f0] sm:$0xff]  ;;  %v4526_v12 = vld [vmem:[#allocation4 + $0x1c8] sm:$0xff] }
 0x338   :  { %1161 = vmatpush1.msra.mxu0 %v5872_v13  ;;  %1232 = vmatpush1.msra.mxu1 %v5873_v14  ;;  %v4532_v13 = vld [vmem:[#allocation4 + $0x1c0] sm:$0xff]  ;;  %v4535_v14 = vld [vmem:[#allocation4 + $0x1d0] sm:$0xff] }
 0x339   :  { %1162 = vmatprep.subr.mxu0 %v5874_v15  ;;  %1233 = vmatprep.subr.mxu1 %v5875_v16  ;;  %v4538_v15 = vld [vmem:[#allocation4 + $0x1a8] sm:$0xff]  ;;  %v4541_v16 = vld [vmem:[#allocation4 + $0x1b8] sm:$0xff] }
 0x33a   :  { %1163 = vmatpush1.msra.mxu0 %v5876_v17  ;;  %1234 = vmatpush1.msra.mxu1 %v5877_v18  ;;  %v4544_v17 = vld [vmem:[#allocation4 + $0x1a0] sm:$0xff]  ;;  %v4547_v18 = vld [vmem:[#allocation4 + $0x1b0] sm:$0xff] }
 0x33b   :  { %1164 = vmatprep.subr.mxu0 %v5878_v19  ;;  %1235 = vmatprep.subr.mxu1 %v5879_v20  ;;  %v4550_v19 = vld [vmem:[#allocation4 + $0x188] sm:$0xff]  ;;  %v4553_v20 = vld [vmem:[#allocation4 + $0x198] sm:$0xff] }
 0x33c   :  { %1165 = vmatpush1.msra.mxu0 %v5880_v21  ;;  %1236 = vmatpush1.msra.mxu1 %v5881_v22  ;;  %v4556_v21 = vld [vmem:[#allocation4 + $0x180] sm:$0xff]  ;;  %v4559_v22 = vld [vmem:[#allocation4 + $0x190] sm:$0xff] }
 0x33d   :  { %1166 = vmatprep.subr.mxu0 %v5882_v23  ;;  %1237 = vmatprep.subr.mxu1 %v5883_v24  ;;  %v4562_v23 = vld [vmem:[#allocation4 + $0x168] sm:$0xff]  ;;  %v4565_v24 = vld [vmem:[#allocation4 + $0x178] sm:$0xff] }
 0x33e   :  { %1167 = vmatpush1.msra.mxu0 %v5884_v25  ;;  %1200 = vmatprep.mubr.f32.mxu0 %v5885_v26  ;;  %v4568_v25 = vld [vmem:[#allocation4 + $0x160] sm:$0xff] }
 0x33f   :  { %1238 = vmatpush1.msra.mxu1 %v5886_v27  ;;  %1271 = vmatprep.mubr.f32.mxu1 %v5885_v26  ;;  %v4571_v27 = vld [vmem:[#allocation4 + $0x170] sm:$0xff] }
 0x340   :  { %1310 = vmatprep.subr.mxu0 %v4502_v28  ;;  %1381 = vmatprep.subr.mxu1 %v4505_v29 }
 0x3df   :  { %v1028_v36 = vpop.f32.mrf.mxu0  ;;  %v1099_v43 = vpop.f32.mrf.mxu1 }
 0x3e0   :  { %v1104_v37 = vadd.f32 %v1028_v36, %v256_v35  ;;  %v1106_v2 = vadd.f32 %v1099_v43, %v258_v55  ;;  %v4583_v35 = vld [vmem:[#allocation4 + $0x150] sm:$0xff]  ;;  %v4586_v36 = vld [vmem:[#allocation4 + $0x128] sm:$0xff]  ;;  %v4604_v43 = vld [vmem:[#allocation4 + $0x100] sm:$0xff] }
 0x3e1   :  { %v1030_v40 = vpop.f32.mrf.mxu0  ;;  %v1101_v59 = vpop.f32.mrf.mxu1  ;;  %v4625_v55 = vld [vmem:[#allocation4 + $0xd8] sm:$0xff] }
 0x3e2   :  { %v3341_v41 = vmul.f32 -1.442695, %v1104_v37  ;;  %v1105_v42 = vadd.f32 %v1030_v40, %v257_v39  ;;  %v1107_v3 = vadd.f32 %v1101_v59, %v259_v53  ;;  %v4589_v37 = vld [vmem:[#allocation4 + $0x138] sm:$0xff]  ;;  %v4592_v39 = vld [vmem:[#allocation4 + $0x120] sm:$0xff]  ;;  %v4595_v40 = vld [vmem:[#allocation4 + $0x130] sm:$0xff] }
 0x3e3   :  { %v4613_v59 = vld [vmem:[#allocation4 + $0xf8] sm:$0xff]  ;;  %v4616_v53 = vld [vmem:[#allocation4 + $0xe0] sm:$0xff] }
 0x3e4   :  { %3438 = vpow2.f32 %v3341_v41  ;;  %v3342_v44 = vmul.f32 -1.442695, %v1105_v42  ;;  %v3343_v62 = vmul.f32 -1.442695, %v1107_v3  ;;  %v4598_v41 = vld [vmem:[#allocation4 + $0x108] sm:$0xff]  ;;  %v4601_v42 = vld [vmem:[#allocation4 + $0x118] sm:$0xff] }
 0x3e5   :  { %v4622_v3 = vld [vmem:[#allocation4 + $0xc8] sm:$0xff] }
 0x3e6   :  { %3440 = vpow2.f32 %v3342_v44  ;;  %v4607_v44 = vld [vmem:[#allocation4 + $0x110] sm:$0xff] }
 0x3e7   :  { %3442 = vpow2.f32 %v3343_v62  ;;  %v4628_v62 = vld [vmem:[#allocation4 + $0xc0] sm:$0xff] }
 0x3f1   :  { %v3439_v51 = vpop.eup %3438 }
 0x3f2   :  { %v1111_v48 = vadd.f32 1.0, %v3439_v51  ;;  %v4631_v51 = vld [vmem:[#allocation4 + $0xd0] sm:$0xff] }
 0x3f3   :  { %v3441_v1 = vpop.eup %3440 }
 0x3f4   :  { %3444 = vrcp.f32 %v1111_v48  ;;  %v1117_v61 = vadd.f32 1.0, %v3441_v1  ;;  %v3443_v52 = vpop.eup %3442  ;;  %v4637_v48 = vld [vmem:[#allocation4 + $0xb8] sm:$0xff]  ;;  %v4640_v1 = vld [vmem:[#allocation4 + $0xa0] sm:$0xff] }
 0x3f5   :  { %3446 = vtanh.f32 %v1106_v2  ;;  %v1124_v63 = vadd.f32 1.0, %v3443_v52  ;;  %v4634_v2 = vld [vmem:[#allocation4 + $0xa8] sm:$0xff]  ;;  %5893 = vst [vmem:[#allocation11_spill] sm:$0xff] %v4640_v1 }
 0x3f6   :  { %3448 = vrcp.f32 %v1117_v61  ;;  %v4643_v61 = vld [vmem:[#allocation4 + $0xb0] sm:$0xff]  ;;  %v4646_v52 = vld [vmem:[#allocation4 + $0x88] sm:$0xff] }
 0x3f7   :  { %3450 = vrcp.f32 %v1124_v63  ;;  %5894 = vst [vmem:[#allocation12_spill] sm:$0xff] %v4643_v61  ;;  %5895 = vst [vmem:[#allocation13_spill] sm:$0xff] %v4646_v52  ;;  %v4658_v63 = vld [vmem:[#allocation4 + $0x68] sm:$0xff] }
 0x3f8   :  { %5899 = vst [vmem:[#allocation17_spill] sm:$0xff] %v4658_v63 }
 0x401   :  { %v3445_v49 = vpop.eup %3444 }
 0x402   :  { %v3447_v50 = vpop.eup %3446 }
 0x403   :  { %v3449_v58 = vpop.eup %3448  ;;  %v1128_v45 = vmul.f32 %v3447_v50, %v3445_v49  ;;  %v4649_v49 = vld [vmem:[#allocation4 + $0x98] sm:$0xff]  ;;  %v4652_v50 = vld [vmem:[#allocation4 + $0x80] sm:$0xff] }
 0x404   :  { %v1127_v5 = vmul.f32 %v3449_v58, %v4435_v47  ;;  %v3451_v7 = vpop.eup %3450  ;;  %v4529_v47 = vld [vmem:[#allocation4 + $0x1d8] sm:$0xff]  ;;  %5896 = vst [vmem:[#allocation14_spill] sm:$0xff] %v4649_v49  ;;  %5897 = vst [vmem:[#allocation15_spill] sm:$0xff] %v4652_v50  ;;  %v4655_v58 = vld [vmem:[#allocation4 + $0x90] sm:$0xff] }
 0x405   :  { %5898 = vst [vmem:[#allocation16_spill] sm:$0xff] %v4655_v58 }
 0x406   :  { %v4517_v6 = vadd.f32 %v1128_v45, %v1127_v5  ;;  %v4661_v45 = vld [vmem:[#allocation4 + $0x78] sm:$0xff]  ;;  %v4664_v5 = vld [vmem:[#allocation4 + $0x60] sm:$0xff] }
 0x407   :  { %5900 = vst [vmem:[#allocation18_spill] sm:$0xff] %v4661_v45  ;;  %5901 = vst [vmem:[#allocation19_spill] sm:$0xff] %v4664_v5 }
 0x408   :  { %3452 = vtanh.f32 %v4517_v6 }
 0x415   :  { %v3453_v8 = vpop.eup %3452 }
 0x416   :  { %v1131_v9 = vmul.f32 %v3453_v8, %v3451_v7  ;;  %v4667_v7 = vld [vmem:[#allocation4 + $0x70] sm:$0xff]  ;;  %v4670_v8 = vld [vmem:[#allocation4 + $0x48] sm:$0xff] }
 0x417   :  { %5902 = vst [vmem:[#allocation20_spill] sm:$0xff] %v4667_v7  ;;  %5903 = vst [vmem:[#allocation21_spill] sm:$0xff] %v4670_v8 }
 0x418   :  { %1201 = vmatmul.mubr.f32.vlgmr.msra.gmra.mxu0 %v1131_v9  ;;  %1272 = vmatmul.mubr.f32.vlgmr.msra.gmra.mxu1 %v1131_v9  ;;  %v4673_v9 = vld [vmem:[#allocation4 + $0x58] sm:$0xff] }
 0x419   :  { %1311 = vmatpush1.msra.mxu0 %v4520_v10  ;;  %1382 = vmatpush1.msra.mxu1 %v4523_v11  ;;  %5904 = vst [vmem:[#allocation22_spill] sm:$0xff] %v4673_v9 }
 0x41a   :  { %1312 = vmatprep.subr.mxu0 %v4526_v12  ;;  %1383 = vmatprep.subr.mxu1 %v4529_v47 }
 0x41b   :  { %1313 = vmatpush1.msra.mxu0 %v4532_v13  ;;  %1384 = vmatpush1.msra.mxu1 %v4535_v14 }
 0x41c   :  { %1314 = vmatprep.subr.mxu0 %v4538_v15  ;;  %1385 = vmatprep.subr.mxu1 %v4541_v16 }
 0x41d   :  { %1315 = vmatpush1.msra.mxu0 %v4544_v17  ;;  %1386 = vmatpush1.msra.mxu1 %v4547_v18 }
 0x41e   :  { %1316 = vmatprep.subr.mxu0 %v4550_v19  ;;  %1387 = vmatprep.subr.mxu1 %v4553_v20 }
 0x41f   :  { %1317 = vmatpush1.msra.mxu0 %v4556_v21  ;;  %1388 = vmatpush1.msra.mxu1 %v4559_v22 }
 0x420   :  { %1318 = vmatprep.subr.mxu0 %v4562_v23  ;;  %1389 = vmatprep.subr.mxu1 %v4565_v24 }
 0x421   :  { %1319 = vmatpush1.msra.mxu0 %v4568_v25  ;;  %1390 = vmatpush1.msra.mxu1 %v4571_v27 }
 0x422   :  { %1320 = vmatprep.subr.mxu0 %v4574_v30  ;;  %1391 = vmatprep.subr.mxu1 %v4577_v32 }
 0x423   :  { %1321 = vmatpush1.msra.mxu0 %v4580_v34  ;;  %1392 = vmatpush1.msra.mxu1 %v4583_v35 }
 0x424   :  { %1322 = vmatprep.subr.mxu0 %v4586_v36  ;;  %1393 = vmatprep.subr.mxu1 %v4589_v37 }
 0x425   :  { %1323 = vmatpush1.msra.mxu0 %v4592_v39  ;;  %1394 = vmatpush1.msra.mxu1 %v4595_v40 }
 0x426   :  { %1324 = vmatprep.subr.mxu0 %v4598_v41  ;;  %1395 = vmatprep.subr.mxu1 %v4601_v42 }
 0x427   :  { %1325 = vmatpush1.msra.mxu0 %v4604_v43  ;;  %1396 = vmatpush1.msra.mxu1 %v4607_v44 }
 0x428   :  { %1326 = vmatprep.subr.mxu0 %v4610_v4  ;;  %1397 = vmatprep.subr.mxu1 %v4613_v59 }
 0x429   :  { %1327 = vmatpush1.msra.mxu0 %v4616_v53  ;;  %1398 = vmatpush1.msra.mxu1 %v4619_v57 }
 0x42a   :  { %1328 = vmatprep.subr.mxu0 %v4622_v3  ;;  %1399 = vmatprep.subr.mxu1 %v4625_v55 }
 0x42b   :  { %1329 = vmatpush1.msra.mxu0 %v4628_v62  ;;  %1400 = vmatpush1.msra.mxu1 %v4631_v51 }
 0x42c   :  { %1330 = vmatprep.subr.mxu0 %v4634_v2  ;;  %1401 = vmatprep.subr.mxu1 %v4637_v48 }
 0x42d   :  { %1331 = vmatpush1.msra.mxu0 %v4640_v1  ;;  %1402 = vmatpush1.msra.mxu1 %v4643_v61 }
 0x42e   :  { %1332 = vmatprep.subr.mxu0 %v4646_v52  ;;  %1403 = vmatprep.subr.mxu1 %v4649_v49 }
 0x42f   :  { %1333 = vmatpush1.msra.mxu0 %v4652_v50  ;;  %1404 = vmatpush1.msra.mxu1 %v4655_v58 }
 0x430   :  { %1334 = vmatprep.subr.mxu0 %v4658_v63  ;;  %1405 = vmatprep.subr.mxu1 %v4661_v45  ;;  %v4676_v63 = vld [vmem:[#allocation4 + $0x40] sm:$0xff]  ;;  %v4679_v45 = vld [vmem:[#allocation4 + $0x50] sm:$0xff] }
 0x431   :  { %1335 = vmatpush1.msra.mxu0 %v4664_v5  ;;  %1406 = vmatpush1.msra.mxu1 %v4667_v7  ;;  %5905 = vst [vmem:[#allocation23_spill] sm:$0xff] %v4676_v63  ;;  %5906 = vst [vmem:[#allocation24_spill] sm:$0xff] %v4679_v45  ;;  %v4682_v5 = vld [vmem:[#allocation4 + $0x28] sm:$0xff]  ;;  %v4685_v7 = vld [vmem:[#allocation4 + $0x38] sm:$0xff] }
 0x432   :  { %1336 = vmatprep.subr.mxu0 %v4670_v8  ;;  %1407 = vmatprep.subr.mxu1 %v4673_v9  ;;  %5907 = vst [vmem:[#allocation25_spill] sm:$0xff] %v4682_v5  ;;  %5908 = vst [vmem:[#allocation26_spill] sm:$0xff] %v4685_v7  ;;  %v4688_v8 = vld [vmem:[#allocation4 + $0x20] sm:$0xff]  ;;  %v4691_v9 = vld [vmem:[#allocation4 + $0x30] sm:$0xff] }
 0x433   :  { %1337 = vmatpush1.msra.mxu0 %v4676_v63  ;;  %1408 = vmatpush1.msra.mxu1 %v4679_v45  ;;  %5909 = vst [vmem:[#allocation27_spill] sm:$0xff] %v4688_v8  ;;  %5910 = vst [vmem:[#allocation28_spill] sm:$0xff] %v4691_v9  ;;  %v4694_v63 = vld [vmem:[#allocation4 + $0x8] sm:$0xff]  ;;  %v4697_v45 = vld [vmem:[#allocation4 + $0x18] sm:$0xff] }
 0x434   :  { %1338 = vmatprep.subr.mxu0 %v4682_v5  ;;  %1409 = vmatprep.subr.mxu1 %v4685_v7  ;;  %5911 = vst [vmem:[#allocation29_spill] sm:$0xff] %v4694_v63  ;;  %5912 = vst [vmem:[#allocation30_spill] sm:$0xff] %v4697_v45  ;;  %v4700_v5 = vld [vmem:[#allocation4] sm:$0xff]  ;;  %v4704_v7 = vld [vmem:[#allocation4 + $0x10] sm:$0xff] }
 0x435   :  { %1339 = vmatpush1.msra.mxu0 %v4688_v8  ;;  %1410 = vmatpush1.msra.mxu1 %v4691_v9  ;;  %5913 = vst [vmem:[#allocation31_spill] sm:$0xff] %v4700_v5  ;;  %5914 = vst [vmem:[#allocation32_spill] sm:$0xff] %v4704_v7 }
 0x436   :  { %1340 = vmatprep.subr.mxu0 %v4694_v63  ;;  %1411 = vmatprep.subr.mxu1 %v4697_v45  ;;  %v80_v63 = vpop.permute.xlu0 %79 }
 0x437   :  { %1341 = vmatpush1.msra.mxu0 %v4700_v5  ;;  %1374 = vmatprep.mubr.f32.mxu0 %v5885_v26  ;;  %v174_v9 = vmul.f32 %v5889_v31, %v80_v63  ;;  %v175_v45 = vmul.f32 %v5890_v33, %v80_v63  ;;  %v176_v33 = vmul.f32 %v4248_v46, %v80_v63 }
 0x438   :  { %1412 = vmatpush1.msra.mxu1 %v4704_v7  ;;  %1445 = vmatprep.mubr.f32.mxu1 %v5885_v26 }
 0x439   :  { %1484 = vmatprep.subr.mxu0 %v4502_v28  ;;  %1555 = vmatprep.subr.mxu1 %v4505_v29  ;;  %v260_v8 = vadd.f32 %v4234_v60, %v174_v9  ;;  %v261_v50 = vadd.f32 %v5891_v38, %v175_v45  ;;  %v177_v28 = vmul.f32 %v5833_v54, %v80_v63  ;;  %v5918_v63 = vld [vmem:[#allocation14_spill] sm:$0xff] }
 0x43a   :  { %v262_v9 = vadd.f32 %v4252_v56, %v176_v33 }
 0x43b   :  { %v263_v31 = vadd.f32 %v5892_v0, %v177_v28 }
 0x4d8   :  { %v1202_v5 = vpop.f32.mrf.mxu0  ;;  %v1273_v26 = vpop.f32.mrf.mxu1 }
 0x4d9   :  { %v1278_v58 = vadd.f32 %v1202_v5, %v260_v8  ;;  %v1280_v45 = vadd.f32 %v1273_v26, %v262_v9  ;;  %v5919_v9 = vld [vmem:[#allocation15_spill] sm:$0xff] }
 0x4da   :  { %v1204_v49 = vpop.f32.mrf.mxu0  ;;  %v1275_v29 = vpop.f32.mrf.mxu1 }
 0x4db   :  { %v3344_v52 = vmul.f32 -1.442695, %v1278_v58  ;;  %v1279_v7 = vadd.f32 %v1204_v49, %v261_v50  ;;  %v1281_v1 = vadd.f32 %v1275_v29, %v263_v31 }
 0x4dd   :  { %3454 = vpow2.f32 %v3344_v52  ;;  %v3345_v61 = vmul.f32 -1.442695, %v1279_v7  ;;  %v3346_v5 = vmul.f32 -1.442695, %v1281_v1 }
 0x4df   :  { %3456 = vpow2.f32 %v3345_v61 }
 0x4e0   :  { %3458 = vpow2.f32 %v3346_v5  ;;  %v5920_v5 = vld [vmem:[#allocation16_spill] sm:$0xff] }
 0x4ea   :  { %v3455_v8 = vpop.eup %3454 }
 0x4eb   :  { %v1285_v38 = vadd.f32 1.0, %v3455_v8  ;;  %v5921_v8 = vld [vmem:[#allocation17_spill] sm:$0xff] }
 0x4ec   :  { %v3457_v58 = vpop.eup %3456 }
 0x4ed   :  { %3460 = vrcp.f32 %v1285_v38  ;;  %v1291_v52 = vadd.f32 1.0, %v3457_v58  ;;  %v3459_v49 = vpop.eup %3458  ;;  %v5915_v38 = vld [vmem:[#allocation11_spill] sm:$0xff] }
 0x4ee   :  { %3462 = vtanh.f32 %v1280_v45  ;;  %v1298_v28 = vadd.f32 1.0, %v3459_v49  ;;  %v5922_v45 = vld [vmem:[#allocation18_spill] sm:$0xff]  ;;  %v5923_v58 = vld [vmem:[#allocation19_spill] sm:$0xff]  ;;  %v5925_v49 = vld [vmem:[#allocation21_spill] sm:$0xff] }
 0x4ef   :  { %3464 = vrcp.f32 %v1291_v52  ;;  %v5924_v52 = vld [vmem:[#allocation20_spill] sm:$0xff] }
 0x4f0   :  { %3466 = vrcp.f32 %v1298_v28  ;;  %v5929_v28 = vld [vmem:[#allocation25_spill] sm:$0xff] }
 0x4fa   :  { %v3461_v61 = vpop.eup %3460 }
 0x4fb   :  { %v3463_v50 = vpop.eup %3462 }
 0x4fc   :  { %v3465_v7 = vpop.eup %3464  ;;  %v1302_v0 = vmul.f32 %v3463_v50, %v3461_v61  ;;  %v5926_v61 = vld [vmem:[#allocation22_spill] sm:$0xff]  ;;  %v5927_v50 = vld [vmem:[#allocation23_spill] sm:$0xff] }
 0x4fd   :  { %v1301_v29 = vmul.f32 %v3465_v7, %v4517_v6  ;;  %v3467_v26 = vpop.eup %3466  ;;  %v5917_v6 = vld [vmem:[#allocation13_spill] sm:$0xff]  ;;  %v5928_v7 = vld [vmem:[#allocation24_spill] sm:$0xff] }
 0x4ff   :  { %v4719_v31 = vadd.f32 %v1302_v0, %v1301_v29  ;;  %v5916_v0 = vld [vmem:[#allocation12_spill] sm:$0xff]  ;;  %v5930_v29 = vld [vmem:[#allocation26_spill] sm:$0xff] }
 0x501   :  { %3468 = vtanh.f32 %v4719_v31 }
 0x50e   :  { %v3469_v33 = vpop.eup %3468 }
 0x50f   :  { %v1305_v1 = vmul.f32 %v3469_v33, %v3467_v26  ;;  %v5931_v26 = vld [vmem:[#allocation27_spill] sm:$0xff]  ;;  %v5932_v33 = vld [vmem:[#allocation28_spill] sm:$0xff] }
 0x511   :  { %1375 = vmatmul.mubr.f32.vlgmr.msra.gmra.mxu0 %v1305_v1  ;;  %1446 = vmatmul.mubr.f32.vlgmr.msra.gmra.mxu1 %v1305_v1  ;;  %v5933_v1 = vld [vmem:[#allocation29_spill] sm:$0xff] }
 0x512   :  { %1485 = vmatpush1.msra.mxu0 %v4520_v10  ;;  %1556 = vmatpush1.msra.mxu1 %v4523_v11 }
 0x513   :  { %1486 = vmatprep.subr.mxu0 %v4526_v12  ;;  %1557 = vmatprep.subr.mxu1 %v4529_v47 }
 0x514   :  { %1487 = vmatpush1.msra.mxu0 %v4532_v13  ;;  %1558 = vmatpush1.msra.mxu1 %v4535_v14 }
 0x515   :  { %1488 = vmatprep.subr.mxu0 %v4538_v15  ;;  %1559 = vmatprep.subr.mxu1 %v4541_v16 }
 0x516   :  { %1489 = vmatpush1.msra.mxu0 %v4544_v17  ;;  %1560 = vmatpush1.msra.mxu1 %v4547_v18 }
 0x517   :  { %1490 = vmatprep.subr.mxu0 %v4550_v19  ;;  %1561 = vmatprep.subr.mxu1 %v4553_v20 }
 0x518   :  { %1491 = vmatpush1.msra.mxu0 %v4556_v21  ;;  %1562 = vmatpush1.msra.mxu1 %v4559_v22 }
 0x519   :  { %1492 = vmatprep.subr.mxu0 %v4562_v23  ;;  %1563 = vmatprep.subr.mxu1 %v4565_v24 }
 0x51a   :  { %1493 = vmatpush1.msra.mxu0 %v4568_v25  ;;  %1564 = vmatpush1.msra.mxu1 %v4571_v27 }
 0x51b   :  { %1494 = vmatprep.subr.mxu0 %v4574_v30  ;;  %1565 = vmatprep.subr.mxu1 %v4577_v32 }
 0x51c   :  { %1495 = vmatpush1.msra.mxu0 %v4580_v34  ;;  %1566 = vmatpush1.msra.mxu1 %v4583_v35 }
 0x51d   :  { %1496 = vmatprep.subr.mxu0 %v4586_v36  ;;  %1567 = vmatprep.subr.mxu1 %v4589_v37 }
 0x51e   :  { %1497 = vmatpush1.msra.mxu0 %v4592_v39  ;;  %1568 = vmatpush1.msra.mxu1 %v4595_v40 }
 0x51f   :  { %1498 = vmatprep.subr.mxu0 %v4598_v41  ;;  %1569 = vmatprep.subr.mxu1 %v4601_v42 }
 0x520   :  { %1499 = vmatpush1.msra.mxu0 %v4604_v43  ;;  %1570 = vmatpush1.msra.mxu1 %v4607_v44 }
 0x521   :  { %1500 = vmatprep.subr.mxu0 %v4610_v4  ;;  %1571 = vmatprep.subr.mxu1 %v4613_v59 }
 0x522   :  { %1501 = vmatpush1.msra.mxu0 %v4616_v53  ;;  %1572 = vmatpush1.msra.mxu1 %v4619_v57 }
 0x523   :  { %1502 = vmatprep.subr.mxu0 %v4622_v3  ;;  %1573 = vmatprep.subr.mxu1 %v4625_v55 }
 0x524   :  { %1503 = vmatpush1.msra.mxu0 %v4628_v62  ;;  %1574 = vmatpush1.msra.mxu1 %v4631_v51 }
 0x525   :  { %1504 = vmatprep.subr.mxu0 %v4634_v2  ;;  %1575 = vmatprep.subr.mxu1 %v4637_v48 }
 0x526   :  { %1505 = vmatpush1.msra.mxu0 %v5915_v38  ;;  %1576 = vmatpush1.msra.mxu1 %v5916_v0  ;;  %v5943_v0 = vld [vmem:[#allocation39_spill] sm:$0xff] }
 0x527   :  { %1506 = vmatprep.subr.mxu0 %v5917_v6  ;;  %1577 = vmatprep.subr.mxu1 %v5918_v63 }
 0x528   :  { %1507 = vmatpush1.msra.mxu0 %v5919_v9  ;;  %1578 = vmatpush1.msra.mxu1 %v5920_v5 }
 0x529   :  { %1508 = vmatprep.subr.mxu0 %v5921_v8  ;;  %1579 = vmatprep.subr.mxu1 %v5922_v45 }
 0x52a   :  { %1509 = vmatpush1.msra.mxu0 %v5923_v58  ;;  %1580 = vmatpush1.msra.mxu1 %v5924_v52  ;;  %v5934_v58 = vld [vmem:[#allocation30_spill] sm:$0xff]  ;;  %v5935_v52 = vld [vmem:[#allocation31_spill] sm:$0xff] }
 0x52b   :  { %1510 = vmatprep.subr.mxu0 %v5925_v49  ;;  %1581 = vmatprep.subr.mxu1 %v5926_v61  ;;  %v5936_v49 = vmov 0.0   ;;  %v5937_v61 = vld [vmem:[#allocation32_spill] sm:$0xff] }
 0x52c   :  { %1511 = vmatpush1.msra.mxu0 %v5927_v50  ;;  %1582 = vmatpush1.msra.mxu1 %v5928_v7  ;;  %v5938_v7 = vld [vmem:[#allocation38_spill] sm:$0xff] }
 0x52d   :  { %1512 = vmatprep.subr.mxu0 %v5929_v28  ;;  %1583 = vmatprep.subr.mxu1 %v5930_v29  ;;  %v5939_v28 = vld [vmem:[#allocation10_spill] sm:$0xff]  ;;  %v85_v29 = vpop.permute.xlu1 %84 }
 0x52e   :  { %1513 = vmatpush1.msra.mxu0 %v5931_v26  ;;  %1584 = vmatpush1.msra.mxu1 %v5932_v33  ;;  %v5940_v26 = vld [vmem:[#allocation35_spill] sm:$0xff]  ;;  %v5941_v33 = vld [vmem:[#allocation36_spill] sm:$0xff] }
 0x52f   :  { %1514 = vmatprep.subr.mxu0 %v5933_v1  ;;  %1585 = vmatprep.subr.mxu1 %v5934_v58  ;;  %v178_v50 = vmul.f32 %v5940_v26, %v85_v29  ;;  %v179_v45 = vmul.f32 %v5941_v33, %v85_v29  ;;  %v180_v33 = vmul.f32 %v4248_v46, %v85_v29 }
 0x530   :  { %1515 = vmatpush1.msra.mxu0 %v5935_v52  ;;  %1548 = vmatprep.mubr.f32.mxu0 %v5936_v49  ;;  %v5942_v52 = vld [vmem:[#allocation37_spill] sm:$0xff] }
 0x531   :  { %1586 = vmatpush1.msra.mxu1 %v5937_v61  ;;  %1619 = vmatprep.mubr.f32.mxu1 %v5936_v49  ;;  %v264_v1 = vadd.f32 %v4234_v60, %v178_v50  ;;  %v265_v5 = vadd.f32 %v5942_v52, %v179_v45  ;;  %v266_v50 = vadd.f32 %v4252_v56, %v180_v33  ;;  %v5947_v33 = vld [vmem:[#allocation14_spill] sm:$0xff] }
 0x532   :  { %1658 = vmatprep.subr.mxu0 %v5938_v7  ;;  %1729 = vmatprep.subr.mxu1 %v5939_v28  ;;  %v181_v7 = vmul.f32 %v5833_v54, %v85_v29 }
 0x534   :  { %v267_v26 = vadd.f32 %v5943_v0, %v181_v7 }
 0x5d1   :  { %v1376_v58 = vpop.f32.mrf.mxu0  ;;  %v1447_v49 = vpop.f32.mrf.mxu1 }
 0x5d2   :  { %v1452_v8 = vadd.f32 %v1376_v58, %v264_v1  ;;  %v1454_v45 = vadd.f32 %v1447_v49, %v266_v50  ;;  %v5948_v50 = vld [vmem:[#allocation15_spill] sm:$0xff] }
 0x5d3   :  { %v1378_v9 = vpop.f32.mrf.mxu0  ;;  %v1449_v28 = vpop.f32.mrf.mxu1 }
 0x5d4   :  { %v3347_v63 = vmul.f32 -1.442695, %v1452_v8  ;;  %v1453_v61 = vadd.f32 %v1378_v9, %v265_v5  ;;  %v1455_v38 = vadd.f32 %v1449_v28, %v267_v26 }
 0x5d6   :  { %3470 = vpow2.f32 %v3347_v63  ;;  %v3348_v6 = vmul.f32 -1.442695, %v1453_v61  ;;  %v3349_v58 = vmul.f32 -1.442695, %v1455_v38 }
 0x5d8   :  { %3472 = vpow2.f32 %v3348_v6 }
 0x5d9   :  { %3474 = vpow2.f32 %v3349_v58  ;;  %v5949_v58 = vld [vmem:[#allocation16_spill] sm:$0xff] }
 0x5e3   :  { %v3471_v1 = vpop.eup %3470 }
 0x5e4   :  { %v1459_v52 = vadd.f32 1.0, %v3471_v1  ;;  %v5950_v1 = vld [vmem:[#allocation17_spill] sm:$0xff] }
 0x5e5   :  { %v3473_v8 = vpop.eup %3472 }
 0x5e6   :  { %3476 = vrcp.f32 %v1459_v52  ;;  %v1465_v63 = vadd.f32 1.0, %v3473_v8  ;;  %v3475_v9 = vpop.eup %3474  ;;  %v5946_v52 = vld [vmem:[#allocation13_spill] sm:$0xff]  ;;  %v5952_v8 = vld [vmem:[#allocation19_spill] sm:$0xff] }
 0x5e7   :  { %3478 = vtanh.f32 %v1454_v45  ;;  %v1472_v7 = vadd.f32 1.0, %v3475_v9  ;;  %v5951_v45 = vld [vmem:[#allocation18_spill] sm:$0xff]  ;;  %v5954_v9 = vld [vmem:[#allocation21_spill] sm:$0xff] }
 0x5e8   :  { %3480 = vrcp.f32 %v1465_v63  ;;  %v5953_v63 = vld [vmem:[#allocation20_spill] sm:$0xff] }
 0x5e9   :  { %3482 = vrcp.f32 %v1472_v7  ;;  %v5958_v7 = vld [vmem:[#allocation25_spill] sm:$0xff] }
 0x5f3   :  { %v3477_v6 = vpop.eup %3476 }
 0x5f4   :  { %v3479_v5 = vpop.eup %3478 }
 0x5f5   :  { %v3481_v61 = vpop.eup %3480  ;;  %v1476_v0 = vmul.f32 %v3479_v5, %v3477_v6  ;;  %v5955_v6 = vld [vmem:[#allocation22_spill] sm:$0xff]  ;;  %v5956_v5 = vld [vmem:[#allocation23_spill] sm:$0xff] }
 0x5f6   :  { %v1475_v28 = vmul.f32 %v3481_v61, %v4719_v31  ;;  %v3483_v38 = vpop.eup %3482  ;;  %v5944_v31 = vld [vmem:[#allocation11_spill] sm:$0xff]  ;;  %v5957_v61 = vld [vmem:[#allocation24_spill] sm:$0xff] }
 0x5f8   :  { %v4797_v29 = vadd.f32 %v1476_v0, %v1475_v28  ;;  %v5945_v0 = vld [vmem:[#allocation12_spill] sm:$0xff]  ;;  %v5959_v28 = vld [vmem:[#allocation26_spill] sm:$0xff] }
 0x5fa   :  { %3484 = vtanh.f32 %v4797_v29 }
 0x607   :  { %v3485_v49 = vpop.eup %3484 }
 0x608   :  { %v1479_v26 = vmul.f32 %v3485_v49, %v3483_v38  ;;  %v5960_v38 = vld [vmem:[#allocation27_spill] sm:$0xff]  ;;  %v5961_v49 = vld [vmem:[#allocation28_spill] sm:$0xff] }
 0x60a   :  { %1549 = vmatmul.mubr.f32.vlgmr.msra.gmra.mxu0 %v1479_v26  ;;  %1620 = vmatmul.mubr.f32.vlgmr.msra.gmra.mxu1 %v1479_v26  ;;  %v5962_v26 = vld [vmem:[#allocation29_spill] sm:$0xff] }
 0x60b   :  { %1659 = vmatpush1.msra.mxu0 %v4520_v10  ;;  %1730 = vmatpush1.msra.mxu1 %v4523_v11 }
 0x60c   :  { %1660 = vmatprep.subr.mxu0 %v4526_v12  ;;  %1731 = vmatprep.subr.mxu1 %v4529_v47 }
 0x60d   :  { %1661 = vmatpush1.msra.mxu0 %v4532_v13  ;;  %1732 = vmatpush1.msra.mxu1 %v4535_v14 }
 0x60e   :  { %1662 = vmatprep.subr.mxu0 %v4538_v15  ;;  %1733 = vmatprep.subr.mxu1 %v4541_v16 }
 0x60f   :  { %1663 = vmatpush1.msra.mxu0 %v4544_v17  ;;  %1734 = vmatpush1.msra.mxu1 %v4547_v18 }
 0x610   :  { %1664 = vmatprep.subr.mxu0 %v4550_v19  ;;  %1735 = vmatprep.subr.mxu1 %v4553_v20 }
 0x611   :  { %1665 = vmatpush1.msra.mxu0 %v4556_v21  ;;  %1736 = vmatpush1.msra.mxu1 %v4559_v22 }
 0x612   :  { %1666 = vmatprep.subr.mxu0 %v4562_v23  ;;  %1737 = vmatprep.subr.mxu1 %v4565_v24 }
 0x613   :  { %1667 = vmatpush1.msra.mxu0 %v4568_v25  ;;  %1738 = vmatpush1.msra.mxu1 %v4571_v27 }
 0x614   :  { %1668 = vmatprep.subr.mxu0 %v4574_v30  ;;  %1739 = vmatprep.subr.mxu1 %v4577_v32 }
 0x615   :  { %1669 = vmatpush1.msra.mxu0 %v4580_v34  ;;  %1740 = vmatpush1.msra.mxu1 %v4583_v35 }
 0x616   :  { %1670 = vmatprep.subr.mxu0 %v4586_v36  ;;  %1741 = vmatprep.subr.mxu1 %v4589_v37 }
 0x617   :  { %1671 = vmatpush1.msra.mxu0 %v4592_v39  ;;  %1742 = vmatpush1.msra.mxu1 %v4595_v40 }
 0x618   :  { %1672 = vmatprep.subr.mxu0 %v4598_v41  ;;  %1743 = vmatprep.subr.mxu1 %v4601_v42 }
 0x619   :  { %1673 = vmatpush1.msra.mxu0 %v4604_v43  ;;  %1744 = vmatpush1.msra.mxu1 %v4607_v44 }
 0x61a   :  { %1674 = vmatprep.subr.mxu0 %v4610_v4  ;;  %1745 = vmatprep.subr.mxu1 %v4613_v59 }
 0x61b   :  { %1675 = vmatpush1.msra.mxu0 %v4616_v53  ;;  %1746 = vmatpush1.msra.mxu1 %v4619_v57 }
 0x61c   :  { %1676 = vmatprep.subr.mxu0 %v4622_v3  ;;  %1747 = vmatprep.subr.mxu1 %v4625_v55 }
 0x61d   :  { %1677 = vmatpush1.msra.mxu0 %v4628_v62  ;;  %1748 = vmatpush1.msra.mxu1 %v4631_v51 }
 0x61e   :  { %1678 = vmatprep.subr.mxu0 %v4634_v2  ;;  %1749 = vmatprep.subr.mxu1 %v4637_v48 }
 0x61f   :  { %1679 = vmatpush1.msra.mxu0 %v5944_v31  ;;  %1750 = vmatpush1.msra.mxu1 %v5945_v0  ;;  %v5972_v0 = vld [vmem:[#allocation39_spill] sm:$0xff] }
 0x620   :  { %1680 = vmatprep.subr.mxu0 %v5946_v52  ;;  %1751 = vmatprep.subr.mxu1 %v5947_v33 }
 0x621   :  { %1681 = vmatpush1.msra.mxu0 %v5948_v50  ;;  %1752 = vmatpush1.msra.mxu1 %v5949_v58 }
 0x622   :  { %1682 = vmatprep.subr.mxu0 %v5950_v1  ;;  %1753 = vmatprep.subr.mxu1 %v5951_v45 }
 0x623   :  { %1683 = vmatpush1.msra.mxu0 %v5952_v8  ;;  %1754 = vmatpush1.msra.mxu1 %v5953_v63  ;;  %v5963_v8 = vld [vmem:[#allocation30_spill] sm:$0xff]  ;;  %v5964_v63 = vld [vmem:[#allocation31_spill] sm:$0xff] }
 0x624   :  { %1684 = vmatprep.subr.mxu0 %v5954_v9  ;;  %1755 = vmatprep.subr.mxu1 %v5955_v6  ;;  %v5965_v9 = vmov 0.0   ;;  %v5966_v6 = vld [vmem:[#allocation32_spill] sm:$0xff] }
 0x625   :  { %1685 = vmatpush1.msra.mxu0 %v5956_v5  ;;  %1756 = vmatpush1.msra.mxu1 %v5957_v61  ;;  %v5967_v61 = vld [vmem:[#allocation38_spill] sm:$0xff] }
 0x626   :  { %1686 = vmatprep.subr.mxu0 %v5958_v7  ;;  %1757 = vmatprep.subr.mxu1 %v5959_v28  ;;  %v5968_v7 = vld [vmem:[#allocation10_spill] sm:$0xff]  ;;  %v90_v28 = vpop.permute.xlu0 %89 }
 0x627   :  { %1687 = vmatpush1.msra.mxu0 %v5960_v38  ;;  %1758 = vmatpush1.msra.mxu1 %v5961_v49  ;;  %v5969_v38 = vld [vmem:[#allocation35_spill] sm:$0xff]  ;;  %v5970_v49 = vld [vmem:[#allocation36_spill] sm:$0xff] }
 0x628   :  { %1688 = vmatprep.subr.mxu0 %v5962_v26  ;;  %1759 = vmatprep.subr.mxu1 %v5963_v8  ;;  %v182_v5 = vmul.f32 %v5969_v38, %v90_v28  ;;  %v183_v45 = vmul.f32 %v5970_v49, %v90_v28  ;;  %v184_v49 = vmul.f32 %v4248_v46, %v90_v28 }
 0x629   :  { %1689 = vmatpush1.msra.mxu0 %v5964_v63  ;;  %1722 = vmatprep.mubr.f32.mxu0 %v5965_v9  ;;  %v5971_v63 = vld [vmem:[#allocation37_spill] sm:$0xff] }
 0x62a   :  { %1760 = vmatpush1.msra.mxu1 %v5966_v6  ;;  %1793 = vmatprep.mubr.f32.mxu1 %v5965_v9  ;;  %v268_v26 = vadd.f32 %v4234_v60, %v182_v5  ;;  %v269_v58 = vadd.f32 %v5971_v63, %v183_v45  ;;  %v270_v5 = vadd.f32 %v4252_v56, %v184_v49  ;;  %v5976_v49 = vld [vmem:[#allocation14_spill] sm:$0xff] }
 0x62b   :  { %1832 = vmatprep.subr.mxu0 %v5967_v61  ;;  %1903 = vmatprep.subr.mxu1 %v5968_v7  ;;  %v185_v61 = vmul.f32 %v5833_v54, %v90_v28 }
 0x62d   :  { %v271_v38 = vadd.f32 %v5972_v0, %v185_v61 }
 0x6ca   :  { %v1550_v8 = vpop.f32.mrf.mxu0  ;;  %v1621_v9 = vpop.f32.mrf.mxu1 }
 0x6cb   :  { %v1626_v1 = vadd.f32 %v1550_v8, %v268_v26  ;;  %v1628_v45 = vadd.f32 %v1621_v9, %v270_v5  ;;  %v5977_v5 = vld [vmem:[#allocation15_spill] sm:$0xff] }
 0x6cc   :  { %v1552_v50 = vpop.f32.mrf.mxu0  ;;  %v1623_v7 = vpop.f32.mrf.mxu1 }
 0x6cd   :  { %v3350_v33 = vmul.f32 -1.442695, %v1626_v1  ;;  %v1627_v6 = vadd.f32 %v1552_v50, %v269_v58  ;;  %v1629_v31 = vadd.f32 %v1623_v7, %v271_v38 }
 0x6cf   :  { %3486 = vpow2.f32 %v3350_v33  ;;  %v3351_v52 = vmul.f32 -1.442695, %v1627_v6  ;;  %v3352_v8 = vmul.f32 -1.442695, %v1629_v31 }
 0x6d1   :  { %3488 = vpow2.f32 %v3351_v52 }
 0x6d2   :  { %3490 = vpow2.f32 %v3352_v8  ;;  %v5978_v8 = vld [vmem:[#allocation16_spill] sm:$0xff] }
 0x6dc   :  { %v3487_v26 = vpop.eup %3486 }
 0x6dd   :  { %v1633_v63 = vadd.f32 1.0, %v3487_v26  ;;  %v5979_v26 = vld [vmem:[#allocation17_spill] sm:$0xff] }
 0x6de   :  { %v3489_v1 = vpop.eup %3488 }
 0x6df   :  { %3492 = vrcp.f32 %v1633_v63  ;;  %v1639_v33 = vadd.f32 1.0, %v3489_v1  ;;  %v3491_v50 = vpop.eup %3490  ;;  %v5975_v63 = vld [vmem:[#allocation13_spill] sm:$0xff]  ;;  %v5981_v1 = vld [vmem:[#allocation19_spill] sm:$0xff] }
 0x6e0   :  { %3494 = vtanh.f32 %v1628_v45  ;;  %v1646_v61 = vadd.f32 1.0, %v3491_v50  ;;  %v5980_v45 = vld [vmem:[#allocation18_spill] sm:$0xff]  ;;  %v5983_v50 = vld [vmem:[#allocation21_spill] sm:$0xff] }
 0x6e1   :  { %3496 = vrcp.f32 %v1639_v33  ;;  %v5982_v33 = vld [vmem:[#allocation20_spill] sm:$0xff] }
 0x6e2   :  { %3498 = vrcp.f32 %v1646_v61  ;;  %v5987_v61 = vld [vmem:[#allocation25_spill] sm:$0xff] }
 0x6ec   :  { %v3493_v52 = vpop.eup %3492 }
 0x6ed   :  { %v3495_v58 = vpop.eup %3494 }
 0x6ee   :  { %v3497_v6 = vpop.eup %3496  ;;  %v1650_v0 = vmul.f32 %v3495_v58, %v3493_v52  ;;  %v5984_v52 = vld [vmem:[#allocation22_spill] sm:$0xff]  ;;  %v5985_v58 = vld [vmem:[#allocation23_spill] sm:$0xff] }
 0x6ef   :  { %v1649_v7 = vmul.f32 %v3497_v6, %v4797_v29  ;;  %v3499_v31 = vpop.eup %3498  ;;  %v5973_v29 = vld [vmem:[#allocation11_spill] sm:$0xff]  ;;  %v5986_v6 = vld [vmem:[#allocation24_spill] sm:$0xff] }
 0x6f1   :  { %v4875_v28 = vadd.f32 %v1650_v0, %v1649_v7  ;;  %v5974_v0 = vld [vmem:[#allocation12_spill] sm:$0xff]  ;;  %v5988_v7 = vld [vmem:[#allocation26_spill] sm:$0xff] }
 0x6f3   :  { %3500 = vtanh.f32 %v4875_v28 }
 0x700   :  { %v3501_v9 = vpop.eup %3500 }
 0x701   :  { %v1653_v38 = vmul.f32 %v3501_v9, %v3499_v31  ;;  %v5989_v31 = vld [vmem:[#allocation27_spill] sm:$0xff]  ;;  %v5990_v9 = vld [vmem:[#allocation28_spill] sm:$0xff] }
 0x703   :  { %1723 = vmatmul.mubr.f32.vlgmr.msra.gmra.mxu0 %v1653_v38  ;;  %1794 = vmatmul.mubr.f32.vlgmr.msra.gmra.mxu1 %v1653_v38  ;;  %v5991_v38 = vld [vmem:[#allocation29_spill] sm:$0xff] }
 0x704   :  { %1833 = vmatpush1.msra.mxu0 %v4520_v10  ;;  %1904 = vmatpush1.msra.mxu1 %v4523_v11 }
 0x705   :  { %1834 = vmatprep.subr.mxu0 %v4526_v12  ;;  %1905 = vmatprep.subr.mxu1 %v4529_v47 }
 0x706   :  { %1835 = vmatpush1.msra.mxu0 %v4532_v13  ;;  %1906 = vmatpush1.msra.mxu1 %v4535_v14 }
 0x707   :  { %1836 = vmatprep.subr.mxu0 %v4538_v15  ;;  %1907 = vmatprep.subr.mxu1 %v4541_v16 }
 0x708   :  { %1837 = vmatpush1.msra.mxu0 %v4544_v17  ;;  %1908 = vmatpush1.msra.mxu1 %v4547_v18 }
 0x709   :  { %1838 = vmatprep.subr.mxu0 %v4550_v19  ;;  %1909 = vmatprep.subr.mxu1 %v4553_v20 }
 0x70a   :  { %1839 = vmatpush1.msra.mxu0 %v4556_v21  ;;  %1910 = vmatpush1.msra.mxu1 %v4559_v22 }
 0x70b   :  { %1840 = vmatprep.subr.mxu0 %v4562_v23  ;;  %1911 = vmatprep.subr.mxu1 %v4565_v24 }
 0x70c   :  { %1841 = vmatpush1.msra.mxu0 %v4568_v25  ;;  %1912 = vmatpush1.msra.mxu1 %v4571_v27 }
 0x70d   :  { %1842 = vmatprep.subr.mxu0 %v4574_v30  ;;  %1913 = vmatprep.subr.mxu1 %v4577_v32 }
 0x70e   :  { %1843 = vmatpush1.msra.mxu0 %v4580_v34  ;;  %1914 = vmatpush1.msra.mxu1 %v4583_v35 }
 0x70f   :  { %1844 = vmatprep.subr.mxu0 %v4586_v36  ;;  %1915 = vmatprep.subr.mxu1 %v4589_v37 }
 0x710   :  { %1845 = vmatpush1.msra.mxu0 %v4592_v39  ;;  %1916 = vmatpush1.msra.mxu1 %v4595_v40 }
 0x711   :  { %1846 = vmatprep.subr.mxu0 %v4598_v41  ;;  %1917 = vmatprep.subr.mxu1 %v4601_v42 }
 0x712   :  { %1847 = vmatpush1.msra.mxu0 %v4604_v43  ;;  %1918 = vmatpush1.msra.mxu1 %v4607_v44 }
 0x713   :  { %1848 = vmatprep.subr.mxu0 %v4610_v4  ;;  %1919 = vmatprep.subr.mxu1 %v4613_v59 }
 0x714   :  { %1849 = vmatpush1.msra.mxu0 %v4616_v53  ;;  %1920 = vmatpush1.msra.mxu1 %v4619_v57 }
 0x715   :  { %1850 = vmatprep.subr.mxu0 %v4622_v3  ;;  %1921 = vmatprep.subr.mxu1 %v4625_v55 }
 0x716   :  { %1851 = vmatpush1.msra.mxu0 %v4628_v62  ;;  %1922 = vmatpush1.msra.mxu1 %v4631_v51 }
 0x717   :  { %1852 = vmatprep.subr.mxu0 %v4634_v2  ;;  %1923 = vmatprep.subr.mxu1 %v4637_v48 }
 0x718   :  { %1853 = vmatpush1.msra.mxu0 %v5973_v29  ;;  %1924 = vmatpush1.msra.mxu1 %v5974_v0  ;;  %v6001_v0 = vld [vmem:[#allocation39_spill] sm:$0xff] }
 0x719   :  { %1854 = vmatprep.subr.mxu0 %v5975_v63  ;;  %1925 = vmatprep.subr.mxu1 %v5976_v49 }
 0x71a   :  { %1855 = vmatpush1.msra.mxu0 %v5977_v5  ;;  %1926 = vmatpush1.msra.mxu1 %v5978_v8 }
 0x71b   :  { %1856 = vmatprep.subr.mxu0 %v5979_v26  ;;  %1927 = vmatprep.subr.mxu1 %v5980_v45 }
 0x71c   :  { %1857 = vmatpush1.msra.mxu0 %v5981_v1  ;;  %1928 = vmatpush1.msra.mxu1 %v5982_v33  ;;  %v5992_v1 = vld [vmem:[#allocation30_spill] sm:$0xff]  ;;  %v5993_v33 = vld [vmem:[#allocation31_spill] sm:$0xff] }
 0x71d   :  { %1858 = vmatprep.subr.mxu0 %v5983_v50  ;;  %1929 = vmatprep.subr.mxu1 %v5984_v52  ;;  %v5994_v50 = vmov 0.0   ;;  %v5995_v52 = vld [vmem:[#allocation32_spill] sm:$0xff] }
 0x71e   :  { %1859 = vmatpush1.msra.mxu0 %v5985_v58  ;;  %1930 = vmatpush1.msra.mxu1 %v5986_v6  ;;  %v5996_v6 = vld [vmem:[#allocation38_spill] sm:$0xff] }
 0x71f   :  { %1860 = vmatprep.subr.mxu0 %v5987_v61  ;;  %1931 = vmatprep.subr.mxu1 %v5988_v7  ;;  %v5997_v61 = vld [vmem:[#allocation10_spill] sm:$0xff]  ;;  %v95_v7 = vpop.permute.xlu1 %94 }
 0x720   :  { %1861 = vmatpush1.msra.mxu0 %v5989_v31  ;;  %1932 = vmatpush1.msra.mxu1 %v5990_v9  ;;  %v5998_v31 = vld [vmem:[#allocation35_spill] sm:$0xff]  ;;  %v5999_v9 = vld [vmem:[#allocation36_spill] sm:$0xff] }
 0x721   :  { %1862 = vmatprep.subr.mxu0 %v5991_v38  ;;  %1933 = vmatprep.subr.mxu1 %v5992_v1  ;;  %v186_v58 = vmul.f32 %v5998_v31, %v95_v7  ;;  %v187_v45 = vmul.f32 %v5999_v9, %v95_v7  ;;  %v188_v9 = vmul.f32 %v4248_v46, %v95_v7 }
 0x722   :  { %1863 = vmatpush1.msra.mxu0 %v5993_v33  ;;  %1896 = vmatprep.mubr.f32.mxu0 %v5994_v50  ;;  %v6000_v33 = vld [vmem:[#allocation37_spill] sm:$0xff] }
 0x723   :  { %1934 = vmatpush1.msra.mxu1 %v5995_v52  ;;  %1967 = vmatprep.mubr.f32.mxu1 %v5994_v50  ;;  %v272_v38 = vadd.f32 %v4234_v60, %v186_v58  ;;  %v273_v8 = vadd.f32 %v6000_v33, %v187_v45  ;;  %v274_v58 = vadd.f32 %v4252_v56, %v188_v9 }
 0x724   :  { %2006 = vmatprep.subr.mxu0 %v5996_v6  ;;  %2077 = vmatprep.subr.mxu1 %v5997_v61  ;;  %v189_v6 = vmul.f32 %v5833_v54, %v95_v7 }
 0x726   :  { %v275_v31 = vadd.f32 %v6001_v0, %v189_v6 }
 0x7c3   :  { %v1724_v1 = vpop.f32.mrf.mxu0  ;;  %v1795_v50 = vpop.f32.mrf.mxu1 }
 0x7c4   :  { %v1800_v26 = vadd.f32 %v1724_v1, %v272_v38  ;;  %v1802_v45 = vadd.f32 %v1795_v50, %v274_v58 }
 0x7c5   :  { %v1726_v5 = vpop.f32.mrf.mxu0  ;;  %v1797_v61 = vpop.f32.mrf.mxu1 }
 0x7c6   :  { %v3353_v49 = vmul.f32 -1.442695, %v1800_v26  ;;  %v1801_v52 = vadd.f32 %v1726_v5, %v273_v8  ;;  %v1803_v29 = vadd.f32 %v1797_v61, %v275_v31 }
 0x7c8   :  { %3502 = vpow2.f32 %v3353_v49  ;;  %v3354_v63 = vmul.f32 -1.442695, %v1801_v52  ;;  %v3355_v1 = vmul.f32 -1.442695, %v1803_v29 }
 0x7ca   :  { %3504 = vpow2.f32 %v3354_v63 }
 0x7cb   :  { %3506 = vpow2.f32 %v3355_v1 }
 0x7d5   :  { %v3503_v38 = vpop.eup %3502 }
 0x7d6   :  { %v1807_v33 = vadd.f32 1.0, %v3503_v38 }
 0x7d7   :  { %v3505_v26 = vpop.eup %3504 }
 0x7d8   :  { %3508 = vrcp.f32 %v1807_v33  ;;  %v1813_v49 = vadd.f32 1.0, %v3505_v26  ;;  %v3507_v5 = vpop.eup %3506  ;;  %v6030_v33 = vld [vmem:[#allocation39_spill] sm:$0xff] }
 0x7d9   :  { %3510 = vtanh.f32 %v1802_v45  ;;  %v1820_v6 = vadd.f32 1.0, %v3507_v5 }
 0x7da   :  { %3512 = vrcp.f32 %v1813_v49 }
 0x7db   :  { %3514 = vrcp.f32 %v1820_v6 }
 0x7e5   :  { %v3509_v63 = vpop.eup %3508 }
 0x7e6   :  { %v3511_v8 = vpop.eup %3510 }
 0x7e7   :  { %v3513_v52 = vpop.eup %3512  ;;  %v1824_v0 = vmul.f32 %v3511_v8, %v3509_v63 }
 0x7e8   :  { %v1823_v7 = vmul.f32 %v3513_v52, %v4875_v28  ;;  %v3515_v29 = vpop.eup %3514 }
 0x7ea   :  { %v4953_v31 = vadd.f32 %v1824_v0, %v1823_v7 }
 0x7ec   :  { %3516 = vtanh.f32 %v4953_v31 }
 0x7f9   :  { %v3517_v50 = vpop.eup %3516 }
 0x7fa   :  { %v1827_v9 = vmul.f32 %v3517_v50, %v3515_v29 }
 0x7fc   :  { %1897 = vmatmul.mubr.f32.vlgmr.msra.gmra.mxu0 %v1827_v9  ;;  %1968 = vmatmul.mubr.f32.vlgmr.msra.gmra.mxu1 %v1827_v9 }
 0x7fd   :  { %2007 = vmatpush1.msra.mxu0 %v4520_v10  ;;  %2078 = vmatpush1.msra.mxu1 %v4523_v11  ;;  %v6002_v10 = vld [vmem:[#allocation11_spill] sm:$0xff]  ;;  %v6003_v11 = vld [vmem:[#allocation12_spill] sm:$0xff] }
 0x7fe   :  { %2008 = vmatprep.subr.mxu0 %v4526_v12  ;;  %2079 = vmatprep.subr.mxu1 %v4529_v47  ;;  %v6004_v12 = vld [vmem:[#allocation13_spill] sm:$0xff]  ;;  %v6005_v47 = vld [vmem:[#allocation14_spill] sm:$0xff] }
 0x7ff   :  { %2009 = vmatpush1.msra.mxu0 %v4532_v13  ;;  %2080 = vmatpush1.msra.mxu1 %v4535_v14  ;;  %v6006_v13 = vld [vmem:[#allocation15_spill] sm:$0xff]  ;;  %v6007_v14 = vld [vmem:[#allocation16_spill] sm:$0xff] }
 0x800   :  { %2010 = vmatprep.subr.mxu0 %v4538_v15  ;;  %2081 = vmatprep.subr.mxu1 %v4541_v16  ;;  %v6008_v15 = vld [vmem:[#allocation17_spill] sm:$0xff]  ;;  %v6009_v16 = vld [vmem:[#allocation18_spill] sm:$0xff] }
 0x801   :  { %2011 = vmatpush1.msra.mxu0 %v4544_v17  ;;  %2082 = vmatpush1.msra.mxu1 %v4547_v18  ;;  %v6010_v17 = vld [vmem:[#allocation19_spill] sm:$0xff]  ;;  %v6011_v18 = vld [vmem:[#allocation20_spill] sm:$0xff] }
 0x802   :  { %2012 = vmatprep.subr.mxu0 %v4550_v19  ;;  %2083 = vmatprep.subr.mxu1 %v4553_v20  ;;  %v6012_v19 = vld [vmem:[#allocation21_spill] sm:$0xff]  ;;  %v6013_v20 = vld [vmem:[#allocation22_spill] sm:$0xff] }
 0x803   :  { %2013 = vmatpush1.msra.mxu0 %v4556_v21  ;;  %2084 = vmatpush1.msra.mxu1 %v4559_v22  ;;  %v6014_v21 = vld [vmem:[#allocation23_spill] sm:$0xff]  ;;  %v6015_v22 = vld [vmem:[#allocation24_spill] sm:$0xff] }
 0x804   :  { %2014 = vmatprep.subr.mxu0 %v4562_v23  ;;  %2085 = vmatprep.subr.mxu1 %v4565_v24  ;;  %v6016_v23 = vld [vmem:[#allocation25_spill] sm:$0xff]  ;;  %v6017_v24 = vld [vmem:[#allocation26_spill] sm:$0xff] }
 0x805   :  { %2015 = vmatpush1.msra.mxu0 %v4568_v25  ;;  %2086 = vmatpush1.msra.mxu1 %v4571_v27  ;;  %v6018_v25 = vld [vmem:[#allocation27_spill] sm:$0xff]  ;;  %v6019_v27 = vld [vmem:[#allocation28_spill] sm:$0xff] }
 0x806   :  { %2016 = vmatprep.subr.mxu0 %v4574_v30  ;;  %2087 = vmatprep.subr.mxu1 %v4577_v32  ;;  %v6020_v30 = vld [vmem:[#allocation29_spill] sm:$0xff]  ;;  %v6021_v32 = vld [vmem:[#allocation30_spill] sm:$0xff] }
 0x807   :  { %2017 = vmatpush1.msra.mxu0 %v4580_v34  ;;  %2088 = vmatpush1.msra.mxu1 %v4583_v35  ;;  %v6022_v34 = vld [vmem:[#allocation31_spill] sm:$0xff]  ;;  %v6023_v35 = vmov 0.0  }
 0x808   :  { %2018 = vmatprep.subr.mxu0 %v4586_v36  ;;  %2089 = vmatprep.subr.mxu1 %v4589_v37  ;;  %v6024_v36 = vld [vmem:[#allocation32_spill] sm:$0xff]  ;;  %v5020_v37 = vld [vmem:[#allocation4 + $0x1e8] sm:$0xff] }
 0x809   :  { %2019 = vmatpush1.msra.mxu0 %v4592_v39  ;;  %2090 = vmatpush1.msra.mxu1 %v4595_v40  ;;  %6025 = vst [vmem:[#allocation33_spill] sm:$0xff] %v5020_v37  ;;  %v5023_v39 = vld [vmem:[#allocation4 + $0x1f8] sm:$0xff]  ;;  %v100_v40 = vpop.permute.xlu0 %99 }
 0x80a   :  { %2020 = vmatprep.subr.mxu0 %v4598_v41  ;;  %2091 = vmatprep.subr.mxu1 %v4601_v42  ;;  %6026 = vst [vmem:[#allocation38_spill] sm:$0xff] %v5023_v39  ;;  %v6027_v41 = vld [vmem:[#allocation35_spill] sm:$0xff]  ;;  %v193_v28 = vmul.f32 %v5833_v54, %v100_v40  ;;  %v192_v58 = vmul.f32 %v4248_v46, %v100_v40 }
 0x80b   :  { %2021 = vmatpush1.msra.mxu0 %v4604_v43  ;;  %2092 = vmatpush1.msra.mxu1 %v4607_v44  ;;  %v190_v42 = vmul.f32 %v6027_v41, %v100_v40  ;;  %v6028_v43 = vld [vmem:[#allocation36_spill] sm:$0xff] }
 0x80c   :  { %2022 = vmatprep.subr.mxu0 %v4610_v4  ;;  %2093 = vmatprep.subr.mxu1 %v4613_v59  ;;  %v191_v44 = vmul.f32 %v6028_v43, %v100_v40  ;;  %v279_v61 = vadd.f32 %v6030_v33, %v193_v28  ;;  %v278_v38 = vadd.f32 %v4252_v56, %v192_v58  ;;  %v5092_v40 = vld [vmem:[#allocation4 + $0x148] sm:$0xff]  ;;  %v5137_v58 = vld [vmem:[#allocation4 + $0xf0] sm:$0xff] }
 0x80d   :  { %2023 = vmatpush1.msra.mxu0 %v4616_v53  ;;  %2094 = vmatpush1.msra.mxu1 %v4619_v57  ;;  %v276_v4 = vadd.f32 %v4234_v60, %v190_v42  ;;  %v6029_v57 = vld [vmem:[#allocation37_spill] sm:$0xff]  ;;  %v5095_v42 = vld [vmem:[#allocation4 + $0x158] sm:$0xff]  ;;  %v5128_v28 = vld [vmem:[#allocation4 + $0xe8] sm:$0xff] }
 0x80e   :  { %2024 = vmatprep.subr.mxu0 %v4622_v3  ;;  %2095 = vmatprep.subr.mxu1 %v4625_v55  ;;  %v277_v3 = vadd.f32 %v6029_v57, %v191_v44  ;;  %v5098_v44 = vld [vmem:[#allocation4 + $0x140] sm:$0xff] }
 0x80f   :  { %2025 = vmatpush1.msra.mxu0 %v4628_v62  ;;  %2096 = vmatpush1.msra.mxu1 %v4631_v51 }
 0x810   :  { %2026 = vmatprep.subr.mxu0 %v4634_v2  ;;  %2097 = vmatprep.subr.mxu1 %v4637_v48 }
 0x811   :  { %2027 = vmatpush1.msra.mxu0 %v6002_v10  ;;  %2098 = vmatpush1.msra.mxu1 %v6003_v11 }
 0x812   :  { %2028 = vmatprep.subr.mxu0 %v6004_v12  ;;  %2099 = vmatprep.subr.mxu1 %v6005_v47 }
 0x813   :  { %2029 = vmatpush1.msra.mxu0 %v6006_v13  ;;  %2100 = vmatpush1.msra.mxu1 %v6007_v14  ;;  %v5038_v14 = vld [vmem:[#allocation4 + $0x1e0] sm:$0xff] }
 0x814   :  { %2030 = vmatprep.subr.mxu0 %v6008_v15  ;;  %2101 = vmatprep.subr.mxu1 %v6009_v16  ;;  %v5041_v15 = vld [vmem:[#allocation4 + $0x1f0] sm:$0xff]  ;;  %v5044_v16 = vld [vmem:[#allocation4 + $0x1c8] sm:$0xff] }
 0x815   :  { %2031 = vmatpush1.msra.mxu0 %v6010_v17  ;;  %2102 = vmatpush1.msra.mxu1 %v6011_v18  ;;  %v5050_v17 = vld [vmem:[#allocation4 + $0x1c0] sm:$0xff]  ;;  %v5053_v18 = vld [vmem:[#allocation4 + $0x1d0] sm:$0xff] }
 0x816   :  { %2032 = vmatprep.subr.mxu0 %v6012_v19  ;;  %2103 = vmatprep.subr.mxu1 %v6013_v20  ;;  %v5056_v19 = vld [vmem:[#allocation4 + $0x1a8] sm:$0xff]  ;;  %v5059_v20 = vld [vmem:[#allocation4 + $0x1b8] sm:$0xff] }
 0x817   :  { %2033 = vmatpush1.msra.mxu0 %v6014_v21  ;;  %2104 = vmatpush1.msra.mxu1 %v6015_v22  ;;  %v5062_v21 = vld [vmem:[#allocation4 + $0x1a0] sm:$0xff]  ;;  %v5065_v22 = vld [vmem:[#allocation4 + $0x1b0] sm:$0xff] }
 0x818   :  { %2034 = vmatprep.subr.mxu0 %v6016_v23  ;;  %2105 = vmatprep.subr.mxu1 %v6017_v24  ;;  %v5068_v23 = vld [vmem:[#allocation4 + $0x188] sm:$0xff]  ;;  %v5071_v24 = vld [vmem:[#allocation4 + $0x198] sm:$0xff] }
 0x819   :  { %2035 = vmatpush1.msra.mxu0 %v6018_v25  ;;  %2106 = vmatpush1.msra.mxu1 %v6019_v27  ;;  %v5074_v25 = vld [vmem:[#allocation4 + $0x180] sm:$0xff]  ;;  %v5077_v27 = vld [vmem:[#allocation4 + $0x190] sm:$0xff] }
 0x81a   :  { %2036 = vmatprep.subr.mxu0 %v6020_v30  ;;  %2107 = vmatprep.subr.mxu1 %v6021_v32  ;;  %v5080_v30 = vld [vmem:[#allocation4 + $0x168] sm:$0xff]  ;;  %v5083_v32 = vld [vmem:[#allocation4 + $0x178] sm:$0xff] }
 0x81b   :  { %2037 = vmatpush1.msra.mxu0 %v6022_v34  ;;  %2070 = vmatprep.mubr.f32.mxu0 %v6023_v35  ;;  %v5086_v34 = vld [vmem:[#allocation4 + $0x160] sm:$0xff] }
 0x81c   :  { %2108 = vmatpush1.msra.mxu1 %v6024_v36  ;;  %2141 = vmatprep.mubr.f32.mxu1 %v6023_v35  ;;  %v5089_v36 = vld [vmem:[#allocation4 + $0x170] sm:$0xff] }
 0x81d   :  { %2180 = vmatprep.subr.mxu0 %v5020_v37  ;;  %2251 = vmatprep.subr.mxu1 %v5023_v39 }
 0x8bc   :  { %v1898_v59 = vpop.f32.mrf.mxu0  ;;  %v1969_v2 = vpop.f32.mrf.mxu1 }
 0x8bd   :  { %v1974_v53 = vadd.f32 %v1898_v59, %v276_v4  ;;  %v1976_v49 = vadd.f32 %v1969_v2, %v278_v38  ;;  %v5101_v4 = vld [vmem:[#allocation4 + $0x150] sm:$0xff]  ;;  %v5104_v59 = vld [vmem:[#allocation4 + $0x128] sm:$0xff]  ;;  %v5122_v2 = vld [vmem:[#allocation4 + $0x100] sm:$0xff] }
 0x8be   :  { %v1900_v55 = vpop.f32.mrf.mxu0  ;;  %v1971_v0 = vpop.f32.mrf.mxu1  ;;  %v5143_v38 = vld [vmem:[#allocation4 + $0xd8] sm:$0xff] }
 0x8bf   :  { %v3356_v62 = vmul.f32 -1.442695, %v1974_v53  ;;  %v1975_v51 = vadd.f32 %v1900_v55, %v277_v3  ;;  %v1977_v1 = vadd.f32 %v1971_v0, %v279_v61  ;;  %v5107_v53 = vld [vmem:[#allocation4 + $0x138] sm:$0xff]  ;;  %v5110_v3 = vld [vmem:[#allocation4 + $0x120] sm:$0xff]  ;;  %v5113_v55 = vld [vmem:[#allocation4 + $0x130] sm:$0xff] }
 0x8c0   :  { %v5131_v0 = vld [vmem:[#allocation4 + $0xf8] sm:$0xff]  ;;  %v5134_v61 = vld [vmem:[#allocation4 + $0xe0] sm:$0xff] }
 0x8c1   :  { %3518 = vpow2.f32 %v3356_v62  ;;  %v3357_v48 = vmul.f32 -1.442695, %v1975_v51  ;;  %v3358_v45 = vmul.f32 -1.442695, %v1977_v1  ;;  %v5116_v62 = vld [vmem:[#allocation4 + $0x108] sm:$0xff]  ;;  %v5119_v51 = vld [vmem:[#allocation4 + $0x118] sm:$0xff] }
 0x8c2   :  { %v5140_v1 = vld [vmem:[#allocation4 + $0xc8] sm:$0xff] }
 0x8c3   :  { %3520 = vpow2.f32 %v3357_v48  ;;  %v5125_v48 = vld [vmem:[#allocation4 + $0x110] sm:$0xff] }
 0x8c4   :  { %3522 = vpow2.f32 %v3358_v45  ;;  %v5146_v45 = vld [vmem:[#allocation4 + $0xc0] sm:$0xff] }
 0x8ce   :  { %v3519_v26 = vpop.eup %3518 }
 0x8cf   :  { %v1981_v5 = vadd.f32 1.0, %v3519_v26  ;;  %v5149_v26 = vld [vmem:[#allocation4 + $0xd0] sm:$0xff] }
 0x8d0   :  { %v3521_v63 = vpop.eup %3520 }
 0x8d1   :  { %3524 = vrcp.f32 %v1981_v5  ;;  %v1987_v8 = vadd.f32 1.0, %v3521_v63  ;;  %v3523_v52 = vpop.eup %3522  ;;  %v5155_v5 = vld [vmem:[#allocation4 + $0xb8] sm:$0xff]  ;;  %v5158_v63 = vld [vmem:[#allocation4 + $0xa0] sm:$0xff] }
 0x8d2   :  { %3526 = vtanh.f32 %v1976_v49  ;;  %v1994_v50 = vadd.f32 1.0, %v3523_v52  ;;  %v5152_v49 = vld [vmem:[#allocation4 + $0xa8] sm:$0xff]  ;;  %6031 = vst [vmem:[#allocation10_spill] sm:$0xff] %v5155_v5  ;;  %6032 = vst [vmem:[#allocation11_spill] sm:$0xff] %v5158_v63 }
 0x8d3   :  { %3528 = vrcp.f32 %v1987_v8  ;;  %v5161_v8 = vld [vmem:[#allocation4 + $0xb0] sm:$0xff]  ;;  %v5164_v52 = vld [vmem:[#allocation4 + $0x88] sm:$0xff] }
 0x8d4   :  { %3530 = vrcp.f32 %v1994_v50  ;;  %6033 = vst [vmem:[#allocation12_spill] sm:$0xff] %v5161_v8  ;;  %6034 = vst [vmem:[#allocation13_spill] sm:$0xff] %v5164_v52  ;;  %v5176_v50 = vld [vmem:[#allocation4 + $0x68] sm:$0xff] }
 0x8d5   :  { %6038 = vst [vmem:[#allocation17_spill] sm:$0xff] %v5176_v50 }
 0x8de   :  { %v3525_v6 = vpop.eup %3524 }
 0x8df   :  { %v3527_v7 = vpop.eup %3526 }
 0x8e0   :  { %v3529_v29 = vpop.eup %3528  ;;  %v1998_v9 = vmul.f32 %v3527_v7, %v3525_v6  ;;  %v5167_v6 = vld [vmem:[#allocation4 + $0x98] sm:$0xff]  ;;  %v5170_v7 = vld [vmem:[#allocation4 + $0x80] sm:$0xff] }
 0x8e1   :  { %v1997_v10 = vmul.f32 %v3529_v29, %v4953_v31  ;;  %v3531_v12 = vpop.eup %3530  ;;  %v5047_v31 = vld [vmem:[#allocation4 + $0x1d8] sm:$0xff]  ;;  %6035 = vst [vmem:[#allocation14_spill] sm:$0xff] %v5167_v6  ;;  %6036 = vst [vmem:[#allocation15_spill] sm:$0xff] %v5170_v7  ;;  %v5173_v29 = vld [vmem:[#allocation4 + $0x90] sm:$0xff] }
 0x8e2   :  { %6037 = vst [vmem:[#allocation16_spill] sm:$0xff] %v5173_v29 }
 0x8e3   :  { %v5035_v11 = vadd.f32 %v1998_v9, %v1997_v10  ;;  %v5179_v9 = vld [vmem:[#allocation4 + $0x78] sm:$0xff]  ;;  %v5182_v10 = vld [vmem:[#allocation4 + $0x60] sm:$0xff] }
 0x8e4   :  { %6039 = vst [vmem:[#allocation18_spill] sm:$0xff] %v5179_v9  ;;  %6040 = vst [vmem:[#allocation19_spill] sm:$0xff] %v5182_v10 }
 0x8e5   :  { %3532 = vtanh.f32 %v5035_v11 }
 0x8f2   :  { %v3533_v47 = vpop.eup %3532 }
 0x8f3   :  { %v2001_v13 = vmul.f32 %v3533_v47, %v3531_v12  ;;  %v5185_v12 = vld [vmem:[#allocation4 + $0x70] sm:$0xff]  ;;  %v5188_v47 = vld [vmem:[#allocation4 + $0x48] sm:$0xff] }
 0x8f4   :  { %6041 = vst [vmem:[#allocation20_spill] sm:$0xff] %v5185_v12  ;;  %6042 = vst [vmem:[#allocation21_spill] sm:$0xff] %v5188_v47 }
 0x8f5   :  { %2071 = vmatmul.mubr.f32.vlgmr.msra.gmra.mxu0 %v2001_v13  ;;  %2142 = vmatmul.mubr.f32.vlgmr.msra.gmra.mxu1 %v2001_v13  ;;  %v5191_v13 = vld [vmem:[#allocation4 + $0x58] sm:$0xff] }
 0x8f6   :  { %2181 = vmatpush1.msra.mxu0 %v5038_v14  ;;  %2252 = vmatpush1.msra.mxu1 %v5041_v15  ;;  %6043 = vst [vmem:[#allocation22_spill] sm:$0xff] %v5191_v13 }
 0x8f7   :  { %2182 = vmatprep.subr.mxu0 %v5044_v16  ;;  %2253 = vmatprep.subr.mxu1 %v5047_v31 }
 0x8f8   :  { %2183 = vmatpush1.msra.mxu0 %v5050_v17  ;;  %2254 = vmatpush1.msra.mxu1 %v5053_v18 }
 0x8f9   :  { %2184 = vmatprep.subr.mxu0 %v5056_v19  ;;  %2255 = vmatprep.subr.mxu1 %v5059_v20 }
 0x8fa   :  { %2185 = vmatpush1.msra.mxu0 %v5062_v21  ;;  %2256 = vmatpush1.msra.mxu1 %v5065_v22 }
 0x8fb   :  { %2186 = vmatprep.subr.mxu0 %v5068_v23  ;;  %2257 = vmatprep.subr.mxu1 %v5071_v24 }
 0x8fc   :  { %2187 = vmatpush1.msra.mxu0 %v5074_v25  ;;  %2258 = vmatpush1.msra.mxu1 %v5077_v27 }
 0x8fd   :  { %2188 = vmatprep.subr.mxu0 %v5080_v30  ;;  %2259 = vmatprep.subr.mxu1 %v5083_v32 }
 0x8fe   :  { %2189 = vmatpush1.msra.mxu0 %v5086_v34  ;;  %2260 = vmatpush1.msra.mxu1 %v5089_v36 }
 0x8ff   :  { %2190 = vmatprep.subr.mxu0 %v5092_v40  ;;  %2261 = vmatprep.subr.mxu1 %v5095_v42 }
 0x900   :  { %2191 = vmatpush1.msra.mxu0 %v5098_v44  ;;  %2262 = vmatpush1.msra.mxu1 %v5101_v4 }
 0x901   :  { %2192 = vmatprep.subr.mxu0 %v5104_v59  ;;  %2263 = vmatprep.subr.mxu1 %v5107_v53 }
 0x902   :  { %2193 = vmatpush1.msra.mxu0 %v5110_v3  ;;  %2264 = vmatpush1.msra.mxu1 %v5113_v55 }
 0x903   :  { %2194 = vmatprep.subr.mxu0 %v5116_v62  ;;  %2265 = vmatprep.subr.mxu1 %v5119_v51 }
 0x904   :  { %2195 = vmatpush1.msra.mxu0 %v5122_v2  ;;  %2266 = vmatpush1.msra.mxu1 %v5125_v48 }
 0x905   :  { %2196 = vmatprep.subr.mxu0 %v5128_v28  ;;  %2267 = vmatprep.subr.mxu1 %v5131_v0 }
 0x906   :  { %2197 = vmatpush1.msra.mxu0 %v5134_v61  ;;  %2268 = vmatpush1.msra.mxu1 %v5137_v58 }
 0x907   :  { %2198 = vmatprep.subr.mxu0 %v5140_v1  ;;  %2269 = vmatprep.subr.mxu1 %v5143_v38 }
 0x908   :  { %2199 = vmatpush1.msra.mxu0 %v5146_v45  ;;  %2270 = vmatpush1.msra.mxu1 %v5149_v26 }
 0x909   :  { %2200 = vmatprep.subr.mxu0 %v5152_v49  ;;  %2271 = vmatprep.subr.mxu1 %v5155_v5 }
 0x90a   :  { %2201 = vmatpush1.msra.mxu0 %v5158_v63  ;;  %2272 = vmatpush1.msra.mxu1 %v5161_v8 }
 0x90b   :  { %2202 = vmatprep.subr.mxu0 %v5164_v52  ;;  %2273 = vmatprep.subr.mxu1 %v5167_v6 }
 0x90c   :  { %2203 = vmatpush1.msra.mxu0 %v5170_v7  ;;  %2274 = vmatpush1.msra.mxu1 %v5173_v29 }
 0x90d   :  { %2204 = vmatprep.subr.mxu0 %v5176_v50  ;;  %2275 = vmatprep.subr.mxu1 %v5179_v9  ;;  %v5194_v50 = vld [vmem:[#allocation4 + $0x40] sm:$0xff]  ;;  %v5197_v9 = vld [vmem:[#allocation4 + $0x50] sm:$0xff] }
 0x90e   :  { %2205 = vmatpush1.msra.mxu0 %v5182_v10  ;;  %2276 = vmatpush1.msra.mxu1 %v5185_v12  ;;  %6044 = vst [vmem:[#allocation23_spill] sm:$0xff] %v5194_v50  ;;  %6045 = vst [vmem:[#allocation24_spill] sm:$0xff] %v5197_v9  ;;  %v5200_v10 = vld [vmem:[#allocation4 + $0x28] sm:$0xff]  ;;  %v5203_v12 = vld [vmem:[#allocation4 + $0x38] sm:$0xff] }
 0x90f   :  { %2206 = vmatprep.subr.mxu0 %v5188_v47  ;;  %2277 = vmatprep.subr.mxu1 %v5191_v13  ;;  %6046 = vst [vmem:[#allocation25_spill] sm:$0xff] %v5200_v10  ;;  %6047 = vst [vmem:[#allocation26_spill] sm:$0xff] %v5203_v12  ;;  %v5206_v47 = vld [vmem:[#allocation4 + $0x20] sm:$0xff]  ;;  %v5209_v13 = vld [vmem:[#allocation4 + $0x30] sm:$0xff] }
 0x910   :  { %2207 = vmatpush1.msra.mxu0 %v5194_v50  ;;  %2278 = vmatpush1.msra.mxu1 %v5197_v9  ;;  %6048 = vst [vmem:[#allocation27_spill] sm:$0xff] %v5206_v47  ;;  %6049 = vst [vmem:[#allocation28_spill] sm:$0xff] %v5209_v13  ;;  %v5212_v50 = vld [vmem:[#allocation4 + $0x8] sm:$0xff]  ;;  %v5215_v9 = vld [vmem:[#allocation4 + $0x18] sm:$0xff] }
 0x911   :  { %2208 = vmatprep.subr.mxu0 %v5200_v10  ;;  %2279 = vmatprep.subr.mxu1 %v5203_v12  ;;  %6050 = vst [vmem:[#allocation29_spill] sm:$0xff] %v5212_v50  ;;  %6051 = vst [vmem:[#allocation30_spill] sm:$0xff] %v5215_v9  ;;  %v5218_v10 = vld [vmem:[#allocation4] sm:$0xff]  ;;  %v5222_v12 = vld [vmem:[#allocation4 + $0x10] sm:$0xff] }
 0x912   :  { %2209 = vmatpush1.msra.mxu0 %v5206_v47  ;;  %2280 = vmatpush1.msra.mxu1 %v5209_v13  ;;  %6052 = vst [vmem:[#allocation31_spill] sm:$0xff] %v5218_v10  ;;  %6053 = vst [vmem:[#allocation32_spill] sm:$0xff] %v5222_v12 }
 0x913   :  { %2210 = vmatprep.subr.mxu0 %v5212_v50  ;;  %2281 = vmatprep.subr.mxu1 %v5215_v9  ;;  %v105_v50 = vpop.permute.xlu1 %104 }
 0x914   :  { %2211 = vmatpush1.msra.mxu0 %v5218_v10  ;;  %2244 = vmatprep.mubr.f32.mxu0 %v6023_v35  ;;  %v194_v13 = vmul.f32 %v6027_v41, %v105_v50  ;;  %v195_v9 = vmul.f32 %v6028_v43, %v105_v50  ;;  %v196_v43 = vmul.f32 %v4248_v46, %v105_v50 }
 0x915   :  { %2282 = vmatpush1.msra.mxu1 %v5222_v12  ;;  %2315 = vmatprep.mubr.f32.mxu1 %v6023_v35 }
 0x916   :  { %2354 = vmatprep.subr.mxu0 %v5020_v37  ;;  %2425 = vmatprep.subr.mxu1 %v5023_v39  ;;  %v280_v47 = vadd.f32 %v4234_v60, %v194_v13  ;;  %v281_v7 = vadd.f32 %v6029_v57, %v195_v9  ;;  %v197_v37 = vmul.f32 %v5833_v54, %v105_v50 }
 0x917   :  { %v282_v13 = vadd.f32 %v4252_v56, %v196_v43 }
 0x918   :  { %v283_v41 = vadd.f32 %v6030_v33, %v197_v37 }
 0x9b5   :  { %v2072_v10 = vpop.f32.mrf.mxu0  ;;  %v2143_v35 = vpop.f32.mrf.mxu1 }
 0x9b6   :  { %v2148_v29 = vadd.f32 %v2072_v10, %v280_v47  ;;  %v2150_v9 = vadd.f32 %v2143_v35, %v282_v13  ;;  %v6056_v13 = vld [vmem:[#allocation13_spill] sm:$0xff] }
 0x9b7   :  { %v2074_v6 = vpop.f32.mrf.mxu0  ;;  %v2145_v39 = vpop.f32.mrf.mxu1 }
 0x9b8   :  { %v3359_v52 = vmul.f32 -1.442695, %v2148_v29  ;;  %v2149_v12 = vadd.f32 %v2074_v6, %v281_v7  ;;  %v2151_v63 = vadd.f32 %v2145_v39, %v283_v41 }
 0x9ba   :  { %3534 = vpow2.f32 %v3359_v52  ;;  %v3360_v8 = vmul.f32 -1.442695, %v2149_v12  ;;  %v3361_v10 = vmul.f32 -1.442695, %v2151_v63 }
 0x9bc   :  { %3536 = vpow2.f32 %v3360_v8 }
 0x9bd   :  { %3538 = vpow2.f32 %v3361_v10  ;;  %v6057_v10 = vld [vmem:[#allocation14_spill] sm:$0xff] }
 0x9c7   :  { %v3535_v47 = vpop.eup %3534 }
 0x9c8   :  { %v2155_v57 = vadd.f32 1.0, %v3535_v47  ;;  %v6058_v47 = vld [vmem:[#allocation15_spill] sm:$0xff] }
 0x9c9   :  { %v3537_v29 = vpop.eup %3536 }
 0x9ca   :  { %3540 = vrcp.f32 %v2155_v57  ;;  %v2161_v52 = vadd.f32 1.0, %v3537_v29  ;;  %v3539_v6 = vpop.eup %3538  ;;  %v5243_v57 = vld [vmem:[%s5591_s4] ss:$0 sm:$0xff]  ;;  %v6060_v29 = vld [vmem:[#allocation17_spill] sm:$0xff] }
 0x9cb   :  { %3542 = vtanh.f32 %v2150_v9  ;;  %v2168_v37 = vadd.f32 1.0, %v3539_v6  ;;  %v6059_v9 = vld [vmem:[#allocation16_spill] sm:$0xff]  ;;  %v6062_v6 = vld [vmem:[#allocation19_spill] sm:$0xff] }
 0x9cc   :  { %3544 = vrcp.f32 %v2161_v52  ;;  %v6061_v52 = vld [vmem:[#allocation18_spill] sm:$0xff] }
 0x9cd   :  { %3546 = vrcp.f32 %v2168_v37  ;;  %v6066_v37 = vld [vmem:[#allocation23_spill] sm:$0xff] }
 0x9d7   :  { %v3541_v8 = vpop.eup %3540 }
 0x9d8   :  { %v3543_v7 = vpop.eup %3542 }
 0x9d9   :  { %v3545_v12 = vpop.eup %3544  ;;  %v2172_v33 = vmul.f32 %v3543_v7, %v3541_v8  ;;  %v6063_v8 = vld [vmem:[#allocation20_spill] sm:$0xff]  ;;  %v6064_v7 = vld [vmem:[#allocation21_spill] sm:$0xff] }
 0x9da   :  { %v2171_v39 = vmul.f32 %v3545_v12, %v5035_v11  ;;  %v3547_v35 = vpop.eup %3546  ;;  %v6055_v11 = vld [vmem:[#allocation12_spill] sm:$0xff]  ;;  %v6065_v12 = vld [vmem:[#allocation22_spill] sm:$0xff] }
 0x9dc   :  { %v5237_v41 = vadd.f32 %v2172_v33, %v2171_v39  ;;  %v6054_v33 = vld [vmem:[#allocation11_spill] sm:$0xff]  ;;  %v6067_v39 = vld [vmem:[#allocation24_spill] sm:$0xff] }
 0x9de   :  { %3548 = vtanh.f32 %v5237_v41 }
 0x9eb   :  { %v3549_v43 = vpop.eup %3548 }
 0x9ec   :  { %v2175_v63 = vmul.f32 %v3549_v43, %v3547_v35  ;;  %v6068_v35 = vld [vmem:[#allocation25_spill] sm:$0xff]  ;;  %v6069_v43 = vld [vmem:[#allocation26_spill] sm:$0xff] }
 0x9ee   :  { %2245 = vmatmul.mubr.f32.vlgmr.msra.gmra.mxu0 %v2175_v63  ;;  %2316 = vmatmul.mubr.f32.vlgmr.msra.gmra.mxu1 %v2175_v63  ;;  %v3227_v50 = vmul.f32 %v5243_v57, %v2175_v63  ;;  %v6070_v63 = vld [vmem:[#allocation27_spill] sm:$0xff] }
 0x9ef   :  { %2355 = vmatpush1.msra.mxu0 %v5038_v14  ;;  %2426 = vmatpush1.msra.mxu1 %v5041_v15 }
 0x9f0   :  { %3234 = vadd.xlane.f32.xlu0 %v3227_v50  ;;  %2356 = vmatprep.subr.mxu0 %v5044_v16  ;;  %v6071_v50 = vld [vmem:[#allocation28_spill] sm:$0xff] }
 0x9f1   :  { %2427 = vmatprep.subr.mxu1 %v5047_v31  ;;  %2357 = vmatpush1.msra.mxu0 %v5050_v17 }
 0x9f2   :  { %2428 = vmatpush1.msra.mxu1 %v5053_v18  ;;  %2358 = vmatprep.subr.mxu0 %v5056_v19 }
 0x9f3   :  { %2429 = vmatprep.subr.mxu1 %v5059_v20  ;;  %2359 = vmatpush1.msra.mxu0 %v5062_v21 }
 0x9f4   :  { %2430 = vmatpush1.msra.mxu1 %v5065_v22  ;;  %2360 = vmatprep.subr.mxu0 %v5068_v23 }
 0x9f5   :  { %2431 = vmatprep.subr.mxu1 %v5071_v24  ;;  %2361 = vmatpush1.msra.mxu0 %v5074_v25 }
 0x9f6   :  { %2432 = vmatpush1.msra.mxu1 %v5077_v27  ;;  %2362 = vmatprep.subr.mxu0 %v5080_v30 }
 0x9f7   :  { %2433 = vmatprep.subr.mxu1 %v5083_v32  ;;  %2363 = vmatpush1.msra.mxu0 %v5086_v34 }
 0x9f8   :  { %2434 = vmatpush1.msra.mxu1 %v5089_v36  ;;  %2364 = vmatprep.subr.mxu0 %v5092_v40 }
 0x9f9   :  { %2435 = vmatprep.subr.mxu1 %v5095_v42  ;;  %2365 = vmatpush1.msra.mxu0 %v5098_v44 }
 0x9fa   :  { %2436 = vmatpush1.msra.mxu1 %v5101_v4  ;;  %2366 = vmatprep.subr.mxu0 %v5104_v59 }
 0x9fb   :  { %2437 = vmatprep.subr.mxu1 %v5107_v53  ;;  %2367 = vmatpush1.msra.mxu0 %v5110_v3 }
 0x9fc   :  { %2438 = vmatpush1.msra.mxu1 %v5113_v55  ;;  %2368 = vmatprep.subr.mxu0 %v5116_v62 }
 0x9fd   :  { %2439 = vmatprep.subr.mxu1 %v5119_v51  ;;  %2369 = vmatpush1.msra.mxu0 %v5122_v2 }
 0x9fe   :  { %2440 = vmatpush1.msra.mxu1 %v5125_v48  ;;  %2370 = vmatprep.subr.mxu0 %v5128_v28 }
 0x9ff   :  { %2441 = vmatprep.subr.mxu1 %v5131_v0  ;;  %2371 = vmatpush1.msra.mxu0 %v5134_v61 }
 0xa00   :  { %2442 = vmatpush1.msra.mxu1 %v5137_v58  ;;  %2372 = vmatprep.subr.mxu0 %v5140_v1 }
 0xa01   :  { %2443 = vmatprep.subr.mxu1 %v5143_v38  ;;  %2373 = vmatpush1.msra.mxu0 %v5146_v45 }
 0xa02   :  { %2444 = vmatpush1.msra.mxu1 %v5149_v26  ;;  %2374 = vmatprep.subr.mxu0 %v5152_v49 }
 0xa03   :  { %2445 = vmatprep.subr.mxu1 %v5155_v5  ;;  %2375 = vmatpush1.msra.mxu0 %v6054_v33  ;;  %v6082_v33 = vld [vmem:[#allocation39_spill] sm:$0xff] }
 0xa04   :  { %2446 = vmatpush1.msra.mxu1 %v6055_v11  ;;  %2376 = vmatprep.subr.mxu0 %v6056_v13 }
 0xa05   :  { %2447 = vmatprep.subr.mxu1 %v6057_v10  ;;  %2377 = vmatpush1.msra.mxu0 %v6058_v47 }
 0xa06   :  { %2448 = vmatpush1.msra.mxu1 %v6059_v9  ;;  %2378 = vmatprep.subr.mxu0 %v6060_v29 }
 0xa07   :  { %2449 = vmatprep.subr.mxu1 %v6061_v52  ;;  %2379 = vmatpush1.msra.mxu0 %v6062_v6  ;;  %v6072_v52 = vld [vmem:[#allocation29_spill] sm:$0xff]  ;;  %v6073_v6 = vld [vmem:[#allocation30_spill] sm:$0xff] }
 0xa08   :  { %2450 = vmatpush1.msra.mxu1 %v6063_v8  ;;  %2380 = vmatprep.subr.mxu0 %v6064_v7  ;;  %v6074_v8 = vld [vmem:[#allocation31_spill] sm:$0xff]  ;;  %v6075_v7 = vmov 0.0  }
 0xa09   :  { %2451 = vmatprep.subr.mxu1 %v6065_v12  ;;  %2381 = vmatpush1.msra.mxu0 %v6066_v37  ;;  %v6076_v12 = vld [vmem:[#allocation32_spill] sm:$0xff] }
 0xa0a   :  { %2452 = vmatpush1.msra.mxu1 %v6067_v39  ;;  %2382 = vmatprep.subr.mxu0 %v6068_v35  ;;  %v6077_v39 = vld [vmem:[#allocation33_spill] sm:$0xff]  ;;  %v6078_v35 = vld [vmem:[#allocation38_spill] sm:$0xff] }
 0xa0b   :  { %2453 = vmatprep.subr.mxu1 %v6069_v43  ;;  %2383 = vmatpush1.msra.mxu0 %v6070_v63  ;;  %v110_v43 = vpop.permute.xlu0 %109  ;;  %v6079_v63 = vld [vmem:[#allocation35_spill] sm:$0xff] }
 0xa0c   :  { %2454 = vmatpush1.msra.mxu1 %v6071_v50  ;;  %2384 = vmatprep.subr.mxu0 %v6072_v52  ;;  %v198_v37 = vmul.f32 %v6079_v63, %v110_v43  ;;  %v6080_v50 = vld [vmem:[#allocation36_spill] sm:$0xff] }
 0xa0d   :  { %2455 = vmatprep.subr.mxu1 %v6073_v6  ;;  %2385 = vmatpush1.msra.mxu0 %v6074_v8  ;;  %v199_v29 = vmul.f32 %v6080_v50, %v110_v43  ;;  %v6081_v8 = vld [vmem:[#allocation37_spill] sm:$0xff]  ;;  %v200_v50 = vmul.f32 %v4248_v46, %v110_v43 }
 0xa0e   :  { %2418 = vmatprep.mubr.f32.mxu0 %v6075_v7  ;;  %2456 = vmatpush1.msra.mxu1 %v6076_v12  ;;  %v284_v52 = vadd.f32 %v4234_v60, %v198_v37 }
 0xa0f   :  { %2489 = vmatprep.mubr.f32.mxu1 %v6075_v7  ;;  %2528 = vmatprep.subr.mxu0 %v6077_v39  ;;  %v285_v47 = vadd.f32 %v6081_v8, %v199_v29  ;;  %v201_v39 = vmul.f32 %v5833_v54, %v110_v43  ;;  %v286_v37 = vadd.f32 %v4252_v56, %v200_v50  ;;  %v6085_v50 = vld [vmem:[#allocation12_spill] sm:$0xff] }
 0xa10   :  { %2599 = vmatprep.subr.mxu1 %v6078_v35 }
 0xa11   :  { %v287_v63 = vadd.f32 %v6082_v33, %v201_v39 }
 0xaae   :  { %v2246_v6 = vpop.f32.mrf.mxu0  ;;  %v2317_v7 = vpop.f32.mrf.mxu1 }
 0xaaf   :  { %v2322_v9 = vadd.f32 %v2246_v6, %v284_v52  ;;  %v2324_v29 = vadd.f32 %v2317_v7, %v286_v37  ;;  %v6086_v37 = vld [vmem:[#allocation13_spill] sm:$0xff] }
 0xab0   :  { %v2248_v10 = vpop.f32.mrf.mxu0  ;;  %v2319_v35 = vpop.f32.mrf.mxu1 }
 0xab1   :  { %v3362_v13 = vmul.f32 -1.442695, %v2322_v9  ;;  %v2323_v12 = vadd.f32 %v2248_v10, %v285_v47  ;;  %v2325_v5 = vadd.f32 %v2319_v35, %v287_v63 }
 0xab3   :  { %3550 = vpow2.f32 %v3362_v13  ;;  %v3363_v11 = vmul.f32 -1.442695, %v2323_v12  ;;  %v3364_v52 = vmul.f32 -1.442695, %v2325_v5 }
 0xab5   :  { %3552 = vpow2.f32 %v3363_v11 }
 0xab6   :  { %3554 = vpow2.f32 %v3364_v52  ;;  %v6087_v52 = vld [vmem:[#allocation14_spill] sm:$0xff] }
 0xac0   :  { %v3551_v6 = vpop.eup %3550 }
 0xac1   :  { %v2329_v8 = vadd.f32 1.0, %v3551_v6  ;;  %v6088_v6 = vld [vmem:[#allocation15_spill] sm:$0xff] }
 0xac2   :  { %v3553_v9 = vpop.eup %3552 }
 0xac3   :  { %3556 = vrcp.f32 %v2329_v8  ;;  %v2335_v13 = vadd.f32 1.0, %v3553_v9  ;;  %v3555_v10 = vpop.eup %3554  ;;  %v6090_v9 = vld [vmem:[#allocation17_spill] sm:$0xff] }
 0xac4   :  { %3558 = vtanh.f32 %v2324_v29  ;;  %v2342_v39 = vadd.f32 1.0, %v3555_v10  ;;  %v6089_v29 = vld [vmem:[#allocation16_spill] sm:$0xff]  ;;  %v6092_v10 = vld [vmem:[#allocation19_spill] sm:$0xff] }
 0xac5   :  { %3560 = vrcp.f32 %v2335_v13  ;;  %v6091_v13 = vld [vmem:[#allocation18_spill] sm:$0xff] }
 0xac6   :  { %3562 = vrcp.f32 %v2342_v39  ;;  %v6096_v39 = vld [vmem:[#allocation23_spill] sm:$0xff] }
 0xad0   :  { %v3557_v11 = vpop.eup %3556 }
 0xad1   :  { %v3559_v47 = vpop.eup %3558 }
 0xad2   :  { %v3561_v12 = vpop.eup %3560  ;;  %v2346_v33 = vmul.f32 %v3559_v47, %v3557_v11  ;;  %v6093_v11 = vld [vmem:[#allocation20_spill] sm:$0xff]  ;;  %v6094_v47 = vld [vmem:[#allocation21_spill] sm:$0xff] }
 0xad3   :  { %v2345_v35 = vmul.f32 %v3561_v12, %v5237_v41  ;;  %v3563_v5 = vpop.eup %3562  ;;  %v6083_v41 = vld [vmem:[#allocation10_spill] sm:$0xff] }
 0xad4   :  { %v6095_v12 = vld [vmem:[#allocation22_spill] sm:$0xff] }
 0xad5   :  { %v5321_v43 = vadd.f32 %v2346_v33, %v2345_v35  ;;  %v6084_v33 = vld [vmem:[#allocation11_spill] sm:$0xff]  ;;  %v6097_v35 = vld [vmem:[#allocation24_spill] sm:$0xff] }
 0xad7   :  { %3564 = vtanh.f32 %v5321_v43 }
 0xae4   :  { %v3565_v7 = vpop.eup %3564 }
 0xae5   :  { %v2349_v63 = vmul.f32 %v3565_v7, %v3563_v5  ;;  %v6098_v5 = vld [vmem:[#allocation25_spill] sm:$0xff]  ;;  %v6099_v7 = vld [vmem:[#allocation26_spill] sm:$0xff] }
 0xae7   :  { %2419 = vmatmul.mubr.f32.vlgmr.msra.gmra.mxu0 %v2349_v63  ;;  %2490 = vmatmul.mubr.f32.vlgmr.msra.gmra.mxu1 %v2349_v63  ;;  %v3228_v8 = vmul.f32 %v5243_v57, %v2349_v63  ;;  %v6100_v63 = vld [vmem:[#allocation27_spill] sm:$0xff] }
 0xae8   :  { %2529 = vmatpush1.msra.mxu0 %v5038_v14  ;;  %2600 = vmatpush1.msra.mxu1 %v5041_v15 }
 0xae9   :  { %3236 = vadd.xlane.f32.xlu1 %v3228_v8  ;;  %2530 = vmatprep.subr.mxu0 %v5044_v16  ;;  %v6101_v8 = vld [vmem:[#allocation28_spill] sm:$0xff] }
 0xaea   :  { %2601 = vmatprep.subr.mxu1 %v5047_v31  ;;  %2531 = vmatpush1.msra.mxu0 %v5050_v17 }
 0xaeb   :  { %2602 = vmatpush1.msra.mxu1 %v5053_v18  ;;  %2532 = vmatprep.subr.mxu0 %v5056_v19 }
 0xaec   :  { %2603 = vmatprep.subr.mxu1 %v5059_v20  ;;  %2533 = vmatpush1.msra.mxu0 %v5062_v21 }
 0xaed   :  { %2604 = vmatpush1.msra.mxu1 %v5065_v22  ;;  %2534 = vmatprep.subr.mxu0 %v5068_v23 }
 0xaee   :  { %2605 = vmatprep.subr.mxu1 %v5071_v24  ;;  %2535 = vmatpush1.msra.mxu0 %v5074_v25 }
 0xaef   :  { %2606 = vmatpush1.msra.mxu1 %v5077_v27  ;;  %2536 = vmatprep.subr.mxu0 %v5080_v30 }
 0xaf0   :  { %2607 = vmatprep.subr.mxu1 %v5083_v32  ;;  %2537 = vmatpush1.msra.mxu0 %v5086_v34 }
 0xaf1   :  { %2608 = vmatpush1.msra.mxu1 %v5089_v36  ;;  %2538 = vmatprep.subr.mxu0 %v5092_v40 }
 0xaf2   :  { %2609 = vmatprep.subr.mxu1 %v5095_v42  ;;  %2539 = vmatpush1.msra.mxu0 %v5098_v44 }
 0xaf3   :  { %2610 = vmatpush1.msra.mxu1 %v5101_v4  ;;  %2540 = vmatprep.subr.mxu0 %v5104_v59 }
 0xaf4   :  { %2611 = vmatprep.subr.mxu1 %v5107_v53  ;;  %2541 = vmatpush1.msra.mxu0 %v5110_v3 }
 0xaf5   :  { %2612 = vmatpush1.msra.mxu1 %v5113_v55  ;;  %2542 = vmatprep.subr.mxu0 %v5116_v62 }
 0xaf6   :  { %2613 = vmatprep.subr.mxu1 %v5119_v51  ;;  %2543 = vmatpush1.msra.mxu0 %v5122_v2 }
 0xaf7   :  { %2614 = vmatpush1.msra.mxu1 %v5125_v48  ;;  %2544 = vmatprep.subr.mxu0 %v5128_v28 }
 0xaf8   :  { %2615 = vmatprep.subr.mxu1 %v5131_v0  ;;  %2545 = vmatpush1.msra.mxu0 %v5134_v61 }
 0xaf9   :  { %2616 = vmatpush1.msra.mxu1 %v5137_v58  ;;  %2546 = vmatprep.subr.mxu0 %v5140_v1 }
 0xafa   :  { %2617 = vmatprep.subr.mxu1 %v5143_v38  ;;  %2547 = vmatpush1.msra.mxu0 %v5146_v45 }
 0xafb   :  { %2618 = vmatpush1.msra.mxu1 %v5149_v26  ;;  %2548 = vmatprep.subr.mxu0 %v5152_v49 }
 0xafc   :  { %2619 = vmatprep.subr.mxu1 %v6083_v41  ;;  %2549 = vmatpush1.msra.mxu0 %v6084_v33  ;;  %v6112_v33 = vld [vmem:[#allocation39_spill] sm:$0xff] }
 0xafd   :  { %2620 = vmatpush1.msra.mxu1 %v6085_v50  ;;  %2550 = vmatprep.subr.mxu0 %v6086_v37 }
 0xafe   :  { %2621 = vmatprep.subr.mxu1 %v6087_v52  ;;  %2551 = vmatpush1.msra.mxu0 %v6088_v6 }
 0xaff   :  { %2622 = vmatpush1.msra.mxu1 %v6089_v29  ;;  %2552 = vmatprep.subr.mxu0 %v6090_v9 }
 0xb00   :  { %2623 = vmatprep.subr.mxu1 %v6091_v13  ;;  %2553 = vmatpush1.msra.mxu0 %v6092_v10  ;;  %v6102_v13 = vld [vmem:[#allocation29_spill] sm:$0xff]  ;;  %v6103_v10 = vld [vmem:[#allocation30_spill] sm:$0xff] }
 0xb01   :  { %2624 = vmatpush1.msra.mxu1 %v6093_v11  ;;  %2554 = vmatprep.subr.mxu0 %v6094_v47  ;;  %v6104_v11 = vld [vmem:[#allocation31_spill] sm:$0xff]  ;;  %v6105_v47 = vmov 0.0  }
 0xb02   :  { %2625 = vmatprep.subr.mxu1 %v6095_v12  ;;  %2555 = vmatpush1.msra.mxu0 %v6096_v39  ;;  %v6106_v12 = vld [vmem:[#allocation32_spill] sm:$0xff] }
 0xb03   :  { %2626 = vmatpush1.msra.mxu1 %v6097_v35  ;;  %2556 = vmatprep.subr.mxu0 %v6098_v5  ;;  %v6107_v35 = vld [vmem:[#allocation33_spill] sm:$0xff]  ;;  %v6108_v5 = vld [vmem:[#allocation38_spill] sm:$0xff] }
 0xb04   :  { %2627 = vmatprep.subr.mxu1 %v6099_v7  ;;  %2557 = vmatpush1.msra.mxu0 %v6100_v63  ;;  %v115_v7 = vpop.permute.xlu1 %114  ;;  %v6109_v63 = vld [vmem:[#allocation35_spill] sm:$0xff] }
 0xb05   :  { %2628 = vmatpush1.msra.mxu1 %v6101_v8  ;;  %2558 = vmatprep.subr.mxu0 %v6102_v13  ;;  %v202_v39 = vmul.f32 %v6109_v63, %v115_v7  ;;  %v6110_v8 = vld [vmem:[#allocation36_spill] sm:$0xff] }
 0xb06   :  { %2629 = vmatprep.subr.mxu1 %v6103_v10  ;;  %2559 = vmatpush1.msra.mxu0 %v6104_v11  ;;  %v203_v9 = vmul.f32 %v6110_v8, %v115_v7  ;;  %v6111_v11 = vld [vmem:[#allocation37_spill] sm:$0xff]  ;;  %v204_v8 = vmul.f32 %v4248_v46, %v115_v7 }
 0xb07   :  { %2592 = vmatprep.mubr.f32.mxu0 %v6105_v47  ;;  %2630 = vmatpush1.msra.mxu1 %v6106_v12  ;;  %v288_v13 = vadd.f32 %v4234_v60, %v202_v39 }
 0xb08   :  { %2663 = vmatprep.mubr.f32.mxu1 %v6105_v47  ;;  %2702 = vmatprep.subr.mxu0 %v6107_v35  ;;  %v289_v6 = vadd.f32 %v6111_v11, %v203_v9  ;;  %v205_v35 = vmul.f32 %v5833_v54, %v115_v7  ;;  %v290_v39 = vadd.f32 %v4252_v56, %v204_v8  ;;  %v6115_v8 = vld [vmem:[#allocation12_spill] sm:$0xff] }
 0xb09   :  { %2773 = vmatprep.subr.mxu1 %v6108_v5 }
 0xb0a   :  { %v291_v63 = vadd.f32 %v6112_v33, %v205_v35 }
 0xba7   :  { %v2420_v10 = vpop.f32.mrf.mxu0  ;;  %v2491_v47 = vpop.f32.mrf.mxu1 }
 0xba8   :  { %v2496_v29 = vadd.f32 %v2420_v10, %v288_v13  ;;  %v2498_v9 = vadd.f32 %v2491_v47, %v290_v39  ;;  %v6116_v39 = vld [vmem:[#allocation13_spill] sm:$0xff] }
 0xba9   :  { %v2422_v52 = vpop.f32.mrf.mxu0  ;;  %v2493_v5 = vpop.f32.mrf.mxu1 }
 0xbaa   :  { %v3365_v37 = vmul.f32 -1.442695, %v2496_v29  ;;  %v2497_v12 = vadd.f32 %v2422_v52, %v289_v6  ;;  %v2499_v41 = vadd.f32 %v2493_v5, %v291_v63 }
 0xbac   :  { %3566 = vpow2.f32 %v3365_v37  ;;  %v3366_v50 = vmul.f32 -1.442695, %v2497_v12  ;;  %v3367_v13 = vmul.f32 -1.442695, %v2499_v41 }
 0xbae   :  { %3568 = vpow2.f32 %v3366_v50 }
 0xbaf   :  { %3570 = vpow2.f32 %v3367_v13  ;;  %v6117_v13 = vld [vmem:[#allocation14_spill] sm:$0xff] }
 0xbb9   :  { %v3567_v10 = vpop.eup %3566 }
 0xbba   :  { %v2503_v11 = vadd.f32 1.0, %v3567_v10  ;;  %v6118_v10 = vld [vmem:[#allocation15_spill] sm:$0xff] }
 0xbbb   :  { %v3569_v29 = vpop.eup %3568 }
 0xbbc   :  { %3572 = vrcp.f32 %v2503_v11  ;;  %v2509_v37 = vadd.f32 1.0, %v3569_v29  ;;  %v3571_v52 = vpop.eup %3570  ;;  %v6120_v29 = vld [vmem:[#allocation17_spill] sm:$0xff] }
 0xbbd   :  { %3574 = vtanh.f32 %v2498_v9  ;;  %v2516_v35 = vadd.f32 1.0, %v3571_v52  ;;  %v6119_v9 = vld [vmem:[#allocation16_spill] sm:$0xff]  ;;  %v6122_v52 = vld [vmem:[#allocation19_spill] sm:$0xff] }
 0xbbe   :  { %3576 = vrcp.f32 %v2509_v37  ;;  %v6121_v37 = vld [vmem:[#allocation18_spill] sm:$0xff] }
 0xbbf   :  { %3578 = vrcp.f32 %v2516_v35  ;;  %v6126_v35 = vld [vmem:[#allocation23_spill] sm:$0xff] }
 0xbc9   :  { %v3573_v50 = vpop.eup %3572 }
 0xbca   :  { %v3575_v6 = vpop.eup %3574 }
 0xbcb   :  { %v3577_v12 = vpop.eup %3576  ;;  %v2520_v33 = vmul.f32 %v3575_v6, %v3573_v50  ;;  %v6123_v50 = vld [vmem:[#allocation20_spill] sm:$0xff]  ;;  %v6124_v6 = vld [vmem:[#allocation21_spill] sm:$0xff] }
 0xbcc   :  { %v2519_v5 = vmul.f32 %v3577_v12, %v5321_v43  ;;  %v3579_v41 = vpop.eup %3578  ;;  %v6113_v43 = vld [vmem:[#allocation10_spill] sm:$0xff] }
 0xbcd   :  { %v6125_v12 = vld [vmem:[#allocation22_spill] sm:$0xff] }
 0xbce   :  { %v5400_v7 = vadd.f32 %v2520_v33, %v2519_v5  ;;  %v6114_v33 = vld [vmem:[#allocation11_spill] sm:$0xff]  ;;  %v6127_v5 = vld [vmem:[#allocation24_spill] sm:$0xff] }
 0xbd0   :  { %3580 = vtanh.f32 %v5400_v7 }
 0xbdd   :  { %v3581_v47 = vpop.eup %3580 }
 0xbde   :  { %v2523_v63 = vmul.f32 %v3581_v47, %v3579_v41  ;;  %v6128_v41 = vld [vmem:[#allocation25_spill] sm:$0xff]  ;;  %v6129_v47 = vld [vmem:[#allocation26_spill] sm:$0xff] }
 0xbe0   :  { %2593 = vmatmul.mubr.f32.vlgmr.msra.gmra.mxu0 %v2523_v63  ;;  %2664 = vmatmul.mubr.f32.vlgmr.msra.gmra.mxu1 %v2523_v63  ;;  %v3229_v11 = vmul.f32 %v5243_v57, %v2523_v63  ;;  %v6130_v63 = vld [vmem:[#allocation27_spill] sm:$0xff] }
 0xbe1   :  { %2703 = vmatpush1.msra.mxu0 %v5038_v14  ;;  %2774 = vmatpush1.msra.mxu1 %v5041_v15 }
 0xbe2   :  { %3238 = vadd.xlane.f32.xlu0 %v3229_v11  ;;  %2704 = vmatprep.subr.mxu0 %v5044_v16  ;;  %v6131_v11 = vld [vmem:[#allocation28_spill] sm:$0xff] }
 0xbe3   :  { %2775 = vmatprep.subr.mxu1 %v5047_v31  ;;  %2705 = vmatpush1.msra.mxu0 %v5050_v17 }
 0xbe4   :  { %2776 = vmatpush1.msra.mxu1 %v5053_v18  ;;  %2706 = vmatprep.subr.mxu0 %v5056_v19 }
 0xbe5   :  { %2777 = vmatprep.subr.mxu1 %v5059_v20  ;;  %2707 = vmatpush1.msra.mxu0 %v5062_v21 }
 0xbe6   :  { %2778 = vmatpush1.msra.mxu1 %v5065_v22  ;;  %2708 = vmatprep.subr.mxu0 %v5068_v23 }
 0xbe7   :  { %2779 = vmatprep.subr.mxu1 %v5071_v24  ;;  %2709 = vmatpush1.msra.mxu0 %v5074_v25 }
 0xbe8   :  { %2780 = vmatpush1.msra.mxu1 %v5077_v27  ;;  %2710 = vmatprep.subr.mxu0 %v5080_v30 }
 0xbe9   :  { %2781 = vmatprep.subr.mxu1 %v5083_v32  ;;  %2711 = vmatpush1.msra.mxu0 %v5086_v34 }
 0xbea   :  { %2782 = vmatpush1.msra.mxu1 %v5089_v36  ;;  %2712 = vmatprep.subr.mxu0 %v5092_v40 }
 0xbeb   :  { %2783 = vmatprep.subr.mxu1 %v5095_v42  ;;  %2713 = vmatpush1.msra.mxu0 %v5098_v44 }
 0xbec   :  { %2784 = vmatpush1.msra.mxu1 %v5101_v4  ;;  %2714 = vmatprep.subr.mxu0 %v5104_v59 }
 0xbed   :  { %2785 = vmatprep.subr.mxu1 %v5107_v53  ;;  %2715 = vmatpush1.msra.mxu0 %v5110_v3 }
 0xbee   :  { %2786 = vmatpush1.msra.mxu1 %v5113_v55  ;;  %2716 = vmatprep.subr.mxu0 %v5116_v62 }
 0xbef   :  { %2787 = vmatprep.subr.mxu1 %v5119_v51  ;;  %2717 = vmatpush1.msra.mxu0 %v5122_v2 }
 0xbf0   :  { %2788 = vmatpush1.msra.mxu1 %v5125_v48  ;;  %2718 = vmatprep.subr.mxu0 %v5128_v28 }
 0xbf1   :  { %2789 = vmatprep.subr.mxu1 %v5131_v0  ;;  %2719 = vmatpush1.msra.mxu0 %v5134_v61 }
 0xbf2   :  { %2790 = vmatpush1.msra.mxu1 %v5137_v58  ;;  %2720 = vmatprep.subr.mxu0 %v5140_v1 }
 0xbf3   :  { %2791 = vmatprep.subr.mxu1 %v5143_v38  ;;  %2721 = vmatpush1.msra.mxu0 %v5146_v45 }
 0xbf4   :  { %2792 = vmatpush1.msra.mxu1 %v5149_v26  ;;  %2722 = vmatprep.subr.mxu0 %v5152_v49 }
 0xbf5   :  { %2793 = vmatprep.subr.mxu1 %v6113_v43  ;;  %2723 = vmatpush1.msra.mxu0 %v6114_v33  ;;  %v6142_v33 = vld [vmem:[#allocation39_spill] sm:$0xff] }
 0xbf6   :  { %2794 = vmatpush1.msra.mxu1 %v6115_v8  ;;  %2724 = vmatprep.subr.mxu0 %v6116_v39 }
 0xbf7   :  { %2795 = vmatprep.subr.mxu1 %v6117_v13  ;;  %2725 = vmatpush1.msra.mxu0 %v6118_v10 }
 0xbf8   :  { %2796 = vmatpush1.msra.mxu1 %v6119_v9  ;;  %2726 = vmatprep.subr.mxu0 %v6120_v29 }
 0xbf9   :  { %2797 = vmatprep.subr.mxu1 %v6121_v37  ;;  %2727 = vmatpush1.msra.mxu0 %v6122_v52  ;;  %v6132_v37 = vld [vmem:[#allocation29_spill] sm:$0xff]  ;;  %v6133_v52 = vld [vmem:[#allocation30_spill] sm:$0xff] }
 0xbfa   :  { %2798 = vmatpush1.msra.mxu1 %v6123_v50  ;;  %2728 = vmatprep.subr.mxu0 %v6124_v6  ;;  %v6134_v50 = vld [vmem:[#allocation31_spill] sm:$0xff]  ;;  %v6135_v6 = vmov 0.0  }
 0xbfb   :  { %2799 = vmatprep.subr.mxu1 %v6125_v12  ;;  %2729 = vmatpush1.msra.mxu0 %v6126_v35  ;;  %v6136_v12 = vld [vmem:[#allocation32_spill] sm:$0xff] }
 0xbfc   :  { %2800 = vmatpush1.msra.mxu1 %v6127_v5  ;;  %2730 = vmatprep.subr.mxu0 %v6128_v41  ;;  %v6137_v5 = vld [vmem:[#allocation33_spill] sm:$0xff]  ;;  %v6138_v41 = vld [vmem:[#allocation38_spill] sm:$0xff] }
 0xbfd   :  { %2801 = vmatprep.subr.mxu1 %v6129_v47  ;;  %2731 = vmatpush1.msra.mxu0 %v6130_v63  ;;  %v120_v47 = vpop.permute.xlu0 %119  ;;  %v6139_v63 = vld [vmem:[#allocation35_spill] sm:$0xff] }
 0xbfe   :  { %2802 = vmatpush1.msra.mxu1 %v6131_v11  ;;  %2732 = vmatprep.subr.mxu0 %v6132_v37  ;;  %v206_v35 = vmul.f32 %v6139_v63, %v120_v47  ;;  %v6140_v11 = vld [vmem:[#allocation36_spill] sm:$0xff] }
 0xbff   :  { %2803 = vmatprep.subr.mxu1 %v6133_v52  ;;  %2733 = vmatpush1.msra.mxu0 %v6134_v50  ;;  %v207_v29 = vmul.f32 %v6140_v11, %v120_v47  ;;  %v6141_v50 = vld [vmem:[#allocation37_spill] sm:$0xff]  ;;  %v208_v11 = vmul.f32 %v4248_v46, %v120_v47 }
 0xc00   :  { %2766 = vmatprep.mubr.f32.mxu0 %v6135_v6  ;;  %2804 = vmatpush1.msra.mxu1 %v6136_v12  ;;  %v292_v37 = vadd.f32 %v4234_v60, %v206_v35 }
 0xc01   :  { %2837 = vmatprep.mubr.f32.mxu1 %v6135_v6  ;;  %2876 = vmatprep.subr.mxu0 %v6137_v5  ;;  %v293_v10 = vadd.f32 %v6141_v50, %v207_v29  ;;  %v209_v5 = vmul.f32 %v5833_v54, %v120_v47  ;;  %v294_v35 = vadd.f32 %v4252_v56, %v208_v11 }
 0xc02   :  { %2947 = vmatprep.subr.mxu1 %v6138_v41 }
 0xc03   :  { %v295_v63 = vadd.f32 %v6142_v33, %v209_v5 }
 0xca0   :  { %v2594_v52 = vpop.f32.mrf.mxu0  ;;  %v2665_v6 = vpop.f32.mrf.mxu1 }
 0xca1   :  { %v2670_v9 = vadd.f32 %v2594_v52, %v292_v37  ;;  %v2672_v29 = vadd.f32 %v2665_v6, %v294_v35 }
 0xca2   :  { %v2596_v13 = vpop.f32.mrf.mxu0  ;;  %v2667_v41 = vpop.f32.mrf.mxu1 }
 0xca3   :  { %v3368_v39 = vmul.f32 -1.442695, %v2670_v9  ;;  %v2671_v12 = vadd.f32 %v2596_v13, %v293_v10  ;;  %v2673_v43 = vadd.f32 %v2667_v41, %v295_v63 }
 0xca5   :  { %3582 = vpow2.f32 %v3368_v39  ;;  %v3369_v8 = vmul.f32 -1.442695, %v2671_v12  ;;  %v3370_v37 = vmul.f32 -1.442695, %v2673_v43 }
 0xca7   :  { %3584 = vpow2.f32 %v3369_v8 }
 0xca8   :  { %3586 = vpow2.f32 %v3370_v37  ;;  %v6170_v37 = vld [vmem:[#allocation39_spill] sm:$0xff] }
 0xcb2   :  { %v3583_v52 = vpop.eup %3582 }
 0xcb3   :  { %v2677_v50 = vadd.f32 1.0, %v3583_v52 }
 0xcb4   :  { %v3585_v9 = vpop.eup %3584 }
 0xcb5   :  { %3588 = vrcp.f32 %v2677_v50  ;;  %v2683_v39 = vadd.f32 1.0, %v3585_v9  ;;  %v3587_v13 = vpop.eup %3586 }
 0xcb6   :  { %3590 = vtanh.f32 %v2672_v29  ;;  %v2690_v5 = vadd.f32 1.0, %v3587_v13 }
 0xcb7   :  { %3592 = vrcp.f32 %v2683_v39 }
 0xcb8   :  { %3594 = vrcp.f32 %v2690_v5 }
 0xcc2   :  { %v3589_v8 = vpop.eup %3588 }
 0xcc3   :  { %v3591_v10 = vpop.eup %3590 }
 0xcc4   :  { %v3593_v12 = vpop.eup %3592  ;;  %v2694_v33 = vmul.f32 %v3591_v10, %v3589_v8 }
 0xcc5   :  { %v2693_v47 = vmul.f32 %v3593_v12, %v5400_v7  ;;  %v3595_v43 = vpop.eup %3594 }
 0xcc7   :  { %v5479_v63 = vadd.f32 %v2694_v33, %v2693_v47 }
 0xcc9   :  { %3596 = vtanh.f32 %v5479_v63 }
 0xcd6   :  { %v3597_v6 = vpop.eup %3596 }
 0xcd7   :  { %v2697_v11 = vmul.f32 %v3597_v6, %v3595_v43 }
 0xcd9   :  { %2767 = vmatmul.mubr.f32.vlgmr.msra.gmra.mxu0 %v2697_v11  ;;  %2838 = vmatmul.mubr.f32.vlgmr.msra.gmra.mxu1 %v2697_v11  ;;  %v3230_v50 = vmul.f32 %v5243_v57, %v2697_v11 }
 0xcda   :  { %2877 = vmatpush1.msra.mxu0 %v5038_v14  ;;  %2948 = vmatpush1.msra.mxu1 %v5041_v15  ;;  %v6143_v14 = vld [vmem:[#allocation10_spill] sm:$0xff]  ;;  %v6144_v15 = vld [vmem:[#allocation11_spill] sm:$0xff] }
 0xcdb   :  { %3240 = vadd.xlane.f32.xlu0 %v3230_v50  ;;  %2878 = vmatprep.subr.mxu0 %v5044_v16  ;;  %v6145_v16 = vld [vmem:[#allocation12_spill] sm:$0xff] }
 0xcdc   :  { %2949 = vmatprep.subr.mxu1 %v5047_v31  ;;  %2879 = vmatpush1.msra.mxu0 %v5050_v17  ;;  %v6146_v31 = vld [vmem:[#allocation13_spill] sm:$0xff]  ;;  %v6147_v17 = vld [vmem:[#allocation14_spill] sm:$0xff] }
 0xcdd   :  { %2950 = vmatpush1.msra.mxu1 %v5053_v18  ;;  %2880 = vmatprep.subr.mxu0 %v5056_v19  ;;  %v6148_v18 = vld [vmem:[#allocation15_spill] sm:$0xff]  ;;  %v6149_v19 = vld [vmem:[#allocation16_spill] sm:$0xff] }
 0xcde   :  { %2951 = vmatprep.subr.mxu1 %v5059_v20  ;;  %2881 = vmatpush1.msra.mxu0 %v5062_v21  ;;  %v6150_v20 = vld [vmem:[#allocation17_spill] sm:$0xff]  ;;  %v6151_v21 = vld [vmem:[#allocation18_spill] sm:$0xff] }
 0xcdf   :  { %2952 = vmatpush1.msra.mxu1 %v5065_v22  ;;  %2882 = vmatprep.subr.mxu0 %v5068_v23  ;;  %v6152_v22 = vld [vmem:[#allocation19_spill] sm:$0xff]  ;;  %v6153_v23 = vld [vmem:[#allocation20_spill] sm:$0xff] }
 0xce0   :  { %2953 = vmatprep.subr.mxu1 %v5071_v24  ;;  %2883 = vmatpush1.msra.mxu0 %v5074_v25  ;;  %v6154_v24 = vld [vmem:[#allocation21_spill] sm:$0xff]  ;;  %v6155_v25 = vld [vmem:[#allocation22_spill] sm:$0xff] }
 0xce1   :  { %2954 = vmatpush1.msra.mxu1 %v5077_v27  ;;  %2884 = vmatprep.subr.mxu0 %v5080_v30  ;;  %v6156_v27 = vld [vmem:[#allocation23_spill] sm:$0xff]  ;;  %v6157_v30 = vld [vmem:[#allocation24_spill] sm:$0xff] }
 0xce2   :  { %2955 = vmatprep.subr.mxu1 %v5083_v32  ;;  %2885 = vmatpush1.msra.mxu0 %v5086_v34  ;;  %v6158_v32 = vld [vmem:[#allocation25_spill] sm:$0xff]  ;;  %v6159_v34 = vld [vmem:[#allocation26_spill] sm:$0xff] }
 0xce3   :  { %2956 = vmatpush1.msra.mxu1 %v5089_v36  ;;  %2886 = vmatprep.subr.mxu0 %v5092_v40  ;;  %v6160_v36 = vld [vmem:[#allocation27_spill] sm:$0xff]  ;;  %v6161_v40 = vld [vmem:[#allocation28_spill] sm:$0xff] }
 0xce4   :  { %2957 = vmatprep.subr.mxu1 %v5095_v42  ;;  %2887 = vmatpush1.msra.mxu0 %v5098_v44  ;;  %v6162_v42 = vld [vmem:[#allocation29_spill] sm:$0xff]  ;;  %v6163_v44 = vld [vmem:[#allocation30_spill] sm:$0xff] }
 0xce5   :  { %2958 = vmatpush1.msra.mxu1 %v5101_v4  ;;  %2888 = vmatprep.subr.mxu0 %v5104_v59  ;;  %v6164_v4 = vld [vmem:[#allocation31_spill] sm:$0xff]  ;;  %v6165_v59 = vmov 0.0  }
 0xce6   :  { %2959 = vmatprep.subr.mxu1 %v5107_v53  ;;  %2889 = vmatpush1.msra.mxu0 %v5110_v3  ;;  %v6166_v53 = vld [vmem:[#allocation32_spill] sm:$0xff]  ;;  %v3774_v3 = vld [vmem:[#allocation4 + $0x1e8] sm:$0xff] }
 0xce7   :  { %2960 = vmatpush1.msra.mxu1 %v5113_v55  ;;  %2890 = vmatprep.subr.mxu0 %v5116_v62  ;;  %v3775_v55 = vld [vmem:[#allocation4 + $0x1f8] sm:$0xff]  ;;  %v125_v62 = vpop.permute.xlu1 %124 }
 0xce8   :  { %2961 = vmatprep.subr.mxu1 %v5119_v51  ;;  %2891 = vmatpush1.msra.mxu0 %v5122_v2  ;;  %v6167_v51 = vld [vmem:[#allocation35_spill] sm:$0xff]  ;;  %v213_v41 = vmul.f32 %v5833_v54, %v125_v62  ;;  %v212_v29 = vmul.f32 %v4248_v46, %v125_v62 }
 0xce9   :  { %2962 = vmatpush1.msra.mxu1 %v5125_v48  ;;  %2892 = vmatprep.subr.mxu0 %v5128_v28  ;;  %v210_v2 = vmul.f32 %v6167_v51, %v125_v62  ;;  %v6168_v48 = vld [vmem:[#allocation36_spill] sm:$0xff] }
 0xcea   :  { %2963 = vmatprep.subr.mxu1 %v5131_v0  ;;  %2893 = vmatpush1.msra.mxu0 %v5134_v61  ;;  %v211_v28 = vmul.f32 %v6168_v48, %v125_v62  ;;  %v299_v52 = vadd.f32 %v6170_v37, %v213_v41  ;;  %v298_v39 = vadd.f32 %v4252_v56, %v212_v29  ;;  %v3795_v62 = vld [vmem:[#allocation4 + $0x158] sm:$0xff]  ;;  %v3810_v29 = vld [vmem:[#allocation4 + $0xc8] sm:$0xff] }
 0xceb   :  { %2964 = vmatpush1.msra.mxu1 %v5137_v58  ;;  %2894 = vmatprep.subr.mxu0 %v5140_v1  ;;  %v296_v0 = vadd.f32 %v4234_v60, %v210_v2  ;;  %v6169_v1 = vld [vmem:[#allocation37_spill] sm:$0xff]  ;;  %v3807_v41 = vld [vmem:[#allocation4 + $0xf8] sm:$0xff] }
 0xcec   :  { %2965 = vmatprep.subr.mxu1 %v5143_v38  ;;  %2895 = vmatpush1.msra.mxu0 %v5146_v45  ;;  %v297_v38 = vadd.f32 %v6169_v1, %v211_v28  ;;  %v3796_v2 = vld [vmem:[#allocation4 + $0x140] sm:$0xff]  ;;  %v3797_v28 = vld [vmem:[#allocation4 + $0x150] sm:$0xff] }
 0xced   :  { %2966 = vmatpush1.msra.mxu1 %v5149_v26  ;;  %2896 = vmatprep.subr.mxu0 %v5152_v49 }
 0xcee   :  { %2967 = vmatprep.subr.mxu1 %v6143_v14  ;;  %2897 = vmatpush1.msra.mxu0 %v6144_v15 }
 0xcef   :  { %2968 = vmatpush1.msra.mxu1 %v6145_v16  ;;  %2898 = vmatprep.subr.mxu0 %v6146_v31 }
 0xcf0   :  { %2969 = vmatprep.subr.mxu1 %v6147_v17  ;;  %2899 = vmatpush1.msra.mxu0 %v6148_v18 }
 0xcf1   :  { %2970 = vmatpush1.msra.mxu1 %v6149_v19  ;;  %2900 = vmatprep.subr.mxu0 %v6150_v20 }
 0xcf2   :  { %2971 = vmatprep.subr.mxu1 %v6151_v21  ;;  %2901 = vmatpush1.msra.mxu0 %v6152_v22  ;;  %v3776_v21 = vld [vmem:[#allocation4 + $0x1e0] sm:$0xff]  ;;  %v3777_v22 = vld [vmem:[#allocation4 + $0x1f0] sm:$0xff] }
 0xcf3   :  { %2972 = vmatpush1.msra.mxu1 %v6153_v23  ;;  %2902 = vmatprep.subr.mxu0 %v6154_v24  ;;  %v3778_v23 = vld [vmem:[#allocation4 + $0x1c8] sm:$0xff]  ;;  %v3780_v24 = vld [vmem:[#allocation4 + $0x1c0] sm:$0xff] }
 0xcf4   :  { %2973 = vmatprep.subr.mxu1 %v6155_v25  ;;  %2903 = vmatpush1.msra.mxu0 %v6156_v27  ;;  %v3781_v25 = vld [vmem:[#allocation4 + $0x1d0] sm:$0xff]  ;;  %v3782_v27 = vld [vmem:[#allocation4 + $0x1a8] sm:$0xff] }
 0xcf5   :  { %2974 = vmatpush1.msra.mxu1 %v6157_v30  ;;  %2904 = vmatprep.subr.mxu0 %v6158_v32  ;;  %v3783_v30 = vld [vmem:[#allocation4 + $0x1b8] sm:$0xff]  ;;  %v3784_v32 = vld [vmem:[#allocation4 + $0x1a0] sm:$0xff] }
 0xcf6   :  { %2975 = vmatprep.subr.mxu1 %v6159_v34  ;;  %2905 = vmatpush1.msra.mxu0 %v6160_v36  ;;  %v3786_v34 = vld [vmem:[#allocation4 + $0x188] sm:$0xff]  ;;  %v3787_v36 = vld [vmem:[#allocation4 + $0x198] sm:$0xff] }
 0xcf7   :  { %2976 = vmatpush1.msra.mxu1 %v6161_v40  ;;  %2906 = vmatprep.subr.mxu0 %v6162_v42  ;;  %v3788_v40 = vld [vmem:[#allocation4 + $0x180] sm:$0xff]  ;;  %v3789_v42 = vld [vmem:[#allocation4 + $0x190] sm:$0xff] }
 0xcf8   :  { %2977 = vmatprep.subr.mxu1 %v6163_v44  ;;  %2907 = vmatpush1.msra.mxu0 %v6164_v4  ;;  %v3790_v44 = vld [vmem:[#allocation4 + $0x168] sm:$0xff]  ;;  %v3791_v4 = vld [vmem:[#allocation4 + $0x178] sm:$0xff] }
 0xcf9   :  { %2940 = vmatprep.mubr.f32.mxu0 %v6165_v59  ;;  %2978 = vmatpush1.msra.mxu1 %v6166_v53  ;;  %v3792_v53 = vld [vmem:[#allocation4 + $0x160] sm:$0xff] }
 0xcfa   :  { %3011 = vmatprep.mubr.f32.mxu1 %v6165_v59  ;;  %3050 = vmatprep.subr.mxu0 %v3774_v3  ;;  %v3793_v3 = vld [vmem:[#allocation4 + $0x170] sm:$0xff] }
 0xcfb   :  { %3121 = vmatprep.subr.mxu1 %v3775_v55  ;;  %v3794_v55 = vld [vmem:[#allocation4 + $0x148] sm:$0xff] }
 0xd99   :  { %v2768_v61 = vpop.f32.mrf.mxu0  ;;  %v2839_v7 = vpop.f32.mrf.mxu1 }
 0xd9a   :  { %v2844_v58 = vadd.f32 %v2768_v61, %v296_v0  ;;  %v2846_v10 = vadd.f32 %v2839_v7, %v298_v39  ;;  %v3798_v0 = vld [vmem:[#allocation4 + $0x128] sm:$0xff]  ;;  %v3799_v61 = vld [vmem:[#allocation4 + $0x138] sm:$0xff]  ;;  %v3805_v7 = vld [vmem:[#allocation4 + $0x110] sm:$0xff] }
 0xd9b   :  { %v2770_v45 = vpop.f32.mrf.mxu0  ;;  %v2841_v35 = vpop.f32.mrf.mxu1  ;;  %v3812_v39 = vld [vmem:[#allocation4 + $0xc0] sm:$0xff] }
 0xd9c   :  { %v3371_v26 = vmul.f32 -1.442695, %v2844_v58  ;;  %v2845_v49 = vadd.f32 %v2770_v45, %v297_v38  ;;  %v2847_v9 = vadd.f32 %v2841_v35, %v299_v52  ;;  %v3800_v58 = vld [vmem:[#allocation4 + $0x120] sm:$0xff]  ;;  %v3801_v38 = vld [vmem:[#allocation4 + $0x130] sm:$0xff]  ;;  %v3802_v45 = vld [vmem:[#allocation4 + $0x108] sm:$0xff] }
 0xd9d   :  { %v3808_v35 = vld [vmem:[#allocation4 + $0xe0] sm:$0xff]  ;;  %v3809_v52 = vld [vmem:[#allocation4 + $0xf0] sm:$0xff] }
 0xd9e   :  { %3598 = vpow2.f32 %v3371_v26  ;;  %v3372_v33 = vmul.f32 -1.442695, %v2845_v49  ;;  %v3373_v13 = vmul.f32 -1.442695, %v2847_v9  ;;  %v3803_v26 = vld [vmem:[#allocation4 + $0x118] sm:$0xff]  ;;  %v3804_v49 = vld [vmem:[#allocation4 + $0x100] sm:$0xff] }
 0xd9f   :  { %v3811_v9 = vld [vmem:[#allocation4 + $0xd8] sm:$0xff] }
 0xda0   :  { %3600 = vpow2.f32 %v3372_v33  ;;  %v3806_v33 = vld [vmem:[#allocation4 + $0xe8] sm:$0xff] }
 0xda1   :  { %3602 = vpow2.f32 %v3373_v13  ;;  %v3813_v13 = vld [vmem:[#allocation4 + $0xd0] sm:$0xff] }
 0xdab   :  { %v3599_v8 = vpop.eup %3598 }
 0xdac   :  { %v2851_v12 = vadd.f32 1.0, %v3599_v8  ;;  %v3814_v8 = vld [vmem:[#allocation4 + $0xa8] sm:$0xff] }
 0xdad   :  { %v3601_v5 = vpop.eup %3600 }
 0xdae   :  { %3604 = vrcp.f32 %v2851_v12  ;;  %v2857_v47 = vadd.f32 1.0, %v3601_v5  ;;  %v3603_v43 = vpop.eup %3602  ;;  %v3816_v12 = vld [vmem:[#allocation4 + $0xa0] sm:$0xff]  ;;  %v3817_v5 = vld [vmem:[#allocation4 + $0xb0] sm:$0xff] }
 0xdaf   :  { %3606 = vtanh.f32 %v2846_v10  ;;  %v2864_v14 = vadd.f32 1.0, %v3603_v43  ;;  %v3815_v10 = vld [vmem:[#allocation4 + $0xb8] sm:$0xff] }
 0xdb0   :  { %3608 = vrcp.f32 %v2857_v47  ;;  %v3818_v47 = vld [vmem:[#allocation4 + $0x88] sm:$0xff]  ;;  %v3819_v43 = vld [vmem:[#allocation4 + $0x98] sm:$0xff] }
 0xdb1   :  { %3610 = vrcp.f32 %v2864_v14  ;;  %v3823_v14 = vld [vmem:[#allocation4 + $0x78] sm:$0xff] }
 0xdbb   :  { %v3605_v6 = vpop.eup %3604 }
 0xdbc   :  { %v3607_v11 = vpop.eup %3606 }
 0xdbd   :  { %v3609_v50 = vpop.eup %3608  ;;  %v2868_v15 = vmul.f32 %v3607_v11, %v3605_v6  ;;  %v3820_v6 = vld [vmem:[#allocation4 + $0x80] sm:$0xff]  ;;  %v3821_v11 = vld [vmem:[#allocation4 + $0x90] sm:$0xff] }
 0xdbe   :  { %v2867_v16 = vmul.f32 %v3609_v50, %v5479_v63  ;;  %v3611_v17 = vpop.eup %3610  ;;  %v3779_v63 = vld [vmem:[#allocation4 + $0x1d8] sm:$0xff]  ;;  %v3822_v50 = vld [vmem:[#allocation4 + $0x68] sm:$0xff] }
 0xdc0   :  { %v5556_v31 = vadd.f32 %v2868_v15, %v2867_v16  ;;  %v3824_v15 = vld [vmem:[#allocation4 + $0x60] sm:$0xff]  ;;  %v3825_v16 = vld [vmem:[#allocation4 + $0x70] sm:$0xff] }
 0xdc2   :  { %3612 = vtanh.f32 %v5556_v31 }
 0xdcf   :  { %v3613_v18 = vpop.eup %3612 }
 0xdd0   :  { %v2871_v19 = vmul.f32 %v3613_v18, %v3611_v17  ;;  %v3826_v17 = vld [vmem:[#allocation4 + $0x48] sm:$0xff]  ;;  %v3827_v18 = vld [vmem:[#allocation4 + $0x58] sm:$0xff] }
 0xdd2   :  { %2941 = vmatmul.mubr.f32.vlgmr.msra.gmra.mxu0 %v2871_v19  ;;  %3012 = vmatmul.mubr.f32.vlgmr.msra.gmra.mxu1 %v2871_v19  ;;  %v3231_v20 = vmul.f32 %v5243_v57, %v2871_v19  ;;  %v3785_v57 = vld [vmem:[#allocation4 + $0x1b0] sm:$0xff]  ;;  %v3828_v19 = vld [vmem:[#allocation4 + $0x40] sm:$0xff] }
 0xdd3   :  { %3051 = vmatpush1.msra.mxu0 %v3776_v21  ;;  %3122 = vmatpush1.msra.mxu1 %v3777_v22  ;;  %v3830_v21 = vld [vmem:[#allocation4 + $0x28] sm:$0xff]  ;;  %v3831_v22 = vld [vmem:[#allocation4 + $0x38] sm:$0xff] }
 0xdd4   :  { %3242 = vadd.xlane.f32.xlu1 %v3231_v20  ;;  %3052 = vmatprep.subr.mxu0 %v3778_v23  ;;  %v3829_v20 = vld [vmem:[#allocation4 + $0x50] sm:$0xff]  ;;  %v3832_v23 = vld [vmem:[#allocation4 + $0x20] sm:$0xff] }
 0xdd5   :  { %3123 = vmatprep.subr.mxu1 %v3779_v63  ;;  %3053 = vmatpush1.msra.mxu0 %v3780_v24  ;;  %v3833_v63 = vld [vmem:[#allocation4 + $0x30] sm:$0xff]  ;;  %v3834_v24 = vld [vmem:[#allocation4 + $0x8] sm:$0xff] }
 0xdd6   :  { %3124 = vmatpush1.msra.mxu1 %v3781_v25  ;;  %3054 = vmatprep.subr.mxu0 %v3782_v27  ;;  %v3835_v25 = vld [vmem:[#allocation4 + $0x18] sm:$0xff]  ;;  %v3836_v27 = vld [vmem:[#allocation4] sm:$0xff] }
 0xdd7   :  { %3125 = vmatprep.subr.mxu1 %v3783_v30  ;;  %3055 = vmatpush1.msra.mxu0 %v3784_v32  ;;  %v3837_v30 = vld [vmem:[#allocation4 + $0x10] sm:$0xff]  ;;  %v130_v32 = vpop.permute.xlu0 %129 }
 0xdd8   :  { %3126 = vmatpush1.msra.mxu1 %v3785_v57  ;;  %3056 = vmatprep.subr.mxu0 %v3786_v34  ;;  %v214_v57 = vmul.f32 %v6167_v51, %v130_v32  ;;  %v215_v34 = vmul.f32 %v6168_v48, %v130_v32 }
 0xdd9   :  { %3127 = vmatprep.subr.mxu1 %v3787_v36  ;;  %3057 = vmatpush1.msra.mxu0 %v3788_v40 }
 0xdda   :  { %3128 = vmatpush1.msra.mxu1 %v3789_v42  ;;  %3058 = vmatprep.subr.mxu0 %v3790_v44  ;;  %v300_v36 = vadd.f32 %v4234_v60, %v214_v57  ;;  %v301_v44 = vadd.f32 %v6169_v1, %v215_v34 }
 0xddb   :  { %3129 = vmatprep.subr.mxu1 %v3791_v4  ;;  %3059 = vmatpush1.msra.mxu0 %v3792_v53 }
 0xddc   :  { %3130 = vmatpush1.msra.mxu1 %v3793_v3  ;;  %3060 = vmatprep.subr.mxu0 %v3794_v55 }
 0xddd   :  { %3131 = vmatprep.subr.mxu1 %v3795_v62  ;;  %3061 = vmatpush1.msra.mxu0 %v3796_v2  ;;  %v217_v2 = vmul.f32 %v5833_v54, %v130_v32 }
 0xdde   :  { %3132 = vmatpush1.msra.mxu1 %v3797_v28  ;;  %3062 = vmatprep.subr.mxu0 %v3798_v0  ;;  %v216_v0 = vmul.f32 %v4248_v46, %v130_v32 }
 0xddf   :  { %3133 = vmatprep.subr.mxu1 %v3799_v61  ;;  %3063 = vmatpush1.msra.mxu0 %v3800_v58  ;;  %v303_v28 = vadd.f32 %v6170_v37, %v217_v2 }
 0xde0   :  { %3134 = vmatpush1.msra.mxu1 %v3801_v38  ;;  %3064 = vmatprep.subr.mxu0 %v3802_v45  ;;  %v302_v58 = vadd.f32 %v4252_v56, %v216_v0 }
 0xde1   :  { %3135 = vmatprep.subr.mxu1 %v3803_v26  ;;  %3065 = vmatpush1.msra.mxu0 %v3804_v49 }
 0xde2   :  { %3136 = vmatpush1.msra.mxu1 %v3805_v7  ;;  %3066 = vmatprep.subr.mxu0 %v3806_v33 }
 0xde3   :  { %3137 = vmatprep.subr.mxu1 %v3807_v41  ;;  %3067 = vmatpush1.msra.mxu0 %v3808_v35 }
 0xde4   :  { %3138 = vmatpush1.msra.mxu1 %v3809_v52  ;;  %3068 = vmatprep.subr.mxu0 %v3810_v29 }
 0xde5   :  { %3139 = vmatprep.subr.mxu1 %v3811_v9  ;;  %3069 = vmatpush1.msra.mxu0 %v3812_v39 }
 0xde6   :  { %3140 = vmatpush1.msra.mxu1 %v3813_v13  ;;  %3070 = vmatprep.subr.mxu0 %v3814_v8 }
 0xde7   :  { %3141 = vmatprep.subr.mxu1 %v3815_v10  ;;  %3071 = vmatpush1.msra.mxu0 %v3816_v12 }
 0xde8   :  { %3142 = vmatpush1.msra.mxu1 %v3817_v5  ;;  %3072 = vmatprep.subr.mxu0 %v3818_v47  ;;  %v3838_v47 = vld [vmem:[%s5591_s4] ss:$0 sm:$0xff]  ;;  %s3888_s4 = smov [#allocation7]  }
 0xde9   :  { %3143 = vmatprep.subr.mxu1 %v3819_v43  ;;  %3073 = vmatpush1.msra.mxu0 %v3820_v6  ;;  %v3381_v6 = vld [vmem:[#allocation3] ss:$0 sm:$0xff]  ;;  %s3323_s15 = sshll.u32 %s3888_s4, 4  ;;  %s3324_s15 = int_to_ptr.vmem [resolvable:$true] %s3323_s15 }
 0xdea   :  { %3144 = vmatpush1.msra.mxu1 %v3821_v11  ;;  %3074 = vmatprep.subr.mxu0 %v3822_v50  ;;  %v135_v11 = vpop.permute.xlu1 %134  ;;  %s3859_s16 = scalar_lea.vmem %s3324_s15, 128  ;;  %p3864_p6 = scmp.lt.s32.totalorder %s3324_s15, %s3324_s15 }
 0xdeb   :  { %3145 = vmatprep.subr.mxu1 %v3823_v14  ;;  %3075 = vmatpush1.msra.mxu0 %v3824_v15  ;;  %v218_v50 = vmul.f32 %v6167_v51, %v135_v11  ;;  %p3860_p5 = scmp.ne.s32.totalorder %s3324_s15, %s3859_s16  ;;  %p3865_p7 = scmp.lt.s32.totalorder %s3859_s16, %s3859_s16 }
 0xdec   :  { %3146 = vmatpush1.msra.mxu1 %v3825_v16  ;;  %3076 = vmatprep.subr.mxu0 %v3826_v17 }
 0xded   :  { %3147 = vmatprep.subr.mxu1 %v3827_v18  ;;  %3077 = vmatpush1.msra.mxu0 %v3828_v19  ;;  %v304_v14 = vadd.f32 %v4234_v60, %v218_v50  ;;  %p3866_p8 = por %p3865_p7, %p3864_p6 }
 0xdee   :  { %3148 = vmatpush1.msra.mxu1 %v3829_v20  ;;  %3078 = vmatprep.subr.mxu0 %v3830_v21 }
 0xdef   :  { %3149 = vmatprep.subr.mxu1 %v3831_v22  ;;  %3079 = vmatpush1.msra.mxu0 %v3832_v23  ;;  %v221_v23 = vmul.f32 %v5833_v54, %v135_v11  ;;  %p3867_p9 = pnand %p3866_p8, %p3860_p5 }
 0xdf0   :  { %3150 = vmatpush1.msra.mxu1 %v3833_v63  ;;  %3080 = vmatprep.subr.mxu0 %v3834_v24 }
 0xdf1   :  { %3151 = vmatprep.subr.mxu1 %v3835_v25  ;;  %3081 = vmatpush1.msra.mxu0 %v3836_v27  ;;  %v307_v51 = vadd.f32 %v6170_v37, %v221_v23 }
 0xdf2   :  { %3114 = vmatprep.mubr.f32.mxu0 %v6165_v59  ;;  %3152 = vmatpush1.msra.mxu1 %v3837_v30 }
 0xdf3   :  { %3185 = vmatprep.mubr.f32.mxu1 %v6165_v59 }
 0xe92   :  { %v2942_v40 = vpop.f32.mrf.mxu0  ;;  %v3013_v55 = vpop.f32.mrf.mxu1 }
 0xe93   :  { %v3018_v42 = vadd.f32 %v2942_v40, %v300_v36  ;;  %v3020_v26 = vadd.f32 %v3013_v55, %v302_v58  ;;  %v3235_v55 = vpop.xlane.xlu0 %3234  ;;  %v3237_v58 = vpop.xlane.xlu1 %3236 }
 0xe94   :  { %v2944_v4 = vpop.f32.mrf.mxu0  ;;  %v3015_v59 = vpop.f32.mrf.mxu1 }
 0xe95   :  { %v3374_v53 = vmul.f32 -1.442695, %v3018_v42  ;;  %v3019_v3 = vadd.f32 %v2944_v4, %v301_v44  ;;  %v3021_v61 = vadd.f32 %v3015_v59, %v303_v28  ;;  %v6171_v28 = vlaneseq }
 0xe97   :  { %3614 = vpow2.f32 %v3374_v53  ;;  %v3375_v62 = vmul.f32 -1.442695, %v3019_v3  ;;  %v3376_v38 = vmul.f32 -1.442695, %v3021_v61  ;;  %v3273_v0 = vand.u32 127, %v6171_v28 }
 0xe99   :  { %3616 = vpow2.f32 %v3375_v62  ;;  %v3239_v62 = vpop.xlane.xlu0 %3238 }
 0xe9a   :  { %3618 = vpow2.f32 %v3376_v38  ;;  %v6172_v38 = vld [vmem:[#allocation34_spill] sm:$0xff] }
 0xe9d   :  { %v3241_v2 = vpop.xlane.xlu0 %3240 }
 0xea4   :  { %v3615_v45 = vpop.eup %3614 }
 0xea5   :  { %v3025_v49 = vadd.f32 1.0, %v3615_v45  ;;  %v3276_v45 = vsub.s32 %v3273_v0, %v6172_v38 }
 0xea6   :  { %v3617_v7 = vpop.eup %3616 }
 0xea7   :  { %3620 = vrcp.f32 %v3025_v49  ;;  %v3031_v33 = vadd.f32 1.0, %v3617_v7  ;;  %v3619_v41 = vpop.eup %3618 }
 0xea8   :  { %3622 = vtanh.f32 %v3020_v26  ;;  %v3038_v9 = vadd.f32 1.0, %v3619_v41 }
 0xea9   :  { %3624 = vrcp.f32 %v3031_v33 }
 0xeaa   :  { %3626 = vrcp.f32 %v3038_v9  ;;  %v3243_v9 = vpop.xlane.xlu1 %3242 }
 0xeb4   :  { %v3621_v35 = vpop.eup %3620 }
 0xeb5   :  { %v3623_v52 = vpop.eup %3622 }
 0xeb6   :  { %v3625_v29 = vpop.eup %3624  ;;  %v3042_v39 = vmul.f32 %v3623_v52, %v3621_v35 }
 0xeb7   :  { %v3041_v13 = vmul.f32 %v3625_v29, %v5556_v31  ;;  %v3627_v10 = vpop.eup %3626  ;;  %v219_v31 = vmul.f32 %v6168_v48, %v135_v11  ;;  %v220_v48 = vmul.f32 %v4248_v46, %v135_v11 }
 0xeb9   :  { %v3043_v8 = vadd.f32 %v3042_v39, %v3041_v13  ;;  %v305_v17 = vadd.f32 %v6169_v1, %v219_v31  ;;  %v306_v60 = vadd.f32 %v4252_v56, %v220_v48 }
 0xebb   :  { %3628 = vtanh.f32 %v3043_v8 }
 0xec8   :  { %v3629_v12 = vpop.eup %3628 }
 0xec9   :  { %v3045_v5 = vmul.f32 %v3629_v12, %v3627_v10 }
 0xecb   :  { %3115 = vmatmul.mubr.f32.vlgmr.msra.gmra.mxu0 %v3045_v5  ;;  %3186 = vmatmul.mubr.f32.vlgmr.msra.gmra.mxu1 %v3045_v5  ;;  %v3232_v43 = vmul.f32 %v3838_v47, %v3045_v5 }
 0xecd   :  { %3244 = vadd.xlane.f32.xlu0 %v3232_v43 }
 0xee3   :  { %3255 = vperm.xlu0 %3388, %v3381_v6  }
 0xf56   :  { %v3245_v59 = vpop.xlane.xlu0 %3244 }
 0xf5e   :  { %v3256_v61 = vpop.permute.xlu0 %3255 }
 0xf5f   :  { %v3258_v26 = vadd.f32 %v3256_v61, %v3235_v55  ;;  %v3259_v49 = vadd.f32 %v3256_v61, %v3237_v58  ;;  %v3260_v7 = vadd.f32 %v3256_v61, %v3239_v62  ;;  %v3261_v52 = vadd.f32 %v3256_v61, %v3241_v2 }
 0xf60   :  { %v3262_v39 = vadd.f32 %v3256_v61, %v3243_v9  ;;  %v3263_v10 = vadd.f32 %v3256_v61, %v3245_v59 }
 0xf61   :  { %v3277_v33 = vrot.slane %v3258_v26, %v3276_v45  ;;  %v3281_v41 = vrot.slane %v3259_v49, %v3276_v45  ;;  %v3285_v35 = vrot.slane %v3260_v7, %v3276_v45 }
 0xf62   :  { %v3293_v5 = vrot.slane %v3262_v39, %v3276_v45  ;;  %v3297_v11 = vrot.slane %v3263_v10, %v3276_v45 }
 0xf63   :  { %v3303_v29 = vsel %vm3302_vm0, %v3281_v41, %v3277_v33 }
 0xf64   :  { %v3305_v13 = vsel %vm3304_vm1, %v3285_v35, %v3303_v29 }
 0xf8b   :  { %v3116_v15 = vpop.f32.mrf.mxu0  ;;  %v3187_v21 = vpop.f32.mrf.mxu1 }
 0xf8c   :  { %v3192_v16 = vadd.f32 %v3116_v15, %v304_v14  ;;  %v3194_v1 = vadd.f32 %v3187_v21, %v306_v60 }
 0xf8d   :  { %v3118_v18 = vpop.f32.mrf.mxu0  ;;  %v3189_v63 = vpop.f32.mrf.mxu1 }
 0xf8e   :  { %v3377_v19 = vmul.f32 -1.442695, %v3192_v16  ;;  %v3193_v20 = vadd.f32 %v3118_v18, %v305_v17  ;;  %v3195_v24 = vadd.f32 %v3189_v63, %v307_v51 }
 0xf90   :  { %3630 = vpow2.f32 %v3377_v19  ;;  %v3378_v22 = vmul.f32 -1.442695, %v3193_v20  ;;  %v3379_v25 = vmul.f32 -1.442695, %v3195_v24 }
 0xf92   :  { %3632 = vpow2.f32 %v3378_v22 }
 0xf93   :  { %3634 = vpow2.f32 %v3379_v25 }
 0xf9d   :  { %v3631_v27 = vpop.eup %3630 }
 0xf9e   :  { %v3199_v30 = vadd.f32 1.0, %v3631_v27 }
 0xf9f   :  { %v3633_v32 = vpop.eup %3632 }
 0xfa0   :  { %3636 = vrcp.f32 %v3199_v30  ;;  %v3205_v57 = vadd.f32 1.0, %v3633_v32  ;;  %v3635_v54 = vpop.eup %3634 }
 0xfa1   :  { %3638 = vtanh.f32 %v3194_v1  ;;  %v3212_v37 = vadd.f32 1.0, %v3635_v54 }
 0xfa2   :  { %3640 = vrcp.f32 %v3205_v57 }
 0xfa3   :  { %3642 = vrcp.f32 %v3212_v37 }
 0xfad   :  { %v3637_v34 = vpop.eup %3636 }
 0xfae   :  { %v3639_v36 = vpop.eup %3638 }
 0xfaf   :  { %v3641_v40 = vpop.eup %3640  ;;  %v3216_v42 = vmul.f32 %v3639_v36, %v3637_v34 }
 0xfb0   :  { %v3215_v46 = vmul.f32 %v3641_v40, %v3043_v8  ;;  %v3643_v56 = vpop.eup %3642  ;;  %v3289_v8 = vrot.slane %v3261_v52, %v3276_v45 }
 0xfb2   :  { %v3217_v44 = vadd.f32 %v3216_v42, %v3215_v46  ;;  %v3307_v12 = vsel %vm3306_vm2, %v3289_v8, %v3305_v13 }
 0xfb3   :  { %v3309_v6 = vsel %vm3308_vm3, %v3293_v5, %v3307_v12 }
 0xfb4   :  { %3644 = vtanh.f32 %v3217_v44  ;;  %v3311_v31 = vsel %vm3310_vm4, %v3297_v11, %v3309_v6 }
 0xfc1   :  { %v3645_v4 = vpop.eup %3644 }
 0xfc2   :  { %v3219_v53 = vmul.f32 %v3645_v4, %v3643_v56 }
 0xfc4   :  { %v3233_v3 = vmul.f32 %v3838_v47, %v3219_v53 }
 0xfc6   :  { %3246 = vadd.xlane.f32.xlu1 %v3233_v3 }
0x104f   :  { %v3247_v47 = vpop.xlane.xlu1 %3246 }
0x1050   :  { %v3264_v43 = vadd.f32 %v3256_v61, %v3247_v47 }
0x1052   :  { %v3301_v50 = vrot.slane %v3264_v43, %v3276_v45 }
0x1054   :  { %v3313_v14 = vsel %vm3312_vm5, %v3301_v50, %v3311_v31 }
0x1055   :  { %3316 = vst.msk [vmem:[#allocation7] sm:$0x7f] %vm3315_vm6, %v3313_v14 }
0x1056   :  { %3870 = shalt.err (!%p3867_p9)
}
0x1057   :  { %3326 = dma.vmem_to_hbm [thread:$0]  %s3324_s15, 128, %s5593_s6, [#allocation6]  }
0x1058   :  { %3881 = dma.done.wait [#allocation6], 128  }
0x1059   :  { %3882 = vsyncadd [#allocation6], 4294967168 }
0x105a   :  { %3330 = vsyncpa [#allocation5], 1 }
0x105b   :  { %3331 = vsyncpa [#allocation6], 1 }

</bundles_post_ra>
